<compile_context>
chip_gen: v5e
topology: v5e:2x2
jax: 0.10.0
libtpu: 0.0.40
codegen_flags: <defaults>
</compile_context>

<pallas_src>
import math

import jax
import jax.numpy as jnp
from jax.experimental import pallas as pl
from jax.experimental.pallas import tpu as pltpu

# ---- shapes (small but MXU/lane friendly, consistent with the module) ----
B = 2            # batch
BT = 1           # batch tile per "parallel" grid step (v7x dual-TC)
S = 128          # sequence length (lane-dense stand-in for sentence_length=250)
H = 128          # bert hidden size (lane-dense stand-in for 768)
FF = 256         # FFN intermediate size
HL = 128         # hidden_layer_size > 0 -> exercises the Linear+ReLU branch
VOCAB = 100
NTYPES = 2
NLAYERS = 2
OUT_PAD = 128    # lane-dense output slab width; real output is column 0


# ---------------- shared math helpers (pure jnp, usable inside kernels) -------
def _layer_norm(x, g, b, eps=1e-12):
    mu = jnp.mean(x, axis=-1, keepdims=True)
    var = jnp.mean((x - mu) ** 2, axis=-1, keepdims=True)
    return (x - mu) * jax.lax.rsqrt(var + eps) * g + b


def _gelu(x):
    c = math.sqrt(2.0 / math.pi)
    return 0.5 * x * (1.0 + jnp.tanh(c * (x + 0.044715 * x * x * x)))


# ---------------- fused Pallas kernel: encoder layers + classifier head -------
def fused_bert_kernel(x_ref, m_ref, avg_ref, pos_ref,
                      wqkv_ref, bqkv_ref, wo_ref, bo_ref, g1_ref, be1_ref,
                      w1_ref, bf1_ref, w2_ref, bf2_ref, g2_ref, be2_ref,
                      whm_ref, whp_ref, bh_ref, who_ref, bho_ref,
                      out_ref, x_sc, amask_sc):
    l = pl.program_id(1)     # layer axis ("arbitrary", carries state in x_sc)

    # First layer of each batch tile: load embeddings into the resident VMEM
    # activation scratch and build the additive attention mask once.
    @pl.when(l == 0)
    def _():
        x_sc[...] = x_ref[...]
        amask_sc[...] = (m_ref[...] - 1.0) * 1e9          # (BT, 1, S)

    x3 = x_sc[...]                                        # (BT, S, H) f32, resident
    x2 = x3.reshape(BT * S, H)                            # 128 rows per MXU feed
    x_bf = x2.astype(jnp.bfloat16)

    # ---- fused QKV projection: one [BT*S, H] x [H, 3H] matmul -------------
    # (1/sqrt(H) scale is pre-folded into the Q slice of WQKV / BQKV at init.)
    qkv = jnp.dot(x_bf, wqkv_ref[0],
                  preferred_element_type=jnp.float32) + bqkv_ref[0]
    qkv_bf = qkv.astype(jnp.bfloat16)
    q = qkv_bf[:, 0 * H:1 * H].reshape(BT, S, H)
    k = qkv_bf[:, 1 * H:2 * H].reshape(BT, S, H)
    v = qkv_bf[:, 2 * H:3 * H].reshape(BT, S, H)

    # ---- attention (lane-dense score axis: (BT, S, S) = (1, 128, 128)) ----
    scores = jnp.einsum("bqd,bkd->bqk", q, k,
                        preferred_element_type=jnp.float32)
    scores = scores + amask_sc[...]                       # additive mask, built once
    smax = jnp.max(scores, axis=-1, keepdims=True)
    p = jnp.exp(scores - smax)
    p = p * pl.reciprocal(jnp.sum(p, axis=-1, keepdims=True), approx=True)

    ctx = jnp.einsum("bqk,bkd->bqd", p.astype(jnp.bfloat16), v,
                     preferred_element_type=jnp.float32)
    attn = jnp.dot(ctx.reshape(BT * S, H).astype(jnp.bfloat16), wo_ref[0],
                   preferred_element_type=jnp.float32) + bo_ref[0]

    # ---- residual + LN + FFN (f32 elementwise; bf16 only at MXU boundary) --
    h = _layer_norm(x2 + attn, g1_ref[0], be1_ref[0])
    ff = _gelu(jnp.dot(h.astype(jnp.bfloat16), w1_ref[0],
                       preferred_element_type=jnp.float32) + bf1_ref[0])
    ff2 = jnp.dot(ff.astype(jnp.bfloat16), w2_ref[0],
                  preferred_element_type=jnp.float32) + bf2_ref[0]
    x_new = _layer_norm(h + ff2, g2_ref[0], be2_ref[0])
    x_out3 = x_new.reshape(BT, S, H)
    x_sc[...] = x_out3                                    # carry to next layer

    # ---- classifier head, fused into the last layer step -------------------
    @pl.when(l == NLAYERS - 1)
    def _():
        avg3 = avg_ref[...]                               # (BT, S, 1) pooling mask
        inputs_sum = jnp.sum(x_out3 * avg3, axis=1)       # (BT, H)
        denom = jnp.sum(avg3, axis=1)                     # (BT, 1)
        # exact divide + guard against all-zero avg_mask rows
        pooled = inputs_sum / jnp.maximum(denom, 1.0)

        # cat([pooling, positions], 1) @ W_hidden
        #   == pooling @ W[:H] + positions * W[H]
        pos = pos_ref[...].reshape(BT, 1)
        pre = (jnp.dot(pooled.astype(jnp.bfloat16), whm_ref[...],
                       preferred_element_type=jnp.float32)
               + pos * whp_ref[...] + bh_ref[...])
        hidden = jnp.maximum(pre, 0.0)                    # F.relu
        # dropout: identity (eval / inference)
        # N=1 output layer as a VPU lane reduction (no f32 MXU slow path)
        logits = jnp.sum(hidden * who_ref[...], axis=-1, keepdims=True) + bho_ref[...]
        sig = 1.0 / (1.0 + jnp.exp(-logits))              # exact sigmoid
        out_ref[...] = jnp.broadcast_to(sig.reshape(1, BT, 1), (1, BT, OUT_PAD))


_LAYER_NAMES = ["WQKV", "BQKV", "WO", "BO", "G1", "BE1",
                "W1", "BF1", "W2", "BF2", "G2", "BE2"]
_HEAD_NAMES = ["WHM", "WHP", "BH", "WHO", "BHO"]


def bert_forward(input_word_ids, input_masks, input_segments, avg_mask, positions,
                 params):
    x = embed(input_word_ids, input_segments, params)             # (B, S, H) f32
    am = input_masks.astype(jnp.float32).reshape(B, 1, S)         # attn mask (keys on lanes)
    avg = avg_mask.astype(jnp.float32).reshape(B, S, 1)           # pooling mask (seq on sublanes)
    pos = positions.astype(jnp.float32).reshape(B, 1, 1)

    stacked = [params[n] for n in _LAYER_NAMES]
    head = [params[n] for n in _HEAD_NAMES]

    in_specs = (
        [pl.BlockSpec((BT, S, H), lambda b, l: (b, 0, 0)),        # x (read only at l==0)
         pl.BlockSpec((BT, 1, S), lambda b, l: (b, 0, 0)),        # attention mask
         pl.BlockSpec((BT, S, 1), lambda b, l: (b, 0, 0)),        # avg pooling mask
         pl.BlockSpec((BT, 1, 1), lambda b, l: (b, 0, 0))]        # position feature
        # stacked per-layer weights: one layer slab per inner grid step,
        # auto double-buffered -> layer l+1 weight DMA overlaps layer l compute
        + [pl.BlockSpec((1,) + tuple(w.shape[1:]), lambda b, l: (l, 0, 0))
           for w in stacked]
        # classifier-head params: constant block index -> fetched once
        + [pl.BlockSpec(tuple(w.shape), lambda b, l: (0, 0)) for w in head]
    )

    out_full = pl.pallas_call(
        fused_bert_kernel,
        out_shape=jax.ShapeDtypeStruct((B // BT, BT, OUT_PAD), jnp.float32),
        grid=(B // BT, NLAYERS),
        in_specs=in_specs,
        out_specs=pl.BlockSpec((1, BT, OUT_PAD), lambda b, l: (b, 0, 0)),
        scratch_shapes=[pltpu.VMEM((BT, S, H), jnp.float32),      # resident activations
                        pltpu.VMEM((BT, 1, S), jnp.float32)],     # additive attention mask
        compiler_params=pltpu.CompilerParams(
            dimension_semantics=("parallel", "arbitrary"),        # batch tiles || cores, layers carry state
            vmem_limit_bytes=40 * 1024 * 1024,                    # headroom on v7x 64 MiB VMEM
        ),
    )(x, am, avg, pos, *stacked, *head)
    return out_full.reshape(B, OUT_PAD)[:, :1]                    # lane-dense slab -> (B, 1)


# ---------------- glue: embeddings (plain-JAX gather) --------------------------
def embed(input_word_ids, input_segments, params):
    x = (params["word_emb"][input_word_ids]
         + params["pos_emb"][None, :, :]
         + params["seg_emb"][input_segments])
    return _layer_norm(x, params["emb_g"], params["emb_b"])


# ---------------- pure-JAX reference (mirrors kernel math) ---------------------
def reference_forward(input_word_ids, input_masks, input_segments, avg_mask,
                      positions, params):
    x = embed(input_word_ids, input_segments, params)
    add_mask = (input_masks.astype(jnp.float32) - 1.0) * 1e9

    for l in range(NLAYERS):
        x2 = x.reshape(B * S, H)
        qkv = jnp.dot(x2.astype(jnp.bfloat16), params["WQKV"][l],
                      preferred_element_type=jnp.float32) + params["BQKV"][l]
        qkv = qkv.astype(jnp.bfloat16)
        q = qkv[:, 0 * H:1 * H].reshape(B, S, H)
        k = qkv[:, 1 * H:2 * H].reshape(B, S, H)
        v = qkv[:, 2 * H:3 * H].reshape(B, S, H)
        scores = jnp.einsum("bqd,bkd->bqk", q, k,
                            preferred_element_type=jnp.float32)
        scores = scores + add_mask[:, None, :]
        p = jax.nn.softmax(scores, axis=-1)
        ctx = jnp.einsum("bqk,bkd->bqd", p.astype(jnp.bfloat16), v,
                         preferred_element_type=jnp.float32)
        attn = jnp.dot(ctx.reshape(B * S, H).astype(jnp.bfloat16), params["WO"][l],
                       preferred_element_type=jnp.float32) + params["BO"][l]
        h = _layer_norm(x2 + attn, params["G1"][l], params["BE1"][l])
        ff = _gelu(jnp.dot(h.astype(jnp.bfloat16), params["W1"][l],
                           preferred_element_type=jnp.float32) + params["BF1"][l])
        ff2 = jnp.dot(ff.astype(jnp.bfloat16), params["W2"][l],
                      preferred_element_type=jnp.float32) + params["BF2"][l]
        x = _layer_norm(h + ff2, params["G2"][l], params["BE2"][l]).reshape(B, S, H)

    avg = avg_mask.astype(jnp.float32)
    inputs_sum = jnp.sum(x * avg[:, :, None], axis=1)
    denom = jnp.sum(avg, axis=1, keepdims=True)
    pooled = inputs_sum / jnp.maximum(denom, 1.0)
    pre = (jnp.dot(pooled.astype(jnp.bfloat16), params["WHM"],
                   preferred_element_type=jnp.float32)
           + positions.astype(jnp.float32) * params["WHP"] + params["BH"])
    hidden = jnp.maximum(pre, 0.0)
    logits = jnp.sum(hidden * params["WHO"], axis=-1, keepdims=True) + params["BHO"]
    return jax.nn.sigmoid(logits)


# ---------------- deterministic parameter init --------------------------------
def init_params(key):
    keys = iter(jax.random.split(key, 64))

    def nrm(shape, dtype=jnp.float32, scale=0.02):
        return (scale * jax.random.normal(next(keys), shape)).astype(dtype)

    bf16 = jnp.bfloat16
    sc = 1.0 / math.sqrt(H)           # attention scale folded into Q weights/bias

    wq, wk, wv = nrm((NLAYERS, H, H)), nrm((NLAYERS, H, H)), nrm((NLAYERS, H, H))
    bq, bk, bv = nrm((NLAYERS, 1, H)), nrm((NLAYERS, 1, H)), nrm((NLAYERS, 1, H))

    params = {
        "word_emb": nrm((VOCAB, H)),
        "pos_emb": nrm((S, H)),
        "seg_emb": nrm((NTYPES, H)),
        "emb_g": jnp.ones((1, H), jnp.float32),
        "emb_b": jnp.zeros((1, H), jnp.float32),
        # fused QKV (scale pre-folded into the Q slice); matmul weights bf16
        "WQKV": jnp.concatenate([wq * sc, wk, wv], axis=-1).astype(bf16),
        "BQKV": jnp.concatenate([bq * sc, bk, bv], axis=-1),
        "WO": nrm((NLAYERS, H, H), bf16), "BO": nrm((NLAYERS, 1, H)),
        "G1": jnp.ones((NLAYERS, 1, H), jnp.float32),
        "BE1": jnp.zeros((NLAYERS, 1, H), jnp.float32),
        "W1": nrm((NLAYERS, H, FF), bf16), "BF1": nrm((NLAYERS, 1, FF)),
        "W2": nrm((NLAYERS, FF, H), bf16), "BF2": nrm((NLAYERS, 1, H)),
        "G2": jnp.ones((NLAYERS, 1, H), jnp.float32),
        "BE2": jnp.zeros((NLAYERS, 1, H), jnp.float32),
        # classifier head: hidden Linear split into pooled-BERT rows + position row
        "WHM": nrm((H, HL), bf16),          # hidden_layer weight rows for pooled dims
        "WHP": nrm((1, HL)),                # hidden_layer weight row for position feature
        "BH": jnp.zeros((1, HL), jnp.float32),
        "WHO": nrm((1, HL)),                # output_layer weight as a row (VPU reduce)
        "BHO": jnp.zeros((1, 1), jnp.float32),
    }
    return params


if __name__ == "__main__":
    key = jax.random.PRNGKey(0)
    pkey, ikey, poskey = jax.random.split(key, 3)
    params = init_params(pkey)

    input_word_ids = jax.random.randint(ikey, (B, S), 0, VOCAB, dtype=jnp.int32)
    input_masks = jnp.ones((B, S), jnp.int32)
    # segment ids per row: zeros | ones | zeros (also used as avg_mask, as in fit())
    seg_row = jnp.concatenate([jnp.zeros(S // 4, jnp.int32),
                               jnp.ones(S // 2, jnp.int32),
                               jnp.zeros(S - S // 4 - S // 2, jnp.int32)])
    input_segments = jnp.tile(seg_row, (B, 1))
    avg_mask = input_segments
    positions = jax.random.uniform(poskey, (B, 1), jnp.float32)

    out = bert_forward(input_word_ids, input_masks, input_segments, avg_mask,
                       positions, params)
    out = jax.block_until_ready(out)

    ref = reference_forward(input_word_ids, input_masks, input_segments, avg_mask,
                            positions, params)
    assert out.shape == (B, 1)
    assert bool(jnp.all(jnp.isfinite(out)))
    assert jnp.allclose(out, ref, atol=1e-2, rtol=1e-2)

    print("KERNEL_OK")
</pallas_src>

<mosaic_0001>
module attributes {stable_mosaic.version = 11 : i64} {
  func.func @fused_bert_kernel(%arg0: i32, %arg1: i32, %arg2: memref<1x128x128xf32, #tpu.memory_space<vmem>>, %arg3: memref<1x1x128xf32, #tpu.memory_space<vmem>>, %arg4: memref<1x128x1xf32, #tpu.memory_space<vmem>>, %arg5: memref<1x1x1xf32, #tpu.memory_space<vmem>>, %arg6: memref<1x128x384xbf16, #tpu.memory_space<vmem>>, %arg7: memref<1x1x384xf32, #tpu.memory_space<vmem>>, %arg8: memref<1x128x128xbf16, #tpu.memory_space<vmem>>, %arg9: memref<1x1x128xf32, #tpu.memory_space<vmem>>, %arg10: memref<1x1x128xf32, #tpu.memory_space<vmem>>, %arg11: memref<1x1x128xf32, #tpu.memory_space<vmem>>, %arg12: memref<1x128x256xbf16, #tpu.memory_space<vmem>>, %arg13: memref<1x1x256xf32, #tpu.memory_space<vmem>>, %arg14: memref<1x256x128xbf16, #tpu.memory_space<vmem>>, %arg15: memref<1x1x128xf32, #tpu.memory_space<vmem>>, %arg16: memref<1x1x128xf32, #tpu.memory_space<vmem>>, %arg17: memref<1x1x128xf32, #tpu.memory_space<vmem>>, %arg18: memref<128x128xbf16, #tpu.memory_space<vmem>>, %arg19: memref<1x128xf32, #tpu.memory_space<vmem>>, %arg20: memref<1x128xf32, #tpu.memory_space<vmem>>, %arg21: memref<1x128xf32, #tpu.memory_space<vmem>>, %arg22: memref<1x1xf32, #tpu.memory_space<vmem>>, %arg23: memref<1x1x128xf32, #tpu.memory_space<vmem>>, %arg24: memref<1x128x128xf32, #tpu.memory_space<vmem>>, %arg25: memref<1x1x128xf32, #tpu.memory_space<vmem>>) attributes {dimension_semantics = [#tpu.dimension_semantics<parallel>, #tpu.dimension_semantics<arbitrary>], iteration_bounds = array<i64: 2, 2>, scalar_prefetch = 0 : i64, scratch_operands = 2 : i64, tpu.core_type = #tpu.core_type<tc>, window_params = [{transform_indices = @transform_0, window_bounds = array<i64: 1, 128, 128>}, {transform_indices = @transform_1, window_bounds = array<i64: 1, 1, 128>}, {transform_indices = @transform_2, window_bounds = array<i64: 1, 128, 1>}, {transform_indices = @transform_3, window_bounds = array<i64: 1, 1, 1>}, {transform_indices = @transform_4, window_bounds = array<i64: 1, 128, 384>}, {transform_indices = @transform_5, window_bounds = array<i64: 1, 1, 384>}, {transform_indices = @transform_6, window_bounds = array<i64: 1, 128, 128>}, {transform_indices = @transform_7, window_bounds = array<i64: 1, 1, 128>}, {transform_indices = @transform_8, window_bounds = array<i64: 1, 1, 128>}, {transform_indices = @transform_9, window_bounds = array<i64: 1, 1, 128>}, {transform_indices = @transform_10, window_bounds = array<i64: 1, 128, 256>}, {transform_indices = @transform_11, window_bounds = array<i64: 1, 1, 256>}, {transform_indices = @transform_12, window_bounds = array<i64: 1, 256, 128>}, {transform_indices = @transform_13, window_bounds = array<i64: 1, 1, 128>}, {transform_indices = @transform_14, window_bounds = array<i64: 1, 1, 128>}, {transform_indices = @transform_15, window_bounds = array<i64: 1, 1, 128>}, {pipeline_mode = #tpu.pipeline_mode<synchronous>, transform_indices = @transform_16, window_bounds = array<i64: 128, 128>}, {pipeline_mode = #tpu.pipeline_mode<synchronous>, transform_indices = @transform_17, window_bounds = array<i64: 1, 128>}, {pipeline_mode = #tpu.pipeline_mode<synchronous>, transform_indices = @transform_18, window_bounds = array<i64: 1, 128>}, {pipeline_mode = #tpu.pipeline_mode<synchronous>, transform_indices = @transform_19, window_bounds = array<i64: 1, 128>}, {pipeline_mode = #tpu.pipeline_mode<synchronous>, transform_indices = @transform_20, window_bounds = array<i64: 1, 1>}, {transform_indices = @transform_21, window_bounds = array<i64: 1, 1, 128>}]} {
    %c0_i32 = arith.constant 0 : i32
    %0 = arith.cmpi eq, %arg1, %c0_i32 : i32
    %1 = arith.extui %0 : i1 to i32
    %c0_i32_0 = arith.constant 0 : i32
    %2 = arith.cmpi ne, %1, %c0_i32_0 : i32
    scf.if %2 {
      %c0_67 = arith.constant 0 : index
      %c0_68 = arith.constant 0 : index
      %c0_69 = arith.constant 0 : index
      %133 = vector.load %arg2[%c0_67, %c0_68, %c0_69] : memref<1x128x128xf32, #tpu.memory_space<vmem>>, vector<1x128x128xf32>
      %c0_70 = arith.constant 0 : index
      %c0_71 = arith.constant 0 : index
      %c0_72 = arith.constant 0 : index
      %134 = vector.load %arg24[%c0_70, %c0_71, %c0_72] : memref<1x128x128xf32, #tpu.memory_space<vmem>>, vector<1x128x128xf32>
      tpu.vector_store %arg24[%c0_70, %c0_71, %c0_72], %133 {strides = array<i32>} : memref<1x128x128xf32, #tpu.memory_space<vmem>>, vector<1x128x128xf32>,
      %c0_73 = arith.constant 0 : index
      %c0_74 = arith.constant 0 : index
      %c0_75 = arith.constant 0 : index
      %135 = vector.load %arg3[%c0_73, %c0_74, %c0_75] : memref<1x1x128xf32, #tpu.memory_space<vmem>>, vector<1x1x128xf32>
      %cst_76 = arith.constant 1.000000e+00 : f32
      %136 = vector.broadcast %cst_76 : f32 to vector<1x1x128xf32>
      %137 = arith.subf %135, %136 : vector<1x1x128xf32>
      %cst_77 = arith.constant 1.000000e+09 : f32
      %138 = vector.broadcast %cst_77 : f32 to vector<1x1x128xf32>
      %139 = arith.mulf %137, %138 : vector<1x1x128xf32>
      %c0_78 = arith.constant 0 : index
      %c0_79 = arith.constant 0 : index
      %c0_80 = arith.constant 0 : index
      %140 = vector.load %arg25[%c0_78, %c0_79, %c0_80] : memref<1x1x128xf32, #tpu.memory_space<vmem>>, vector<1x1x128xf32>
      tpu.vector_store %arg25[%c0_78, %c0_79, %c0_80], %139 {strides = array<i32>} : memref<1x1x128xf32, #tpu.memory_space<vmem>>, vector<1x1x128xf32>,
    } else {
    }
    %c0 = arith.constant 0 : index
    %c0_1 = arith.constant 0 : index
    %c0_2 = arith.constant 0 : index
    %3 = vector.load %arg24[%c0, %c0_1, %c0_2] : memref<1x128x128xf32, #tpu.memory_space<vmem>>, vector<1x128x128xf32>
    %4 = vector.shape_cast %3 : vector<1x128x128xf32> to vector<128x128xf32>
    %5 = arith.truncf %4 : vector<128x128xf32> to vector<128x128xbf16>
    %c0_3 = arith.constant 0 : index
    %c0_4 = arith.constant 0 : index
    %c0_5 = arith.constant 0 : index
    %6 = vector.load %arg6[%c0_3, %c0_4, %c0_5] : memref<1x128x384xbf16, #tpu.memory_space<vmem>>, vector<1x128x384xbf16>
    %7 = vector.shape_cast %6 : vector<1x128x384xbf16> to vector<128x384xbf16>
    %cst = arith.constant dense<0.000000e+00> : vector<128x384xf32>
    %8 = tpu.matmul %5, %7, %cst {dimension_numbers = #tpu.dot_dimension_numbers<[1], [0], [0], [1], [0, 0, 1, 1], [], []>} : vector<128x128xbf16>, vector<128x384xbf16>, vector<128x384xf32> -> vector<128x384xf32>
    %c0_6 = arith.constant 0 : index
    %c0_7 = arith.constant 0 : index
    %c0_8 = arith.constant 0 : index
    %9 = vector.load %arg7[%c0_6, %c0_7, %c0_8] : memref<1x1x384xf32, #tpu.memory_space<vmem>>, vector<1x1x384xf32>
    %10 = vector.shape_cast %9 : vector<1x1x384xf32> to vector<1x384xf32>
    %11 = vector.broadcast %10 : vector<1x384xf32> to vector<128x384xf32>
    %12 = arith.addf %8, %11 : vector<128x384xf32>
    %13 = arith.truncf %12 : vector<128x384xf32> to vector<128x384xbf16>
    %14 = vector.extract_strided_slice %13 {offsets = [0, 0], sizes = [128, 128], strides = [1, 1]} : vector<128x384xbf16> to vector<128x128xbf16>
    %15 = vector.shape_cast %14 : vector<128x128xbf16> to vector<1x128x128xbf16>
    %16 = vector.extract_strided_slice %13 {offsets = [0, 128], sizes = [128, 128], strides = [1, 1]} : vector<128x384xbf16> to vector<128x128xbf16>
    %17 = vector.shape_cast %16 : vector<128x128xbf16> to vector<1x128x128xbf16>
    %18 = vector.extract_strided_slice %13 {offsets = [0, 256], sizes = [128, 128], strides = [1, 1]} : vector<128x384xbf16> to vector<128x128xbf16>
    %19 = vector.shape_cast %18 : vector<128x128xbf16> to vector<1x128x128xbf16>
    "tpu.trace_start"() <{level = 10 : i32, message = "bqd,bkd->bqk"}> : () -> ()
    %cst_9 = arith.constant dense<0.000000e+00> : vector<1x128x128xf32>
    %20 = tpu.matmul %15, %17, %cst_9 {dimension_numbers = #tpu.dot_dimension_numbers<[2], [2], [1], [1], [0, 0, 0, 1, 1, 1], [0], [0]>} : vector<1x128x128xbf16>, vector<1x128x128xbf16>, vector<1x128x128xf32> -> vector<1x128x128xf32>
    "tpu.trace_stop"() : () -> ()
    %c0_10 = arith.constant 0 : index
    %c0_11 = arith.constant 0 : index
    %c0_12 = arith.constant 0 : index
    %21 = vector.load %arg25[%c0_10, %c0_11, %c0_12] : memref<1x1x128xf32, #tpu.memory_space<vmem>>, vector<1x1x128xf32>
    %22 = vector.broadcast %21 : vector<1x1x128xf32> to vector<1x128x128xf32>
    %23 = arith.addf %20, %22 : vector<1x128x128xf32>
    %cst_13 = arith.constant dense<0xFF800000> : vector<1x128xf32>
    %24 = vector.multi_reduction <maximumf>, %23, %cst_13 [2] : vector<1x128x128xf32> to vector<1x128xf32>
    %25 = vector.shape_cast %24 : vector<1x128xf32> to vector<1x128x1xf32>
    %26 = vector.broadcast %25 : vector<1x128x1xf32> to vector<1x128x128xf32>
    %27 = arith.subf %23, %26 : vector<1x128x128xf32>
    %28 = math.exp %27 : vector<1x128x128xf32>
    %cst_14 = arith.constant dense<0.000000e+00> : vector<1x128xf32>
    %29 = vector.multi_reduction <add>, %28, %cst_14 [2] : vector<1x128x128xf32> to vector<1x128xf32>
    %30 = vector.shape_cast %29 : vector<1x128xf32> to vector<1x128x1xf32>
    %31 = tpu.reciprocal %30 {approx = true} : vector<1x128x1xf32> -> vector<1x128x1xf32>
    %32 = vector.broadcast %31 : vector<1x128x1xf32> to vector<1x128x128xf32>
    %33 = arith.mulf %28, %32 : vector<1x128x128xf32>
    %34 = arith.truncf %33 : vector<1x128x128xf32> to vector<1x128x128xbf16>
    "tpu.trace_start"() <{level = 10 : i32, message = "bqk,bkd->bqd"}> : () -> ()
    %cst_15 = arith.constant dense<0.000000e+00> : vector<1x128x128xf32>
    %35 = tpu.matmul %34, %19, %cst_15 {dimension_numbers = #tpu.dot_dimension_numbers<[2], [1], [1], [2], [0, 0, 0, 1, 1, 2], [0], [0]>} : vector<1x128x128xbf16>, vector<1x128x128xbf16>, vector<1x128x128xf32> -> vector<1x128x128xf32>
    "tpu.trace_stop"() : () -> ()
    %36 = vector.shape_cast %35 : vector<1x128x128xf32> to vector<128x128xf32>
    %37 = arith.truncf %36 : vector<128x128xf32> to vector<128x128xbf16>
    %c0_16 = arith.constant 0 : index
    %c0_17 = arith.constant 0 : index
    %c0_18 = arith.constant 0 : index
    %38 = vector.load %arg8[%c0_16, %c0_17, %c0_18] : memref<1x128x128xbf16, #tpu.memory_space<vmem>>, vector<1x128x128xbf16>
    %39 = vector.shape_cast %38 : vector<1x128x128xbf16> to vector<128x128xbf16>
    %cst_19 = arith.constant dense<0.000000e+00> : vector<128x128xf32>
    %40 = tpu.matmul %37, %39, %cst_19 {dimension_numbers = #tpu.dot_dimension_numbers<[1], [0], [0], [1], [0, 0, 1, 1], [], []>} : vector<128x128xbf16>, vector<128x128xbf16>, vector<128x128xf32> -> vector<128x128xf32>
    %c0_20 = arith.constant 0 : index
    %c0_21 = arith.constant 0 : index
    %c0_22 = arith.constant 0 : index
    %41 = vector.load %arg9[%c0_20, %c0_21, %c0_22] : memref<1x1x128xf32, #tpu.memory_space<vmem>>, vector<1x1x128xf32>
    %42 = vector.shape_cast %41 : vector<1x1x128xf32> to vector<1x128xf32>
    %43 = vector.broadcast %42 : vector<1x128xf32> to vector<128x128xf32>
    %44 = arith.addf %40, %43 : vector<128x128xf32>
    %45 = arith.addf %4, %44 : vector<128x128xf32>
    %c0_23 = arith.constant 0 : index
    %c0_24 = arith.constant 0 : index
    %c0_25 = arith.constant 0 : index
    %46 = vector.load %arg10[%c0_23, %c0_24, %c0_25] : memref<1x1x128xf32, #tpu.memory_space<vmem>>, vector<1x1x128xf32>
    %47 = vector.shape_cast %46 : vector<1x1x128xf32> to vector<1x128xf32>
    %c0_26 = arith.constant 0 : index
    %c0_27 = arith.constant 0 : index
    %c0_28 = arith.constant 0 : index
    %48 = vector.load %arg11[%c0_26, %c0_27, %c0_28] : memref<1x1x128xf32, #tpu.memory_space<vmem>>, vector<1x1x128xf32>
    %49 = vector.shape_cast %48 : vector<1x1x128xf32> to vector<1x128xf32>
    %cst_29 = arith.constant dense<0.000000e+00> : vector<128xf32>
    %50 = vector.multi_reduction <add>, %45, %cst_29 [1] : vector<128x128xf32> to vector<128xf32>
    %51 = vector.shape_cast %50 : vector<128xf32> to vector<128x1xf32>
    %cst_30 = arith.constant 1.280000e+02 : f32
    %52 = vector.broadcast %cst_30 : f32 to vector<128x1xf32>
    %53 = arith.divf %51, %52 : vector<128x1xf32>
    %54 = vector.broadcast %53 : vector<128x1xf32> to vector<128x128xf32>
    %55 = arith.subf %45, %54 : vector<128x128xf32>
    %56 = arith.mulf %55, %55 : vector<128x128xf32>
    %cst_31 = arith.constant dense<0.000000e+00> : vector<128xf32>
    %57 = vector.multi_reduction <add>, %56, %cst_31 [1] : vector<128x128xf32> to vector<128xf32>
    %58 = vector.shape_cast %57 : vector<128xf32> to vector<128x1xf32>
    %cst_32 = arith.constant 1.280000e+02 : f32
    %59 = vector.broadcast %cst_32 : f32 to vector<128x1xf32>
    %60 = arith.divf %58, %59 : vector<128x1xf32>
    %61 = vector.broadcast %53 : vector<128x1xf32> to vector<128x128xf32>
    %62 = arith.subf %45, %61 : vector<128x128xf32>
    %cst_33 = arith.constant 9.99999996E-13 : f32
    %63 = vector.broadcast %cst_33 : f32 to vector<128x1xf32>
    %64 = arith.addf %60, %63 : vector<128x1xf32>
    %65 = math.rsqrt %64 : vector<128x1xf32>
    %66 = vector.broadcast %65 : vector<128x1xf32> to vector<128x128xf32>
    %67 = arith.mulf %62, %66 : vector<128x128xf32>
    %68 = vector.broadcast %47 : vector<1x128xf32> to vector<128x128xf32>
    %69 = arith.mulf %67, %68 : vector<128x128xf32>
    %70 = vector.broadcast %49 : vector<1x128xf32> to vector<128x128xf32>
    %71 = arith.addf %69, %70 : vector<128x128xf32>
    %72 = arith.truncf %71 : vector<128x128xf32> to vector<128x128xbf16>
    %c0_34 = arith.constant 0 : index
    %c0_35 = arith.constant 0 : index
    %c0_36 = arith.constant 0 : index
    %73 = vector.load %arg12[%c0_34, %c0_35, %c0_36] : memref<1x128x256xbf16, #tpu.memory_space<vmem>>, vector<1x128x256xbf16>
    %74 = vector.shape_cast %73 : vector<1x128x256xbf16> to vector<128x256xbf16>
    %cst_37 = arith.constant dense<0.000000e+00> : vector<128x256xf32>
    %75 = tpu.matmul %72, %74, %cst_37 {dimension_numbers = #tpu.dot_dimension_numbers<[1], [0], [0], [1], [0, 0, 1, 1], [], []>} : vector<128x128xbf16>, vector<128x256xbf16>, vector<128x256xf32> -> vector<128x256xf32>
    %c0_38 = arith.constant 0 : index
    %c0_39 = arith.constant 0 : index
    %c0_40 = arith.constant 0 : index
    %76 = vector.load %arg13[%c0_38, %c0_39, %c0_40] : memref<1x1x256xf32, #tpu.memory_space<vmem>>, vector<1x1x256xf32>
    %77 = vector.shape_cast %76 : vector<1x1x256xf32> to vector<1x256xf32>
    %78 = vector.broadcast %77 : vector<1x256xf32> to vector<128x256xf32>
    %79 = arith.addf %75, %78 : vector<128x256xf32>
    %cst_41 = arith.constant 5.000000e-01 : f32
    %80 = vector.broadcast %cst_41 : f32 to vector<128x256xf32>
    %81 = arith.mulf %80, %79 : vector<128x256xf32>
    %cst_42 = arith.constant 4.471500e-02 : f32
    %82 = vector.broadcast %cst_42 : f32 to vector<128x256xf32>
    %83 = arith.mulf %82, %79 : vector<128x256xf32>
    %84 = arith.mulf %83, %79 : vector<128x256xf32>
    %85 = arith.mulf %84, %79 : vector<128x256xf32>
    %86 = arith.addf %79, %85 : vector<128x256xf32>
    %cst_43 = arith.constant 0.797884583 : f32
    %87 = vector.broadcast %cst_43 : f32 to vector<128x256xf32>
    %88 = arith.mulf %87, %86 : vector<128x256xf32>
    %89 = math.tanh %88 : vector<128x256xf32>
    %cst_44 = arith.constant 1.000000e+00 : f32
    %90 = vector.broadcast %cst_44 : f32 to vector<128x256xf32>
    %91 = arith.addf %90, %89 : vector<128x256xf32>
    %92 = arith.mulf %81, %91 : vector<128x256xf32>
    %93 = arith.truncf %92 : vector<128x256xf32> to vector<128x256xbf16>
    %c0_45 = arith.constant 0 : index
    %c0_46 = arith.constant 0 : index
    %c0_47 = arith.constant 0 : index
    %94 = vector.load %arg14[%c0_45, %c0_46, %c0_47] : memref<1x256x128xbf16, #tpu.memory_space<vmem>>, vector<1x256x128xbf16>
    %95 = vector.shape_cast %94 : vector<1x256x128xbf16> to vector<256x128xbf16>
    %cst_48 = arith.constant dense<0.000000e+00> : vector<128x128xf32>
    %96 = tpu.matmul %93, %95, %cst_48 {dimension_numbers = #tpu.dot_dimension_numbers<[1], [0], [0], [1], [0, 0, 1, 1], [], []>} : vector<128x256xbf16>, vector<256x128xbf16>, vector<128x128xf32> -> vector<128x128xf32>
    %c0_49 = arith.constant 0 : index
    %c0_50 = arith.constant 0 : index
    %c0_51 = arith.constant 0 : index
    %97 = vector.load %arg15[%c0_49, %c0_50, %c0_51] : memref<1x1x128xf32, #tpu.memory_space<vmem>>, vector<1x1x128xf32>
    %98 = vector.shape_cast %97 : vector<1x1x128xf32> to vector<1x128xf32>
    %99 = vector.broadcast %98 : vector<1x128xf32> to vector<128x128xf32>
    %100 = arith.addf %96, %99 : vector<128x128xf32>
    %101 = arith.addf %71, %100 : vector<128x128xf32>
    %c0_52 = arith.constant 0 : index
    %c0_53 = arith.constant 0 : index
    %c0_54 = arith.constant 0 : index
    %102 = vector.load %arg16[%c0_52, %c0_53, %c0_54] : memref<1x1x128xf32, #tpu.memory_space<vmem>>, vector<1x1x128xf32>
    %103 = vector.shape_cast %102 : vector<1x1x128xf32> to vector<1x128xf32>
    %c0_55 = arith.constant 0 : index
    %c0_56 = arith.constant 0 : index
    %c0_57 = arith.constant 0 : index
    %104 = vector.load %arg17[%c0_55, %c0_56, %c0_57] : memref<1x1x128xf32, #tpu.memory_space<vmem>>, vector<1x1x128xf32>
    %105 = vector.shape_cast %104 : vector<1x1x128xf32> to vector<1x128xf32>
    %cst_58 = arith.constant dense<0.000000e+00> : vector<128xf32>
    %106 = vector.multi_reduction <add>, %101, %cst_58 [1] : vector<128x128xf32> to vector<128xf32>
    %107 = vector.shape_cast %106 : vector<128xf32> to vector<128x1xf32>
    %cst_59 = arith.constant 1.280000e+02 : f32
    %108 = vector.broadcast %cst_59 : f32 to vector<128x1xf32>
    %109 = arith.divf %107, %108 : vector<128x1xf32>
    %110 = vector.broadcast %109 : vector<128x1xf32> to vector<128x128xf32>
    %111 = arith.subf %101, %110 : vector<128x128xf32>
    %112 = arith.mulf %111, %111 : vector<128x128xf32>
    %cst_60 = arith.constant dense<0.000000e+00> : vector<128xf32>
    %113 = vector.multi_reduction <add>, %112, %cst_60 [1] : vector<128x128xf32> to vector<128xf32>
    %114 = vector.shape_cast %113 : vector<128xf32> to vector<128x1xf32>
    %cst_61 = arith.constant 1.280000e+02 : f32
    %115 = vector.broadcast %cst_61 : f32 to vector<128x1xf32>
    %116 = arith.divf %114, %115 : vector<128x1xf32>
    %117 = vector.broadcast %109 : vector<128x1xf32> to vector<128x128xf32>
    %118 = arith.subf %101, %117 : vector<128x128xf32>
    %cst_62 = arith.constant 9.99999996E-13 : f32
    %119 = vector.broadcast %cst_62 : f32 to vector<128x1xf32>
    %120 = arith.addf %116, %119 : vector<128x1xf32>
    %121 = math.rsqrt %120 : vector<128x1xf32>
    %122 = vector.broadcast %121 : vector<128x1xf32> to vector<128x128xf32>
    %123 = arith.mulf %118, %122 : vector<128x128xf32>
    %124 = vector.broadcast %103 : vector<1x128xf32> to vector<128x128xf32>
    %125 = arith.mulf %123, %124 : vector<128x128xf32>
    %126 = vector.broadcast %105 : vector<1x128xf32> to vector<128x128xf32>
    %127 = arith.addf %125, %126 : vector<128x128xf32>
    %128 = vector.shape_cast %127 : vector<128x128xf32> to vector<1x128x128xf32>
    %c0_63 = arith.constant 0 : index
    %c0_64 = arith.constant 0 : index
    %c0_65 = arith.constant 0 : index
    %129 = vector.load %arg24[%c0_63, %c0_64, %c0_65] : memref<1x128x128xf32, #tpu.memory_space<vmem>>, vector<1x128x128xf32>
    tpu.vector_store %arg24[%c0_63, %c0_64, %c0_65], %128 {strides = array<i32>} : memref<1x128x128xf32, #tpu.memory_space<vmem>>, vector<1x128x128xf32>,
    %c1_i32 = arith.constant 1 : i32
    %130 = arith.cmpi eq, %arg1, %c1_i32 : i32
    %131 = arith.extui %130 : i1 to i32
    %c0_i32_66 = arith.constant 0 : i32
    %132 = arith.cmpi ne, %131, %c0_i32_66 : i32
    scf.if %132 {
      %c0_67 = arith.constant 0 : index
      %c0_68 = arith.constant 0 : index
      %c0_69 = arith.constant 0 : index
      %133 = vector.load %arg4[%c0_67, %c0_68, %c0_69] : memref<1x128x1xf32, #tpu.memory_space<vmem>>, vector<1x128x1xf32>
      %134 = vector.broadcast %133 : vector<1x128x1xf32> to vector<1x128x128xf32>
      %135 = arith.mulf %128, %134 : vector<1x128x128xf32>
      %cst_70 = arith.constant dense<0.000000e+00> : vector<1x128xf32>
      %136 = vector.multi_reduction <add>, %135, %cst_70 [1] : vector<1x128x128xf32> to vector<1x128xf32>
      %cst_71 = arith.constant dense<0.000000e+00> : vector<1x1xf32>
      %137 = vector.multi_reduction <add>, %133, %cst_71 [1] : vector<1x128x1xf32> to vector<1x1xf32>
      %cst_72 = arith.constant 1.000000e+00 : f32
      %138 = vector.broadcast %cst_72 : f32 to vector<1x1xf32>
      %139 = arith.maximumf %137, %138 : vector<1x1xf32>
      %140 = vector.broadcast %139 : vector<1x1xf32> to vector<1x128xf32>
      %141 = arith.divf %136, %140 : vector<1x128xf32>
      %c0_73 = arith.constant 0 : index
      %c0_74 = arith.constant 0 : index
      %c0_75 = arith.constant 0 : index
      %142 = vector.load %arg5[%c0_73, %c0_74, %c0_75] : memref<1x1x1xf32, #tpu.memory_space<vmem>>, vector<1x1x1xf32>
      %143 = vector.shape_cast %142 : vector<1x1x1xf32> to vector<1x1xf32>
      %144 = arith.truncf %141 : vector<1x128xf32> to vector<1x128xbf16>
      %c0_76 = arith.constant 0 : index
      %c0_77 = arith.constant 0 : index
      %145 = vector.load %arg18[%c0_76, %c0_77] : memref<128x128xbf16, #tpu.memory_space<vmem>>, vector<128x128xbf16>
      %cst_78 = arith.constant dense<0.000000e+00> : vector<1x128xf32>
      %146 = tpu.matmul %144, %145, %cst_78 {dimension_numbers = #tpu.dot_dimension_numbers<[1], [0], [0], [1], [0, 0, 1, 1], [], []>} : vector<1x128xbf16>, vector<128x128xbf16>, vector<1x128xf32> -> vector<1x128xf32>
      %c0_79 = arith.constant 0 : index
      %c0_80 = arith.constant 0 : index
      %147 = vector.load %arg19[%c0_79, %c0_80] : memref<1x128xf32, #tpu.memory_space<vmem>>, vector<1x128xf32>
      %148 = vector.broadcast %143 : vector<1x1xf32> to vector<1x128xf32>
      %149 = arith.mulf %148, %147 : vector<1x128xf32>
      %150 = arith.addf %146, %149 : vector<1x128xf32>
      %c0_81 = arith.constant 0 : index
      %c0_82 = arith.constant 0 : index
      %151 = vector.load %arg20[%c0_81, %c0_82] : memref<1x128xf32, #tpu.memory_space<vmem>>, vector<1x128xf32>
      %152 = arith.addf %150, %151 : vector<1x128xf32>
      %cst_83 = arith.constant 0.000000e+00 : f32
      %153 = vector.broadcast %cst_83 : f32 to vector<1x128xf32>
      %154 = arith.maximumf %152, %153 : vector<1x128xf32>
      %c0_84 = arith.constant 0 : index
      %c0_85 = arith.constant 0 : index
      %155 = vector.load %arg21[%c0_84, %c0_85] : memref<1x128xf32, #tpu.memory_space<vmem>>, vector<1x128xf32>
      %156 = arith.mulf %154, %155 : vector<1x128xf32>
      %cst_86 = arith.constant dense<0.000000e+00> : vector<1xf32>
      %157 = vector.multi_reduction <add>, %156, %cst_86 [1] : vector<1x128xf32> to vector<1xf32>
      %158 = vector.shape_cast %157 : vector<1xf32> to vector<1x1xf32>
      %c0_87 = arith.constant 0 : index
      %c0_88 = arith.constant 0 : index
      %159 = vector.load %arg22[%c0_87, %c0_88] : memref<1x1xf32, #tpu.memory_space<vmem>>, vector<1x1xf32>
      %160 = arith.addf %158, %159 : vector<1x1xf32>
      %cst_89 = arith.constant 0.000000e+00 : f32
      %161 = vector.broadcast %cst_89 : f32 to vector<1x1xf32>
      %162 = arith.subf %161, %160 : vector<1x1xf32>
      %163 = math.exp %162 : vector<1x1xf32>
      %cst_90 = arith.constant 1.000000e+00 : f32
      %164 = vector.broadcast %cst_90 : f32 to vector<1x1xf32>
      %165 = arith.addf %164, %163 : vector<1x1xf32>
      %cst_91 = arith.constant 1.000000e+00 : f32
      %166 = vector.broadcast %cst_91 : f32 to vector<1x1xf32>
      %167 = arith.divf %166, %165 : vector<1x1xf32>
      %168 = vector.shape_cast %167 : vector<1x1xf32> to vector<1x1x1xf32>
      %169 = vector.shape_cast %168 : vector<1x1x1xf32> to vector<1x1x1xf32>
      %170 = vector.broadcast %169 : vector<1x1x1xf32> to vector<1x1x128xf32>
      %c0_92 = arith.constant 0 : index
      %c0_93 = arith.constant 0 : index
      %c0_94 = arith.constant 0 : index
      %171 = vector.load %arg23[%c0_92, %c0_93, %c0_94] : memref<1x1x128xf32, #tpu.memory_space<vmem>>, vector<1x1x128xf32>
      tpu.vector_store %arg23[%c0_92, %c0_93, %c0_94], %170 {strides = array<i32>} : memref<1x1x128xf32, #tpu.memory_space<vmem>>, vector<1x1x128xf32>,
    } else {
    }
    return
  }
  func.func @transform_0(%arg0: i32, %arg1: i32) -> (i32, i32, i32) {
    %c0_i32 = arith.constant 0 : i32
    %c0_i32_0 = arith.constant 0 : i32
    %c0_i32_1 = arith.constant 0 : i32
    return %arg0, %c0_i32, %c0_i32_0 : i32, i32, i32
  }
  func.func @transform_1(%arg0: i32, %arg1: i32) -> (i32, i32, i32) {
    %c0_i32 = arith.constant 0 : i32
    %c0_i32_0 = arith.constant 0 : i32
    %c0_i32_1 = arith.constant 0 : i32
    return %arg0, %c0_i32, %c0_i32_0 : i32, i32, i32
  }
  func.func @transform_2(%arg0: i32, %arg1: i32) -> (i32, i32, i32) {
    %c0_i32 = arith.constant 0 : i32
    %c0_i32_0 = arith.constant 0 : i32
    %c0_i32_1 = arith.constant 0 : i32
    return %arg0, %c0_i32, %c0_i32_0 : i32, i32, i32
  }
  func.func @transform_3(%arg0: i32, %arg1: i32) -> (i32, i32, i32) {
    %c0_i32 = arith.constant 0 : i32
    %c0_i32_0 = arith.constant 0 : i32
    %c0_i32_1 = arith.constant 0 : i32
    return %arg0, %c0_i32, %c0_i32_0 : i32, i32, i32
  }
  func.func @transform_4(%arg0: i32, %arg1: i32) -> (i32, i32, i32) {
    %c0_i32 = arith.constant 0 : i32
    %c0_i32_0 = arith.constant 0 : i32
    %c0_i32_1 = arith.constant 0 : i32
    return %arg1, %c0_i32, %c0_i32_0 : i32, i32, i32
  }
  func.func @transform_5(%arg0: i32, %arg1: i32) -> (i32, i32, i32) {
    %c0_i32 = arith.constant 0 : i32
    %c0_i32_0 = arith.constant 0 : i32
    %c0_i32_1 = arith.constant 0 : i32
    return %arg1, %c0_i32, %c0_i32_0 : i32, i32, i32
  }
  func.func @transform_6(%arg0: i32, %arg1: i32) -> (i32, i32, i32) {
    %c0_i32 = arith.constant 0 : i32
    %c0_i32_0 = arith.constant 0 : i32
    %c0_i32_1 = arith.constant 0 : i32
    return %arg1, %c0_i32, %c0_i32_0 : i32, i32, i32
  }
  func.func @transform_7(%arg0: i32, %arg1: i32) -> (i32, i32, i32) {
    %c0_i32 = arith.constant 0 : i32
    %c0_i32_0 = arith.constant 0 : i32
    %c0_i32_1 = arith.constant 0 : i32
    return %arg1, %c0_i32, %c0_i32_0 : i32, i32, i32
  }
  func.func @transform_8(%arg0: i32, %arg1: i32) -> (i32, i32, i32) {
    %c0_i32 = arith.constant 0 : i32
    %c0_i32_0 = arith.constant 0 : i32
    %c0_i32_1 = arith.constant 0 : i32
    return %arg1, %c0_i32, %c0_i32_0 : i32, i32, i32
  }
  func.func @transform_9(%arg0: i32, %arg1: i32) -> (i32, i32, i32) {
    %c0_i32 = arith.constant 0 : i32
    %c0_i32_0 = arith.constant 0 : i32
    %c0_i32_1 = arith.constant 0 : i32
    return %arg1, %c0_i32, %c0_i32_0 : i32, i32, i32
  }
  func.func @transform_10(%arg0: i32, %arg1: i32) -> (i32, i32, i32) {
    %c0_i32 = arith.constant 0 : i32
    %c0_i32_0 = arith.constant 0 : i32
    %c0_i32_1 = arith.constant 0 : i32
    return %arg1, %c0_i32, %c0_i32_0 : i32, i32, i32
  }
  func.func @transform_11(%arg0: i32, %arg1: i32) -> (i32, i32, i32) {
    %c0_i32 = arith.constant 0 : i32
    %c0_i32_0 = arith.constant 0 : i32
    %c0_i32_1 = arith.constant 0 : i32
    return %arg1, %c0_i32, %c0_i32_0 : i32, i32, i32
  }
  func.func @transform_12(%arg0: i32, %arg1: i32) -> (i32, i32, i32) {
    %c0_i32 = arith.constant 0 : i32
    %c0_i32_0 = arith.constant 0 : i32
    %c0_i32_1 = arith.constant 0 : i32
    return %arg1, %c0_i32, %c0_i32_0 : i32, i32, i32
  }
  func.func @transform_13(%arg0: i32, %arg1: i32) -> (i32, i32, i32) {
    %c0_i32 = arith.constant 0 : i32
    %c0_i32_0 = arith.constant 0 : i32
    %c0_i32_1 = arith.constant 0 : i32
    return %arg1, %c0_i32, %c0_i32_0 : i32, i32, i32
  }
  func.func @transform_14(%arg0: i32, %arg1: i32) -> (i32, i32, i32) {
    %c0_i32 = arith.constant 0 : i32
    %c0_i32_0 = arith.constant 0 : i32
    %c0_i32_1 = arith.constant 0 : i32
    return %arg1, %c0_i32, %c0_i32_0 : i32, i32, i32
  }
  func.func @transform_15(%arg0: i32, %arg1: i32) -> (i32, i32, i32) {
    %c0_i32 = arith.constant 0 : i32
    %c0_i32_0 = arith.constant 0 : i32
    %c0_i32_1 = arith.constant 0 : i32
    return %arg1, %c0_i32, %c0_i32_0 : i32, i32, i32
  }
  func.func @transform_16(%arg0: i32, %arg1: i32) -> (i32, i32) {
    %c0_i32 = arith.constant 0 : i32
    %c0_i32_0 = arith.constant 0 : i32
    %c0_i32_1 = arith.constant 0 : i32
    return %c0_i32, %c0_i32_0 : i32, i32
  }
  func.func @transform_17(%arg0: i32, %arg1: i32) -> (i32, i32) {
    %c0_i32 = arith.constant 0 : i32
    %c0_i32_0 = arith.constant 0 : i32
    %c0_i32_1 = arith.constant 0 : i32
    return %c0_i32, %c0_i32_0 : i32, i32
  }
  func.func @transform_18(%arg0: i32, %arg1: i32) -> (i32, i32) {
    %c0_i32 = arith.constant 0 : i32
    %c0_i32_0 = arith.constant 0 : i32
    %c0_i32_1 = arith.constant 0 : i32
    return %c0_i32, %c0_i32_0 : i32, i32
  }
  func.func @transform_19(%arg0: i32, %arg1: i32) -> (i32, i32) {
    %c0_i32 = arith.constant 0 : i32
    %c0_i32_0 = arith.constant 0 : i32
    %c0_i32_1 = arith.constant 0 : i32
    return %c0_i32, %c0_i32_0 : i32, i32
  }
  func.func @transform_20(%arg0: i32, %arg1: i32) -> (i32, i32) {
    %c0_i32 = arith.constant 0 : i32
    %c0_i32_0 = arith.constant 0 : i32
    %c0_i32_1 = arith.constant 0 : i32
    return %c0_i32, %c0_i32_0 : i32, i32
  }
  func.func @transform_21(%arg0: i32, %arg1: i32) -> (i32, i32, i32) {
    %c0_i32 = arith.constant 0 : i32
    %c0_i32_0 = arith.constant 0 : i32
    %c0_i32_1 = arith.constant 0 : i32
    return %arg0, %c0_i32, %c0_i32_0 : i32, i32, i32
  }
}

</mosaic_0001>

<bundles_post_ra>
// kernel: tpu_custom_call.1
= control target key start
LH: loop header
LB: loop body
LE: loop exit
PB: predicated region body
PF: predicated region fallthrough
CT: control target
= control target key end

     0   :  { %s7163_s0 = inlined_call_operand.vmem [shape: f32[2,128,128], index: 0, kind: input, shape index: {}]   ;;  %s7164_s1 = inlined_call_operand.hbm [shape: f32[2,1,128], index: 1, kind: input, shape index: {}]   ;;  %s7165_s2 = inlined_call_operand.vmem [shape: f32[2,128,1], index: 2, kind: input, shape index: {}]   ;;  %s7166_s3 = inlined_call_operand.vmem [shape: f32[2,1,1], index: 3, kind: input, shape index: {}]   ;;  %s7167_s4 = inlined_call_operand.hbm [shape: bf16[2,128,384], index: 4, kind: input, shape index: {}]   ;;  %s7168_s5 = inlined_call_operand.hbm [shape: f32[2,1,384], index: 5, kind: input, shape index: {}]   ;;  %s7169_s6 = inlined_call_operand.hbm [shape: bf16[2,128,128], index: 6, kind: input, shape index: {}]   ;;  %s7170_s7 = inlined_call_operand.vmem [shape: f32[2,1,128], index: 7, kind: input, shape index: {}]   ;;  %s7171_s8 = inlined_call_operand.vmem [shape: f32[2,1,128], index: 8, kind: input, shape index: {}]   ;;  %s7172_s9 = inlined_call_operand.vmem [shape: f32[2,1,128], index: 9, kind: input, shape index: {}]   ;;  %s7173_s10 = inlined_call_operand.hbm [shape: bf16[2,128,256], index: 10, kind: input, shape index: {}]   ;;  %s7174_s11 = inlined_call_operand.vmem [shape: f32[2,1,256], index: 11, kind: input, shape index: {}]   ;;  %s7175_s12 = inlined_call_operand.hbm [shape: bf16[2,256,128], index: 12, kind: input, shape index: {}]   ;;  %s7176_s13 = inlined_call_operand.vmem [shape: f32[2,1,128], index: 13, kind: input, shape index: {}]   ;;  %s7177_s14 = inlined_call_operand.vmem [shape: f32[2,1,128], index: 14, kind: input, shape index: {}]   ;;  %s7178_s15 = inlined_call_operand.vmem [shape: f32[2,1,128], index: 15, kind: input, shape index: {}]   ;;  %s7179_s16 = inlined_call_operand.hbm [shape: bf16[128,128], index: 16, kind: input, shape index: {}]   ;;  %s7180_s17 = inlined_call_operand.vmem [shape: f32[1,128], index: 17, kind: input, shape index: {}]   ;;  %s7181_s18 = inlined_call_operand.vmem [shape: f32[1,128], index: 18, kind: input, shape index: {}]   ;;  %s7182_s19 = inlined_call_operand.vmem [shape: f32[1,128], index: 19, kind: input, shape index: {}]   ;;  %s7183_s20 = inlined_call_operand.<no memory space> [shape: f32[1,1], index: 20, kind: input, shape index: {}]   ;;  %s7184_s21 = inlined_call_operand.hbm [shape: f32[2,1,128], index: 21, kind: output, shape index: {}]  }
   0x1   :  { %7210 = sst [smem:[#allocation41_spill]] %s7163_s0  ;;  %v26_v0 = vstv %s7183_s20 }
   0x2   :  { %7211 = sst [smem:[#allocation42_spill]] %s7164_s1  ;;  %27 = vst [vmem:[#allocation4] sm:$0x1] %v26_v0 }
   0x3   :  { %7212 = sst [smem:[#allocation43_spill]] %s7165_s2 }
   0x4   :  { %7213 = sst [smem:[#allocation44_spill]] %s7166_s3 }
   0x5   :  { %7214 = sst [smem:[#allocation45_spill]] %s7167_s4 }
   0x6   :  { %7215 = sst [smem:[#allocation46_spill]] %s7168_s5 }
   0x7   :  { %7216 = sst [smem:[#allocation47_spill]] %s7169_s6 }
   0x8   :  { %7217 = sst [smem:[#allocation48_spill]] %s7170_s7 }
   0x9   :  { %7218 = sst [smem:[#allocation49_spill]] %s7171_s8 }
   0xa   :  { %7219 = sst [smem:[#allocation50_spill]] %s7172_s9 }
   0xb   :  { %7220 = sst [smem:[#allocation51_spill]] %s7173_s10 }
   0xc   :  { %7221 = sst [smem:[#allocation52_spill]] %s7174_s11 }
   0xd   :  { %7222 = sst [smem:[#allocation53_spill]] %s7175_s12 }
   0xe   :  { %7223 = sst [smem:[#allocation54_spill]] %s7176_s13 }
   0xf   :  { %7224 = sst [smem:[#allocation55_spill]] %s7177_s14 }
  0x10   :  { %7225 = sst [smem:[#allocation56_spill]] %s7178_s15 }
  0x11   :  { %7226 = sst [smem:[#allocation57_spill]] %s7179_s16 }
  0x12   :  { %7227 = sst [smem:[#allocation58_spill]] %s7180_s17 }
  0x13   :  { %7228 = sst [smem:[#allocation59_spill]] %s7181_s18 }
  0x14   :  { %7229 = sst [smem:[#allocation60_spill]] %s7182_s19 }
  0x15   :  { %7230 = sst [smem:[#allocation61_spill]] %s7184_s21 }
  0x16   :  { %28 = vsyncpa [#allocation6], 0 }
  0x17   :  { %30 = vsyncpa [#allocation6 + $0x1], 0 }
  0x18   :  { %31 = vsyncpa [#allocation9], 0 }
  0x19   :  { %33 = vsyncpa [#allocation9 + $0x1], 0 }
  0x1a   :  { %34 = vsyncpa [#allocation12], 0 }
  0x1b   :  { %36 = vsyncpa [#allocation12 + $0x1], 0 }
  0x1c   :  { %37 = vsyncpa [#allocation15], 0 }
  0x1d   :  { %39 = vsyncpa [#allocation15 + $0x1], 0 }
  0x1e   :  { %40 = vsyncpa [#allocation7], 0 }
  0x1f   :  { %42 = vsyncpa [#allocation7 + $0x1], 0  ;;  %s5453_s26 = smov 0   ;;  %s5455_s27 = smov 0  }
  0x20   :  { %s5457_s3 = smov 0   ;;  %s5459_s28 = smov 0  }
  0x21   :  { %s5461_s20 = smov 0   ;;  %s5463_s29 = smov 0  }
  0x22   :  { %s5465_s0 = smov 0   ;;  %s5467_s4 = smov 0  }
  0x23   :  { %s5469_s30 = smov 0   ;;  %s5471_s5 = smov 0  }
  0x24   :  { %s5473_s22 = smov 0  }
  0x25 LB: > { %7231 = sst [smem:[#allocation24_spill]] %s5293_s27  ;;  %s5507_s23 = sadd.s32 4294967295, %s5329_s22   ;;  %s5329_s22 = sphi %s5473_s22, %s48_s22   ;;  %s5325_s5 = sphi %s5471_s5, %s7317_s5   ;;  %s5321_s30 = sphi %s5469_s30, %s7316_s30   ;;  %s5317_s4 = sphi %s5467_s4, %s7315_s4   ;;  %s5313_s0 = sphi %s5465_s0, %s7314_s0   ;;  %s5309_s29 = sphi %s5463_s29, %s7313_s29   ;;  %s5305_s20 = sphi %s5461_s20, %s7312_s20   ;;  %s5301_s28 = sphi %s5459_s28, %s7311_s28   ;;  %s5297_s3 = sphi %s5457_s3, %s7310_s3   ;;  %s5293_s27 = sphi %s5455_s27, %s7309_s27   ;;  %s5289_s26 = sphi %s5453_s26, %s7308_s26  }
  0x26   : > { %7232 = sst [smem:[#allocation25_spill]] %s5297_s3  ;;  %p184_p0 = scmp.ne.s32.totalorder %s5293_s27, %s5289_s26 }
  0x27   : > { %7233 = sst [smem:[#allocation26_spill]] %s5301_s28  ;;  %p7192_p1 = scmp.eq.s32.totalorder %s5507_s23, 0 }
  0x28   : > { %7234 = sst [smem:[#allocation27_spill]] %s5305_s20  ;;  %p4186_p2 = scmp.ge.s32.totalorder %s5329_s22, 1 }
  0x29   : > { %7235 = sst [smem:[#allocation28_spill]] %s5309_s29  ;;  %p612_p3 = scmp.lt.s32.totalorder %s5329_s22, 5 }
  0x2a   : > { %7236 = sst [smem:[#allocation29_spill]] %s5313_s0  ;;  %p5515_p4 = por %p184_p0, %p7192_p1 }
  0x2b   : > { %7237 = sst [smem:[#allocation30_spill]] %s5317_s4  ;;  %p5522_p5 = pnand %p4186_p2, %p612_p3 }
  0x2c   : > { %7238 = sst [smem:[#allocation31_spill]] %s5321_s30  ;;  %s5331_s21 = smov [#allocation16]  }
  0x2d   : > { %7239 = sst [smem:[#allocation32_spill]] %s5325_s5  ;;  %p4627_p6 = pneg %p5522_p5 }
  0x2e   : > { %7240 = sst [smem:[#allocation33_spill]] %s5329_s22  ;;  %s625_s19 = sshll.u32 %s5331_s21, 4  ;;  %s626_s19 = int_to_ptr.vmem [resolvable:$true] %s625_s19 }
  0x2f   : > { %s7242_s16 = sld [smem:[#allocation57_spill]]  ;;  %p4628_p7 = pnand %p4627_p6, %p7192_p1 }
  0x30   : > { %s7186_s24 = smov 64   ;;  %s7188_s2 = smov 4  }
  0x31   : > { %p101_p8 = scmp.eq.s32.totalorder %s5329_s22, 0  ;;  %p178_p9 = scmp.ne.s32.totalorder %s5297_s3, %s5293_s27 }
  0x32   : > { %p4655_p10 = scmp.lt.s32.totalorder %s5329_s22, 4  ;;  %s5539_s18 = sand.u32 1, %s5329_s22  }
  0x33   : > { %p180_p11 = por %p178_p9, %p101_p8  ;;  %s5544_s21 = sand.u32 1, %s5297_s3  }
  0x34   : > { %s4604_s17 = smul.u32 192, %s5321_s30  ;;  %s7193_s9 = scalar_lea.sflag [#allocation9], %s5539_s18 }
  0x35   : > { %s623_s25 = sshll.u32 %s7242_s16, 4  ;;  %s4603_s15 = smul.u32 192, %s5544_s21  ;;  %s624_s25 = int_to_ptr.hbm [resolvable:$true] %s623_s25 }
  0x36   : > { %4630 = dma.hbm_to_vmem [thread:$0]  (!%p4628_p7), %s624_s25, 1024, %s626_s19, [#allocation15], %s7186_s24, %s7186_s24, %s7188_s2  }
  0x37   : > { %p5550_p12 = pnand %p4655_p10, %p180_p11  ;;  %s7245_s24 = sld [smem:[#allocation45_spill]] }
  0x38   : > { %s694_s13 = scalar_lea.vmem [#allocation8], %s4603_s15  ;;  %s5334_s8 = smov 192  }
  0x39   : > { %s702_s11 = sshll.u32 %s694_s13, 4  ;;  %s5335_s7 = smov 12   ;;  %s703_s11 = int_to_ptr.vmem [resolvable:$true] %s702_s11 }
  0x3a   : > { %s4190_s16 = sshll.u32 %s5544_s21, 6  ;;  %s7246_s6 = sld [smem:[#allocation47_spill]] }
  0x3b   : > { %s735_s25 = scalar_lea.vmem [#allocation11], %s4190_s16  ;;  %s60_s16 = sadd.s32 1, %s5325_s5 }
  0x3c   : > { %s743_s0 = sshll.u32 %s735_s25, 4  ;;  %p100_p0 = scmp.ne.s32.totalorder %s5309_s29, %s5305_s20  ;;  %s744_s0 = int_to_ptr.vmem [resolvable:$true] %s743_s0 }
  0x3d   : > { %s699_s2 = scalar_lea.hbm %s7245_s24, %s4604_s17  ;;  %s4502_s17 = sshll.u32 %s5321_s30, 6 }
  0x3e   : > { %s700_s14 = sshll.u32 %s699_s2, 4  ;;  %s93_s24 = sadd.s32 1, %s5309_s29  ;;  %s701_s14 = int_to_ptr.hbm [resolvable:$true] %s700_s14 }
  0x3f   : > { %4637 = dma.hbm_to_vmem [thread:$0]  (!%p5550_p12), %s701_s14, 3072, %s703_s11, %s7193_s9, %s5334_s8, %s5334_s8, %s5335_s7  }
  0x40   : > { %s740_s13 = scalar_lea.hbm %s7246_s6, %s4502_s17  ;;  %s7191_s7 = scalar_lea.sflag [#allocation12], %s5539_s18 }
  0x41   : > { %s741_s2 = sshll.u32 %s740_s13, 4  ;;  %s7247_s8 = smov 4   ;;  %s742_s2 = int_to_ptr.hbm [resolvable:$true] %s741_s2 }
  0x42   : > { %s7248_s11 = smov 64   ;;  %s4185_s14 = sadd.s32 4294967294, %s5329_s22  }
  0x43   : > { %4643 = dma.hbm_to_vmem [thread:$0]  (!%p5550_p12), %s742_s2, 1024, %s744_s0, %s7191_s7, %s7248_s11, %s7248_s11, %s7247_s8  }
  0x44   : > { %s57_s17 = sadd.s32 1, %s5321_s30  ;;  %p5589_p2 = por %p101_p8, %p100_p0 }
  0x45   : > { %p58_p13 = scmp.ge.s32.totalorder %s57_s17, 2  ;;  %p106_p3 = scmp.ne.s32.totalorder %s5305_s20, %s5301_s28 }
  0x46   : > { %s7253_s2 = sadd.s32 1, %s5297_s3  ;;  %p599_p8 = scmp.eq.s32.totalorder %s5507_s23, 3 }
  0x47   : > { %s7319_s17 = smov (%p58_p13, %s57_s17), 0  ;;  %s7321_s16 = smov (!%p58_p13, %s60_s16), %s5325_s5 }
  0x48   : > { %7249 = sst [smem:[#allocation34_spill]] %s7319_s17  ;;  %p62_p6 = scmp.ge.s32.totalorder %s7321_s16, 2 }
  0x49   : > { %s168_s15 = ssub.s32 %s5321_s30, %s7319_s17  ;;  %p5602_p7 = por %p7192_p1, %p106_p3 }
  0x4a   : > { %p169_p9 = scmp.eq.s32.totalorder %s168_s15, 0  ;;  %s7323_s16 = smov (%p62_p6, %s7321_s16), 0 }
  0x4b   : > { %7252 = sst [smem:[#allocation35_spill]] %s7323_s16  ;;  %s90_s7 = ssub.s32 %s5325_s5, %s7323_s16 }
  0x4c   : > { %s5611_s25 = scalar_select %p169_p9, %s5297_s3, %s7253_s2  }
  0x4d   : > { %p91_p11 = scmp.eq.s32.totalorder %s90_s7, 0  ;;  %p605_p13 = scmp.eq.s32.totalorder %s4185_s14, 3 }
  0x4e   : > { %7254 = sst [smem:[#allocation36_spill]] %s5611_s25  ;;  %p5619_p1 = por %p599_p8, %p100_p0 }
  0x4f   : > { %s659_s15 = sand.u32 1, %s5309_s29   ;;  %p5630_p6 = por %p605_p13, %p106_p3 }
  0x50   : > { %s7255_s9 = scalar_select %p5619_p1, 1, 0 }
  0x51   : > { %s5625_s6 = scalar_select %p91_p11, %s5309_s29, %s93_s24  }
  0x52   : > { %7256 = sst [smem:[#allocation37_spill]] %s7255_s9  ;;  %s662_s7 = scalar_lea.vmem [#allocation5], %s659_s15 }
  0x53   : > { %7257 = sst [smem:[#allocation38_spill]] %s5625_s6  ;;  %s669_s14 = sshll.u32 %s662_s7, 4  ;;  %s670_s14 = int_to_ptr.vmem [resolvable:$true] %s669_s14 }
  0x54   : > { %s7258_s17 = scalar_select %p5630_p6, 1, 0 }
  0x55   : > { %s7260_s25 = sld [smem:[#allocation42_spill]]  ;;  %p4632_p0 = pnand %p4655_p10, %p5589_p2 }
  0x56   : > { %7259 = sst [smem:[#allocation39_spill]] %s7258_s17  ;;  %s4605_s24 = smul.u32 3, %s5544_s21 }
  0x57   : > { %s4606_s6 = smul.u32 3, %s5321_s30  ;;  %s4193_s29 = sshll.u32 %s5544_s21, 7 }
  0x58   : > { %s660_s28 = scalar_lea.sflag [#allocation6], %s659_s15  ;;  %s7261_s16 = sld [smem:[#allocation46_spill]] }
  0x59   : > { %s7262_s0 = scalar_lea.sflag [#allocation9], %s5539_s18  ;;  %s775_s22 = scalar_lea.vmem [#allocation13], %s4193_s29 }
  0x5a   : > { %s783_s21 = sshll.u32 %s775_s22, 4  ;;  %s7263_s10 = sld [smem:[#allocation51_spill]]  ;;  %s784_s21 = int_to_ptr.vmem [resolvable:$true] %s783_s21 }
  0x5b   : > { %s665_s3 = scalar_lea.hbm %s7260_s25, %s5325_s5  ;;  %s4503_s5 = sshll.u32 %s5321_s30, 7 }
  0x5c   : > { %s667_s4 = sshll.u32 %s665_s3, 4  ;;  %s716_s3 = scalar_lea.vmem [#allocation10], %s4605_s24  ;;  %s668_s4 = int_to_ptr.hbm [resolvable:$true] %s667_s4 }
  0x5d   : > { %4634 = dma.hbm_to_vmem [thread:$0]  (!%p4632_p0), %s668_s4, 16, %s670_s14, %s660_s28  }
  0x5e   : > { %s720_s25 = scalar_lea.hbm %s7261_s16, %s4606_s6  ;;  %s724_s2 = sshll.u32 %s716_s3, 4  ;;  %s725_s2 = int_to_ptr.vmem [resolvable:$true] %s724_s2 }
  0x5f   : > { %s722_s7 = sshll.u32 %s720_s25, 4  ;;  %s5336_s17 = smov 128   ;;  %s723_s7 = int_to_ptr.hbm [resolvable:$true] %s722_s7 }
  0x60   : > { %4640 = dma.hbm_to_vmem [thread:$0]  (!%p5550_p12), %s723_s7, 48, %s725_s2, %s7262_s0  }
  0x61   : > { %s780_s9 = scalar_lea.hbm %s7263_s10, %s4503_s5  ;;  %s5337_s15 = smov 8  }
  0x62   : > { %s781_s6 = sshll.u32 %s780_s9, 4  ;;  %s7264_s14 = scalar_lea.sflag [#allocation12], %s5539_s18  ;;  %s782_s6 = int_to_ptr.hbm [resolvable:$true] %s781_s6 }
  0x63   : > { %4646 = dma.hbm_to_vmem [thread:$0]  (!%p5550_p12), %s782_s6, 2048, %s784_s21, %s7264_s14, %s5336_s17, %s5336_s17, %s5337_s15  }
  0x64   : > { %s7265_s12 = sld [smem:[#allocation53_spill]]  ;;  %s804_s3 = scalar_lea.vmem [#allocation14], %s4193_s29 }
  0x65   : > { %s812_s2 = sshll.u32 %s804_s3, 4  ;;  %s801_s22 = scalar_lea.sflag [#allocation15], %s5539_s18  ;;  %s813_s2 = int_to_ptr.vmem [resolvable:$true] %s812_s2 }
  0x68   : > { %842 = sbr.rel (%p5522_p5) target bundleno = 2846 (0xb1e), region = 104 }
  0x6a   : > { %s809_s25 = scalar_lea.hbm %s7265_s12, %s4503_s5 }
  0x6b   : > { %s810_s7 = sshll.u32 %s809_s25, 4  ;;  %s811_s7 = int_to_ptr.hbm [resolvable:$true] %s810_s7 }
  0x6c   : > { %4649 = dma.hbm_to_vmem [thread:$0]  (!%p5550_p12), %s811_s7, 2048, %s813_s2, %s801_s22, %s7248_s11, %s7248_s11, %s7247_s8  }
  0x6d   : > { %s5672_s0 = sand.u32 1, %s5305_s20  }
  0x6e   : > { %s845_s29 = scalar_lea.sflag [#allocation6], %s5672_s0 }
  0x6f   : > { %5264 = dma.done.wait (%p5602_p7), %s845_s29, 16  }
  0x70   : > { %5266 = vsyncadd (%p5602_p7), %s845_s29, 4294967280  ;;  %s853_s18 = sand.u32 1, %s5507_s23   ;;  %s855_s19 = sand.u32 1, %s5293_s27  }
  0x71   : > { %s4607_s26 = smul.u32 192, %s855_s19  ;;  %s854_s8 = scalar_lea.sflag [#allocation9], %s853_s18 }
  0x73   : > { %s5682_s11 = scalar_lea.vmem [#allocation8], %s4607_s26 }
  0x74   : > { %5268 = dma.done.wait (%p5515_p4), %s854_s8, 3120  }
  0x75   : > { %5270 = vsyncadd (%p5515_p4), %s854_s8, 4294964176  ;;  %s4608_s21 = smul.u32 3, %s855_s19  ;;  %s4200_s28 = sshll.u32 %s855_s19, 6 }
  0x76   : > { %s874_s13 = scalar_lea.sflag [#allocation12], %s853_s18  ;;  %s5690_s9 = scalar_lea.vmem [#allocation11], %s4200_s28 }
  0x77   : > { %s5688_s4 = scalar_lea.vmem [#allocation10], %s4608_s21 }
  0x78   : > { %5272 = dma.done.wait (%p5515_p4), %s874_s13, 3072  }
  0x79   : > { %5274 = vsyncadd (%p5515_p4), %s874_s13, 4294964224  ;;  %s4201_s6 = sshll.u32 %s855_s19, 7  ;;  %s894_s15 = scalar_lea.sflag [#allocation15], %s853_s18 }
  0x7a   : > { %s5696_s17 = scalar_lea.vmem [#allocation13], %s4201_s6  ;;  %s5698_s14 = scalar_lea.vmem [#allocation14], %s4201_s6 }
  0x7b   : > { %5276 = dma.done.wait (%p5515_p4), %s894_s15, 2048  }
  0x7c   : > { %5278 = vsyncadd (%p5515_p4), %s894_s15, 4294965248  ;;  %p7266_p5 = scmp.eq.s32.totalorder %s5507_s23, 0 }
  0x7e   : > { %5280 = dma.done.wait (%p7266_p5), [#allocation15], 1024   ;;  %p7267_p10 = pmov %p7266_p5 }
  0x7f   : > { %s7268_s24 = sld [smem:[#allocation30_spill]]  ;;  %s1019_s1 = scalar_lea.vmem [#allocation17], %s5672_s0 }
  0x80   : > { %5282 = vsyncadd (%p7267_p10), [#allocation15], 4294966272  ;;  %s7269_s16 = sld [smem:[#allocation29_spill]] }
  0x81   : > { %s7272_s18 = sld [smem:[#allocation41_spill]] }
  0x82   : > { %s7273_s21 = sld [smem:[#allocation43_spill]] }
  0x83   : > { %s7276_s2 = sld [smem:[#allocation50_spill]] }
  0x84   : > { %s7277_s27 = sld [smem:[#allocation52_spill]] }
  0x85   : > { %p1020_p12 = scmp.lt.s32.totalorder %s7268_s24, 1  ;;  %s7278_s8 = sld [smem:[#allocation54_spill]] }
  0x86   : > { %p1033_p2 = scmp.lt.s32.totalorder %s7269_s16, 1  ;;  %s7279_s15 = sld [smem:[#allocation55_spill]] }
  0x87   : > { %s7325_s24 = smov (!%p1020_p12, %s7268_s24), 1  ;;  %s7280_s30 = sld [smem:[#allocation56_spill]] }
  0x88   : > { %7270 = sst [smem:[#allocation40_spill]] %s7325_s24  ;;  %s4505_s23 = sshll.u32 %s7325_s24, 7 }
  0x89   : > { %s5714_s25 = scalar_select %p1033_p2, %s7269_s16, 1 }
  0x8a   : > { %s5724_s19 = scalar_lea.vmem %s7272_s18, %s4505_s23  ;;  %s5729_s28 = scalar_lea.vmem %s7273_s21, %s4505_s23 }
  0x8b   : > { %s1041_s7 = scalar_lea.vmem %s7276_s2, %s5714_s25  ;;  %s4208_s22 = sshll.u32 %s5714_s25, 1 }
  0x8c   : > { %s5747_s24 = scalar_lea.vmem %s7277_s27, %s4208_s22  ;;  %s1048_s21 = scalar_lea.vmem %s7278_s8, %s5714_s25 }
  0x8d   : > { %s1051_s5 = scalar_lea.vmem %s7279_s15, %s5714_s25  ;;  %s1054_s20 = scalar_lea.vmem %s7280_s30, %s5714_s25 }
  0x8e   : > { %p4209_p4 = scmp.ne.s32.totalorder %s7269_s16, 0 }
  0x8f   : > { %s7281_s27 = scalar_lea.vmem (!%p4209_p4), [#allocation5], %s5672_s0 }
  0x90   : > { %1058 = sbr.rel (%p4209_p4) target bundleno = 167 (0xa7), region = 136 }
  0x95   : > { %v1059_v1 = vld [vmem:[%s5724_s19] sm:$0xff]  ;;  %v1060_v2 = vld [vmem:[%s5724_s19 + $0x8] sm:$0xff]  ;;  %v1061_v3 = vld [vmem:[%s5724_s19 + $0x10] sm:$0xff] }
  0x96   : > { %1075 = vst [vmem:[#allocation2 + $0x30] sm:$0xff] %v1059_v1  ;;  %v1062_v4 = vld [vmem:[%s5724_s19 + $0x18] sm:$0xff]  ;;  %v1063_v5 = vld [vmem:[%s5724_s19 + $0x20] sm:$0xff]  ;;  %v1064_v6 = vld [vmem:[%s5724_s19 + $0x28] sm:$0xff] }
  0x97   : > { %1076 = vst [vmem:[#allocation2] sm:$0xff] %v1060_v2  ;;  %v1065_v7 = vld [vmem:[%s5724_s19 + $0x30] sm:$0xff]  ;;  %v1066_v8 = vld [vmem:[%s5724_s19 + $0x38] sm:$0xff]  ;;  %v1067_v9 = vld [vmem:[%s5724_s19 + $0x40] sm:$0xff] }
  0x98   : > { %1077 = vst [vmem:[#allocation2 + $0x58] sm:$0xff] %v1061_v3  ;;  %v1091_v10 = vld [vmem:[%s7281_s27] sm:$0x1]  ;;  %v1068_v11 = vld [vmem:[%s5724_s19 + $0x48] sm:$0xff]  ;;  %v1069_v12 = vld [vmem:[%s5724_s19 + $0x50] sm:$0xff] }
  0x99   : > { %1078 = vst [vmem:[#allocation2 + $0x18] sm:$0xff] %v1062_v4  ;;  %v1070_v13 = vld [vmem:[%s5724_s19 + $0x58] sm:$0xff]  ;;  %v4210_v14 = vadd.f32 -1.0, %v1091_v10  ;;  %v1071_v15 = vld [vmem:[%s5724_s19 + $0x60] sm:$0xff]  ;;  %v1072_v16 = vld [vmem:[%s5724_s19 + $0x68] sm:$0xff] }
  0x9a   : > { %1079 = vst [vmem:[#allocation2 + $0x50] sm:$0xff] %v1063_v5  ;;  %v1073_v17 = vld [vmem:[%s5724_s19 + $0x70] sm:$0xff]  ;;  %v1074_v18 = vld [vmem:[%s5724_s19 + $0x78] sm:$0xff] }
  0x9b   : > { %1080 = vst [vmem:[#allocation2 + $0x68] sm:$0xff] %v1064_v6  ;;  %v1093_v19 = vmul.f32 1e+09, %v4210_v14 }
  0x9c   : > { %1081 = vst [vmem:[#allocation2 + $0x8] sm:$0xff] %v1065_v7 }
  0x9d   : > { %1082 = vst [vmem:[#allocation2 + $0x48] sm:$0xff] %v1066_v8 }
  0x9e   : > { %1083 = vst [vmem:[#allocation2 + $0x40] sm:$0xff] %v1067_v9 }
  0x9f   : > { %1084 = vst [vmem:[#allocation2 + $0x20] sm:$0xff] %v1068_v11 }
  0xa0   : > { %1085 = vst [vmem:[#allocation2 + $0x10] sm:$0xff] %v1069_v12 }
  0xa1   : > { %1086 = vst [vmem:[#allocation2 + $0x38] sm:$0xff] %v1070_v13 }
  0xa2   : > { %1087 = vst [vmem:[#allocation2 + $0x60] sm:$0xff] %v1071_v15 }
  0xa3   : > { %1088 = vst [vmem:[#allocation2 + $0x70] sm:$0xff] %v1072_v16 }
  0xa4   : > { %1089 = vst [vmem:[#allocation2 + $0x78] sm:$0xff] %v1073_v17 }
  0xa5   : > { %1090 = vst [vmem:[#allocation2 + $0x28] sm:$0xff] %v1074_v18 }
  0xa6   : > { %1094 = vst [vmem:[#allocation3] sm:$0x1] %v1093_v19 }
  0xa7 PF: > { %v4297_v20 = vld [vmem:[%s5682_s11 + $0xa8] sm:$0xf]  ;;  %v4529_v21 = vld [vmem:[%s5682_s11 + $0xb0] sm:$0xf0]  ;;  %v4528_v22 = vld [vmem:[%s5682_s11 + $0xac] sm:$0xf] }
  0xa8   : > { %v4298_v23 = vor.u32 %v4529_v21, %v4297_v20  ;;  %v4299_v24 = vld [vmem:[%s5682_s11 + $0xb4] sm:$0xf0]  ;;  %v4285_v25 = vld [vmem:[%s5682_s11 + $0x90] sm:$0xf]  ;;  %v4526_v26 = vld [vmem:[%s5682_s11 + $0x98] sm:$0xf0] }
  0xa9   : > { %v4302_v27 = vor.u32 %v4528_v22, %v4299_v24  ;;  %v4525_v28 = vld [vmem:[%s5682_s11 + $0x94] sm:$0xf]  ;;  %v4287_v29 = vld [vmem:[%s5682_s11 + $0x9c] sm:$0xf0]  ;;  %v4286_v30 = vor.u32 %v4526_v26, %v4285_v25  ;;  %v4273_v32 = vld [vmem:[%s5682_s11 + $0x78] sm:$0xf] }
  0xaa   : > { %1287 = vmatpush.bf16.msra.mxu0 %v4298_v23  ;;  %4579 = vmatpush.bf16.msra.mxu2 %v4298_v23  ;;  %v4290_v31 = vor.u32 %v4525_v28, %v4287_v29  ;;  %v4523_v33 = vld [vmem:[%s5682_s11 + $0x80] sm:$0xf0]  ;;  %v4522_v34 = vld [vmem:[%s5682_s11 + $0x7c] sm:$0xf]  ;;  %v4275_v35 = vld [vmem:[%s5682_s11 + $0x84] sm:$0xf0] }
  0xab   : > { %4587 = vmatpush.bf16.msra.mxu3 %v4302_v27  ;;  %1336 = vmatpush.bf16.msra.mxu1 %v4302_v27  ;;  %v4274_v36 = vor.u32 %v4523_v33, %v4273_v32  ;;  %v4278_v37 = vor.u32 %v4522_v34, %v4275_v35  ;;  %v4261_v38 = vld [vmem:[%s5682_s11 + $0x60] sm:$0xf]  ;;  %v4520_v39 = vld [vmem:[%s5682_s11 + $0x68] sm:$0xf0]  ;;  %v4519_v40 = vld [vmem:[%s5682_s11 + $0x64] sm:$0xf] }
  0xac   : > { %v4263_v41 = vld [vmem:[%s5682_s11 + $0x6c] sm:$0xf0]  ;;  %v4262_v42 = vor.u32 %v4520_v39, %v4261_v38  ;;  %v4249_v44 = vld [vmem:[%s5682_s11 + $0x48] sm:$0xf]  ;;  %v4517_v45 = vld [vmem:[%s5682_s11 + $0x50] sm:$0xf0] }
  0xad   : > { %v4266_v43 = vor.u32 %v4519_v40, %v4263_v41  ;;  %v4516_v46 = vld [vmem:[%s5682_s11 + $0x4c] sm:$0xf]  ;;  %v4251_v47 = vld [vmem:[%s5682_s11 + $0x54] sm:$0xf0]  ;;  %v4250_v48 = vor.u32 %v4517_v45, %v4249_v44  ;;  %v4237_v50 = vld [vmem:[%s5682_s11 + $0x30] sm:$0xf] }
  0xae   : > { %1288 = vmatpush.bf16.msra.mxu0 %v4286_v30  ;;  %4580 = vmatpush.bf16.msra.mxu2 %v4286_v30  ;;  %v4254_v49 = vor.u32 %v4516_v46, %v4251_v47  ;;  %v4514_v51 = vld [vmem:[%s5682_s11 + $0x38] sm:$0xf0]  ;;  %v4513_v52 = vld [vmem:[%s5682_s11 + $0x34] sm:$0xf]  ;;  %v4239_v53 = vld [vmem:[%s5682_s11 + $0x3c] sm:$0xf0] }
  0xaf   : > { %4588 = vmatpush.bf16.msra.mxu3 %v4290_v31  ;;  %1337 = vmatpush.bf16.msra.mxu1 %v4290_v31  ;;  %v4238_v54 = vor.u32 %v4514_v51, %v4237_v50  ;;  %v4242_v55 = vor.u32 %v4513_v52, %v4239_v53  ;;  %v4225_v56 = vld [vmem:[%s5682_s11 + $0x18] sm:$0xf]  ;;  %v4511_v57 = vld [vmem:[%s5682_s11 + $0x20] sm:$0xf0]  ;;  %v4510_v58 = vld [vmem:[%s5682_s11 + $0x1c] sm:$0xf] }
  0xb0   : > { %v4227_v59 = vld [vmem:[%s5682_s11 + $0x24] sm:$0xf0]  ;;  %v4226_v60 = vor.u32 %v4511_v57, %v4225_v56  ;;  %v4213_v62 = vld [vmem:[%s5682_s11] sm:$0xf]  ;;  %v4508_v63 = vld [vmem:[%s5682_s11 + $0x8] sm:$0xf0] }
  0xb1   : > { %v4230_v61 = vor.u32 %v4510_v58, %v4227_v59  ;;  %v4507_v0 = vld [vmem:[%s5682_s11 + $0x4] sm:$0xf]  ;;  %v4215_v1 = vld [vmem:[%s5682_s11 + $0xc] sm:$0xf0]  ;;  %v4214_v3 = vor.u32 %v4508_v63, %v4213_v62  ;;  %v1096_v4 = vld [vmem:[#allocation2] sm:$0xff]  ;;  %s7284_s3 = sld [smem:[#allocation49_spill]] }
  0xb2   : > { %1289 = vmatpush.bf16.msra.mxu0 %v4274_v36  ;;  %4581 = vmatpush.bf16.msra.mxu2 %v4274_v36  ;;  %v1095_v2 = vld [vmem:[#allocation2 + $0x30] sm:$0xff]  ;;  %v1106_v6 = vld [vmem:[#allocation2 + $0x38] sm:$0xff]  ;;  %v4218_v7 = vor.u32 %v4507_v0, %v4215_v1  ;;  %v1103_v8 = vld [vmem:[#allocation2 + $0x40] sm:$0xff] }
  0xb3   : > { %4589 = vmatpush.bf16.msra.mxu3 %v4278_v37  ;;  %1338 = vmatpush.bf16.msra.mxu1 %v4278_v37  ;;  %v1105_v5 = vld [vmem:[#allocation2 + $0x10] sm:$0xff]  ;;  %v1104_v9 = vld [vmem:[#allocation2 + $0x20] sm:$0xff]  ;;  %v5813_v10 = vpack.c.bf16 %v1096_v4, %v1095_v2  ;;  %v1097_v13 = vld [vmem:[#allocation2 + $0x58] sm:$0xff] }
  0xb4   : > { %v5815_v11 = vpack.c.bf16 %v1106_v6, %v1105_v5  ;;  %v5817_v12 = vpack.c.bf16 %v1104_v9, %v1103_v8  ;;  %v1098_v14 = vld [vmem:[#allocation2 + $0x18] sm:$0xff]  ;;  %v1107_v15 = vld [vmem:[#allocation2 + $0x60] sm:$0xff]  ;;  %v1108_v16 = vld [vmem:[#allocation2 + $0x70] sm:$0xff] }
  0xb5   : > { %v5823_v17 = vpack.c.bf16 %v1098_v14, %v1097_v13  ;;  %v5825_v18 = vpack.c.bf16 %v1108_v16, %v1107_v15  ;;  %v1099_v19 = vld [vmem:[#allocation2 + $0x50] sm:$0xff]  ;;  %v1100_v20 = vld [vmem:[#allocation2 + $0x68] sm:$0xff]  ;;  %v1109_v21 = vld [vmem:[#allocation2 + $0x78] sm:$0xff] }
  0xb6   : > { %1290 = vmatpush.bf16.msra.mxu0 %v4262_v42  ;;  %4582 = vmatpush.bf16.msra.mxu2 %v4262_v42  ;;  %v1110_v22 = vld [vmem:[#allocation2 + $0x28] sm:$0xff]  ;;  %v5831_v23 = vpack.c.bf16 %v1100_v20, %v1099_v19  ;;  %v4305_v28 = vld [vmem:[%s5682_s11 + $0xb0] sm:$0xf]  ;;  %v4530_v29 = vld [vmem:[%s5682_s11 + $0xb8] sm:$0xf0] }
  0xb7   : > { %4590 = vmatpush.bf16.msra.mxu3 %v4266_v43  ;;  %1339 = vmatpush.bf16.msra.mxu1 %v4266_v43  ;;  %v5833_v24 = vpack.c.bf16 %v1110_v22, %v1109_v21  ;;  %v1101_v25 = vld [vmem:[#allocation2 + $0x8] sm:$0xff]  ;;  %v4306_v30 = vor.u32 %v4530_v29, %v4305_v28  ;;  %v4293_v31 = vld [vmem:[%s5682_s11 + $0x98] sm:$0xf]  ;;  %v4281_v33 = vld [vmem:[%s5682_s11 + $0x80] sm:$0xf]  ;;  %s7285_s2 = scalar_lea.vmem %s7284_s3, %s5714_s25 }
  0xb8   : > { %v1102_v26 = vld [vmem:[#allocation2 + $0x48] sm:$0xff]  ;;  %v4524_v35 = vld [vmem:[%s5682_s11 + $0x88] sm:$0xf0]  ;;  %v4521_v45 = vld [vmem:[%s5682_s11 + $0x70] sm:$0xf0] }
  0xb9   : > { %v5839_v27 = vpack.c.bf16 %v1102_v26, %v1101_v25  ;;  %v4527_v32 = vld [vmem:[%s5682_s11 + $0xa0] sm:$0xf0]  ;;  %v4282_v38 = vor.u32 %v4524_v35, %v4281_v33  ;;  %v4269_v44 = vld [vmem:[%s5682_s11 + $0x68] sm:$0xf]  ;;  %v4257_v46 = vld [vmem:[%s5682_s11 + $0x50] sm:$0xf] }
  0xba   : > { %1291 = vmatpush.bf16.msra.mxu0 %v4250_v48  ;;  %4583 = vmatpush.bf16.msra.mxu2 %v4250_v48  ;;  %v4294_v34 = vor.u32 %v4527_v32, %v4293_v31  ;;  %v5852_v36 = vld [vmem:[%s5688_s4] sm:$0x7]  ;;  %v4270_v47 = vor.u32 %v4521_v45, %v4269_v44  ;;  %v4518_v48 = vld [vmem:[%s5682_s11 + $0x58] sm:$0xf0]  ;;  %v4512_v59 = vld [vmem:[%s5682_s11 + $0x28] sm:$0xf0] }
  0xbb   : > { %4591 = vmatpush.bf16.msra.mxu3 %v4254_v49  ;;  %1340 = vmatpush.bf16.msra.mxu1 %v4254_v49  ;;  %v5855_v37 = vperm.slane %v5852_v36, 0  ;;  %v5858_v40 = vperm.slane %v5852_v36, 1  ;;  %v4258_v50 = vor.u32 %v4518_v48, %v4257_v46  ;;  %v4233_v56 = vld [vmem:[%s5682_s11 + $0x20] sm:$0xf]  ;;  %v4221_v0 = vld [vmem:[%s5682_s11 + $0x8] sm:$0xf] }
  0xbc   : > { %v4509_v1 = vld [vmem:[%s5682_s11 + $0x10] sm:$0xf0] }
  0xbd   : > { %v4222_v2 = vor.u32 %v4509_v1, %v4221_v0 }
  0xbe   : > { %1292 = vmatpush.bf16.msra.mxu0 %v4238_v54  ;;  %4584 = vmatpush.bf16.msra.mxu2 %v4238_v54  ;;  %v4245_v54 = vld [vmem:[%s5682_s11 + $0x38] sm:$0xf] }
  0xbf   : > { %4592 = vmatpush.bf16.msra.mxu3 %v4242_v55  ;;  %1341 = vmatpush.bf16.msra.mxu1 %v4242_v55  ;;  %v4515_v55 = vld [vmem:[%s5682_s11 + $0x40] sm:$0xf0] }
  0xc0   : > { %v4246_v58 = vor.u32 %v4515_v55, %v4245_v54 }
  0xc2   : > { %1293 = vmatpush.bf16.msra.mxu0 %v4226_v60  ;;  %4585 = vmatpush.bf16.msra.mxu2 %v4226_v60  ;;  %v4234_v60 = vor.u32 %v4512_v59, %v4233_v56 }
  0xc3   : > { %4593 = vmatpush.bf16.msra.mxu3 %v4230_v61  ;;  %1342 = vmatpush.bf16.msra.mxu1 %v4230_v61 }
  0xc6   : > { %1294 = vmatpush.bf16.msra.mxu0 %v4214_v3  ;;  %4586 = vmatpush.bf16.msra.mxu2 %v4214_v3 }
  0xc7   : > { %4594 = vmatpush.bf16.msra.mxu3 %v4218_v7  ;;  %1343 = vmatpush.bf16.msra.mxu1 %v4218_v7 }
  0xc9   : > { %1295 = vmatmul.bf16.vlgmr.msra.gmra.mxu0 %v5813_v10  ;;  %1320 = vmatmul.bf16.vlgmr.msra.gmra.mxu2 %v5815_v11 }
  0xca   : > { %1364 = vmatmul.bf16.vlgmr.msra.gmra.mxu3 %v5817_v12  ;;  %1344 = vmatmul.bf16.vlgmr.msra.gmra.mxu1 %v5813_v10 }
  0xcb   : > { %1385 = vmatpush.bf16.msrb.mxu2 %v4306_v30 }
  0xcf   : > { %1386 = vmatpush.bf16.msrb.mxu2 %v4294_v34 }
  0xd3   : > { %1387 = vmatpush.bf16.msrb.mxu2 %v4282_v38 }
  0xd7   : > { %1388 = vmatpush.bf16.msrb.mxu2 %v4270_v47 }
  0xd9   : > { %1300 = vmatmul.bf16.gmra.mxu0 %v5823_v17  ;;  %1325 = vmatmul.bf16.gmra.mxu2 %v5825_v18 }
  0xda   : > { %1369 = vmatmul.bf16.gmra.mxu3 %v5815_v11  ;;  %1349 = vmatmul.bf16.gmra.mxu1 %v5823_v17 }
  0xdb   : > { %1389 = vmatpush.bf16.msrb.mxu2 %v4258_v50 }
  0xdf   : > { %1390 = vmatpush.bf16.msrb.mxu2 %v4246_v58 }
  0xe3   : > { %1391 = vmatpush.bf16.msrb.mxu2 %v4234_v60 }
  0xe7   : > { %1392 = vmatpush.bf16.msrb.mxu2 %v4222_v2 }
  0xe9   : > { %1305 = vmatmul.bf16.gmra.mxu0 %v5831_v23  ;;  %1330 = vmatmul.bf16.gmra.mxu2 %v5833_v24 }
  0xea   : > { %1374 = vmatmul.bf16.gmra.mxu3 %v5825_v18  ;;  %1354 = vmatmul.bf16.gmra.mxu1 %v5831_v23 }
  0xf9   : > { %1310 = vmatmul.bf16.gmra.mxu0 %v5839_v27  ;;  %1393 = vmatmul.bf16.vlgmr.msrb.gmra.mxu2 %v5813_v10 }
  0xfa   : > { %1379 = vmatmul.bf16.gmra.mxu3 %v5833_v24  ;;  %1359 = vmatmul.bf16.gmra.mxu1 %v5839_v27 }
 0x109   : > { %1315 = vmatmul.bf16.gmra.mxu0 %v5817_v12  ;;  %1398 = vmatmul.bf16.gmra.mxu2 %v5823_v17 }
 0x119   : > { %1403 = vmatmul.bf16.gmra.mxu2 %v5831_v23 }
 0x129   : > { %1408 = vmatmul.bf16.gmra.mxu2 %v5839_v27 }
 0x139   : > { %1413 = vmatmul.bf16.gmra.mxu2 %v5817_v12 }
 0x146   : > { %v1296_v39 = vpop.f32.mrf.mxu0 }
 0x147   : > { %v1297_v41 = vadd.f32 %v1296_v39, %v5855_v37  ;;  %v1345_v42 = vpop.f32.mrf.mxu1 }
 0x148   : > { %v1346_v43 = vadd.f32 %v1345_v42, %v5858_v40 }
 0x149   : > { %1418 = vmatmul.bf16.gmra.mxu2 %v5815_v11 }
 0x14a   : > { %v5866_v49 = vpack.c.bf16 %v1346_v43, %v1297_v41 }
 0x14c   : > { %v1321_v57 = vpop.f32.mrf.mxu2  ;;  %v1482_v11 = vrot.slane %v5866_v49, 4 }
 0x14d   : > { %v5868_v51 = vpop.f32.mrf.mxu3  ;;  %v1322_v7 = vadd.f32 %v1321_v57, %v5855_v37 }
 0x14e   : > { %v5870_v52 = vpop.f32.mrf.mxu0 }
 0x14f   : > { %v5872_v53 = vpop.f32.mrf.mxu1 }
 0x154   : > { %v1323_v3 = vpop.f32.mrf.mxu2 }
 0x155   : > { %v5878_v61 = vpop.f32.mrf.mxu3  ;;  %v1324_v14 = vadd.f32 %v1323_v3, %v5855_v37 }
 0x156   : > { %v5880_v62 = vpop.f32.mrf.mxu0 }
 0x157   : > { %v5882_v63 = vpop.f32.mrf.mxu1 }
 0x159   : > { %1423 = vmatmul.bf16.gmra.mxu2 %v5825_v18 }
 0x15c   : > { %v1326_v9 = vpop.f32.mrf.mxu2 }
 0x15d   : > { %v1370_v4 = vpop.f32.mrf.mxu3  ;;  %v1327_v31 = vadd.f32 %v1326_v9, %v5855_v37 }
 0x15e   : > { %v5886_v5 = vpop.f32.mrf.mxu0  ;;  %v1371_v8 = vadd.f32 %v1370_v4, %v5858_v40 }
 0x15f   : > { %v5889_v6 = vpop.f32.mrf.mxu1 }
 0x160   : > { %v5894_v15 = vpack.c.bf16 %v1371_v8, %v1322_v7 }
 0x162   : > { %v1512_v10 = vunpack.c.l.b16 %v5894_v15  ;;  %v1492_v27 = vrot.slane %v5894_v15, 4 }
 0x164   : > { %v1328_v29 = vpop.f32.mrf.mxu2 }
 0x165   : > { %v1372_v13 = vpop.f32.mrf.mxu3  ;;  %v1329_v34 = vadd.f32 %v1328_v29, %v5855_v37 }
 0x166   : > { %v1373_v16 = vadd.f32 %v1372_v13, %v5858_v40  ;;  %v5897_v19 = vpop.f32.mrf.mxu0 }
 0x167   : > { %v5899_v20 = vpop.f32.mrf.mxu1 }
 0x168   : > { %v5901_v21 = vpack.c.bf16 %v1373_v16, %v1324_v14 }
 0x169   : > { %1428 = vmatmul.bf16.gmra.mxu2 %v5833_v24 }
 0x16a   : > { %v1513_v22 = vunpack.c.l.b16 %v5901_v21 }
 0x16c   : > { %v5905_v25 = vpack.c.b16 %v1513_v22, %v1512_v10  ;;  %v1331_v43 = vpop.f32.mrf.mxu2 }
 0x16d   : > { %v1375_v26 = vpop.f32.mrf.mxu3  ;;  %v1332_v57 = vadd.f32 %v1331_v43, %v5855_v37 }
 0x16e   : > { %v5907_v28 = vpop.f32.mrf.mxu0  ;;  %v1376_v32 = vadd.f32 %v1375_v26, %v5858_v40 }
 0x16f   : > { %v5910_v30 = vpop.f32.mrf.mxu1 }
 0x170   : > { %v1458_v35 = vpack.c.bf16 %v1376_v32, %v1327_v31  ;;  %v1358_v15 = vadd.f32 %v5910_v30, %v5858_v40  ;;  %v1353_v30 = vadd.f32 %v5889_v6, %v5858_v40 }
 0x172   : > { %v1514_v45 = vunpack.c.l.b16 %v1458_v35 }
 0x174   : > { %v1333_v1 = vpop.f32.mrf.mxu2 }
 0x175   : > { %v1377_v33 = vpop.f32.mrf.mxu3  ;;  %v1334_v7 = vadd.f32 %v1333_v1, %v5855_v37 }
 0x176   : > { %v1378_v38 = vadd.f32 %v1377_v33, %v5858_v40  ;;  %v1311_v39 = vpop.f32.mrf.mxu0  ;;  %v1366_v33 = vadd.f32 %v5868_v51, %v5858_v40 }
 0x177   : > { %v1360_v41 = vpop.f32.mrf.mxu1  ;;  %v1312_v44 = vadd.f32 %v1311_v39, %v5855_v37 }
 0x178   : > { %v1460_v42 = vpack.c.bf16 %v1378_v38, %v1329_v34  ;;  %v1361_v17 = vadd.f32 %v1360_v41, %v5858_v40  ;;  %v1368_v41 = vadd.f32 %v5878_v61, %v5858_v40  ;;  %v1544_v61 = vunpack.c.l.b16 %v1492_v27 }
 0x17a   : > { %v1515_v46 = vunpack.c.l.b16 %v1460_v42  ;;  %v5920_v50 = vpack.c.bf16 %v1361_v17, %v1312_v44  ;;  %v1495_v39 = vrot.slane %v1460_v42, 4  ;;  %v1494_v17 = vrot.slane %v1458_v35, 4 }
 0x17b   : > { %v1493_v42 = vrot.slane %v5901_v21, 4  ;;  %v1309_v21 = vadd.f32 %v5907_v28, %v5855_v37  ;;  %v1304_v28 = vadd.f32 %v5886_v5, %v5855_v37 }
 0x17c   : > { %v5918_v47 = vpack.c.b16 %v1515_v46, %v1514_v45  ;;  %v1508_v0 = vunpack.c.l.b16 %v5920_v50  ;;  %v1547_v46 = vunpack.c.l.b16 %v1495_v39 }
 0x17d   : > { %v1380_v48 = vpop.f32.mrf.mxu3 }
 0x17e   : > { %v1313_v54 = vpop.f32.mrf.mxu0  ;;  %v1381_v58 = vadd.f32 %v1380_v48, %v5858_v40 }
 0x17f   : > { %v1314_v55 = vadd.f32 %v1313_v54, %v5855_v37  ;;  %v1362_v56 = vpop.f32.mrf.mxu1 }
 0x180   : > { %v1363_v59 = vadd.f32 %v1362_v56, %v5858_v40  ;;  %v1462_v2 = vpack.c.bf16 %v1381_v58, %v1332_v57  ;;  %v1545_v57 = vunpack.c.l.b16 %v1493_v42 }
 0x182   : > { %v1448_v60 = vpack.c.bf16 %v1363_v59, %v1314_v55  ;;  %v1496_v14 = vrot.slane %v1462_v2, 4  ;;  %v1516_v10 = vunpack.c.l.b16 %v1462_v2  ;;  %v1546_v55 = vunpack.c.l.b16 %v1494_v17 }
 0x183   : > { %v1555_v58 = vpack.c.b16 %v1545_v57, %v1544_v61  ;;  %v1307_v2 = vadd.f32 %v5897_v19, %v5855_v37  ;;  %v1302_v19 = vadd.f32 %v5880_v62, %v5855_v37  ;;  %v1299_v62 = vadd.f32 %v5870_v52, %v5855_v37 }
 0x184   : > { %v1509_v3 = vunpack.c.l.b16 %v1448_v60  ;;  %v1548_v29 = vunpack.c.l.b16 %v1496_v14  ;;  %v1556_v51 = vpack.c.b16 %v1547_v46, %v1546_v55  ;;  %v1489_v12 = vrot.slane %v1448_v60, 4 }
 0x185   : > { %v1382_v4 = vpop.f32.mrf.mxu3 }
 0x186   : > { %v1383_v23 = vadd.f32 %v1382_v4, %v5858_v40  ;;  %v1316_v8 = vpop.f32.mrf.mxu0  ;;  %v5930_v9 = vpack.c.b16 %v1509_v3, %v1508_v0  ;;  %v1356_v3 = vadd.f32 %v5899_v20, %v5858_v40  ;;  %v1541_v14 = vunpack.c.l.b16 %v1489_v12 }
 0x187   : > { %v1317_v26 = vadd.f32 %v1316_v8, %v5855_v37  ;;  %v1444_v8 = vpack.c.bf16 %v1358_v15, %v1309_v21  ;;  %v1351_v20 = vadd.f32 %v5882_v63, %v5858_v40  ;;  %v1348_v63 = vadd.f32 %v5872_v53, %v5858_v40 }
 0x188   : > { %v1464_v13 = vpack.c.bf16 %v1383_v23, %v1334_v7  ;;  %v1488_v7 = vrot.slane %v5920_v50, 4  ;;  %v1442_v23 = vpack.c.bf16 %v1356_v3, %v1307_v2  ;;  %v1502_v40 = vunpack.c.l.b16 %v5866_v49  ;;  %v5985_v3 = vld [vmem:[#allocation3] ss:$0 sm:$0xff] }
 0x189   : > { %v1450_v43 = vpack.c.bf16 %v1366_v33, %v1317_v26  ;;  %v1487_v60 = vrot.slane %v1444_v8, 4  ;;  %v1436_v6 = vpack.c.bf16 %v1348_v63, %v1299_v62  ;;  %v1507_v18 = vunpack.c.l.b16 %v1444_v8 }
 0x18a   : > { %v1497_v16 = vrot.slane %v1464_v13, 4  ;;  %v1517_v22 = vunpack.c.l.b16 %v1464_v13  ;;  %v1540_v13 = vunpack.c.l.b16 %v1488_v7  ;;  %v1486_v50 = vrot.slane %v1442_v23, 4 }
 0x18b   : > { %v1510_v48 = vunpack.c.l.b16 %v1450_v43  ;;  %v1490_v35 = vrot.slane %v1450_v43, 4  ;;  %v1534_v43 = vunpack.c.l.b16 %v1482_v11  ;;  %v1503_v52 = vunpack.c.l.b16 %v1436_v6 }
 0x18c   : > { %v1549_v31 = vunpack.c.l.b16 %v1497_v16  ;;  %v5933_v32 = vpack.c.b16 %v1517_v22, %v1516_v10  ;;  %v1553_v16 = vpack.c.b16 %v1541_v14, %v1540_v13  ;;  %v1438_v10 = vpack.c.bf16 %v1351_v20, %v1302_v19 }
 0x18d   : > { %v1542_v1 = vunpack.c.l.b16 %v1490_v35  ;;  %v1440_v22 = vpack.c.bf16 %v1353_v30, %v1304_v28  ;;  %v1538_v26 = vunpack.c.l.b16 %v1486_v50  ;;  %v1518_v53 = vpack.c.b16 %v1503_v52, %v1502_v40 }
 0x18e   : > { %v1318_v34 = vpop.f32.mrf.mxu0  ;;  %v1557_v38 = vpack.c.b16 %v1549_v31, %v1548_v29  ;;  %v1539_v29 = vunpack.c.l.b16 %v1487_v60  ;;  %v1484_v31 = vrot.slane %v1438_v10, 4  ;;  %v1504_v17 = vunpack.c.l.b16 %v1438_v10 }
 0x18f   : > { %v1319_v44 = vadd.f32 %v1318_v34, %v5855_v37  ;;  %v1485_v33 = vrot.slane %v1440_v22, 4 }
 0x190   : > { %1566 = vmatpush.bf16.xpose.msrb.mxu3 %v1557_v38  ;;  %v1552_v5 = vpack.c.b16 %v1539_v29, %v1538_v26  ;;  %v1536_v34 = vunpack.c.l.b16 %v1484_v31 }
 0x191   : > { %v1452_v45 = vpack.c.bf16 %v1368_v41, %v1319_v44  ;;  %v1537_v38 = vunpack.c.l.b16 %v1485_v33  ;;  %v1483_v41 = vrot.slane %v1436_v6, 4 }
 0x193   : > { %v1511_v54 = vunpack.c.l.b16 %v1452_v45  ;;  %v1491_v59 = vrot.slane %v1452_v45, 4  ;;  %v1551_v39 = vpack.c.b16 %v1537_v38, %v1536_v34  ;;  %v1535_v44 = vunpack.c.l.b16 %v1483_v41 }
 0x194   : > { %v1505_v45 = vunpack.c.l.b16 %v1440_v22 }
 0x195   : > { %v5941_v56 = vpack.c.b16 %v1511_v54, %v1510_v48  ;;  %v1543_v0 = vunpack.c.l.b16 %v1491_v59  ;;  %v1550_v37 = vpack.c.b16 %v1535_v44, %v1534_v43  ;;  %v5972_v48 = vpop.f32.mrf.mxu2  ;;  %v1506_v54 = vunpack.c.l.b16 %v1442_v23 }
 0x196   : > { %v1519_v46 = vpack.c.b16 %v1505_v45, %v1504_v17 }
 0x197   : > { %v1554_v4 = vpack.c.b16 %v1543_v0, %v1542_v1 }
 0x198   : > { %1567 = vmatpush.bf16.xpose.msrb.mxu3 %v1556_v51  ;;  %v1520_v51 = vpack.c.b16 %v1507_v18, %v1506_v54 }
 0x19d   : > { %v5974_v55 = vpop.f32.mrf.mxu2 }
 0x1a0   : > { %1568 = vmatpush.bf16.xpose.msrb.mxu3 %v1555_v58 }
 0x1a5   : > { %v5976_v42 = vpop.f32.mrf.mxu2 }
 0x1a8   : > { %1569 = vmatpush.bf16.xpose.msrb.mxu3 %v1554_v4 }
 0x1ad   : > { %v5978_v49 = vpop.f32.mrf.mxu2 }
 0x1b0   : > { %1570 = vmatpush.bf16.xpose.msrb.mxu3 %v1553_v16 }
 0x1b5   : > { %v1404_v24 = vpop.f32.mrf.mxu2 }
 0x1b8   : > { %1571 = vmatpush.bf16.xpose.msrb.mxu3 %v1552_v5 }
 0x1bd   : > { %v1406_v27 = vpop.f32.mrf.mxu2 }
 0x1c0   : > { %1572 = vmatpush.bf16.xpose.msrb.mxu3 %v1551_v39 }
 0x1c5   : > { %v1409_v57 = vpop.f32.mrf.mxu2 }
 0x1c8   : > { %1573 = vmatpush.bf16.xpose.msrb.mxu3 %v1550_v37 }
 0x1cd   : > { %v1411_v61 = vpop.f32.mrf.mxu2 }
 0x1cf   : > { %1574 = vmatmul.bf16.vlgmr.msrb.gmra.mxu3 %v1518_v53 }
 0x1d5   : > { %v1414_v58 = vpop.f32.mrf.mxu2 }
 0x1dd   : > { %v1416_v59 = vpop.f32.mrf.mxu2 }
 0x1df   : > { %1579 = vmatmul.bf16.gmra.mxu3 %v1519_v46 }
 0x1e5   : > { %v1419_v35 = vpop.f32.mrf.mxu2 }
 0x1ed   : > { %v1421_v0 = vpop.f32.mrf.mxu2 }
 0x1ef   : > { %1584 = vmatmul.bf16.gmra.mxu3 %v1520_v51 }
 0x1f5   : > { %v1424_v1 = vpop.f32.mrf.mxu2 }
 0x1fd   : > { %v1426_v2 = vpop.f32.mrf.mxu2 }
 0x1ff   : > { %1589 = vmatmul.bf16.gmra.mxu3 %v5930_v9  ;;  %v1155_v9 = vperm.slane %v5852_v36, 2 }
 0x201   : > { %v1425_v4 = vadd.f32 %v1424_v1, %v1155_v9  ;;  %v1420_v12 = vadd.f32 %v1419_v35, %v1155_v9  ;;  %v1415_v30 = vadd.f32 %v1414_v58, %v1155_v9  ;;  %v1417_v16 = vadd.f32 %v1416_v59, %v1155_v9 }
 0x202   : > { %v1410_v62 = vadd.f32 %v1409_v57, %v1155_v9  ;;  %v1412_v63 = vadd.f32 %v1411_v61, %v1155_v9  ;;  %v1405_v11 = vadd.f32 %v1404_v24, %v1155_v9  ;;  %v1407_v41 = vadd.f32 %v1406_v27, %v1155_v9 }
 0x203   : > { %v1459_v13 = vpack.c.bf16 %v1425_v4, %v1425_v4  ;;  %v1455_v50 = vpack.c.bf16 %v1420_v12, %v1420_v12  ;;  %v1451_v5 = vpack.c.bf16 %v1415_v30, %v1415_v30  ;;  %v1453_v31 = vpack.c.bf16 %v1417_v16, %v1417_v16 }
 0x204   : > { %v1447_v43 = vpack.c.bf16 %v1410_v62, %v1410_v62  ;;  %v1449_v44 = vpack.c.bf16 %v1412_v63, %v1412_v63  ;;  %v1400_v53 = vadd.f32 %v5976_v42, %v1155_v9  ;;  %v1402_v17 = vadd.f32 %v5978_v49, %v1155_v9 }
 0x205   : > { %v1429_v21 = vpop.f32.mrf.mxu2  ;;  %v1851_v10 = vunpack.c.l.b16 %v1459_v13  ;;  %v1849_v33 = vunpack.c.l.b16 %v1455_v50  ;;  %v1847_v37 = vunpack.c.l.b16 %v1451_v5  ;;  %v1848_v40 = vunpack.c.l.b16 %v1453_v31 }
 0x206   : > { %v1443_v45 = vpack.c.bf16 %v1405_v11, %v1405_v11  ;;  %v1445_v46 = vpack.c.bf16 %v1407_v41, %v1407_v41  ;;  %v1845_v54 = vunpack.c.l.b16 %v1447_v43  ;;  %v1846_v18 = vunpack.c.l.b16 %v1449_v44 }
 0x207   : > { %v1859_v24 = vpack.c.b16 %v1848_v40, %v1847_v37  ;;  %v1395_v57 = vadd.f32 %v5972_v48, %v1155_v9  ;;  %v1397_v61 = vadd.f32 %v5974_v55, %v1155_v9  ;;  %v1439_v58 = vpack.c.bf16 %v1400_v53, %v1400_v53 }
 0x208   : > { %v1441_v42 = vpack.c.bf16 %v1402_v17, %v1402_v17  ;;  %v1843_v59 = vunpack.c.l.b16 %v1443_v45  ;;  %v1844_v49 = vunpack.c.l.b16 %v1445_v46  ;;  %v1858_v35 = vpack.c.b16 %v1846_v18, %v1845_v54 }
 0x209   : > { %v1437_v1 = vpack.c.bf16 %v1397_v61, %v1397_v61 }
 0x20b   : > { %v1840_v55 = vunpack.c.l.b16 %v1437_v1 }
 0x20d   : > { %v1431_v23 = vpop.f32.mrf.mxu2 }
 0x20e   : > { %v1432_v19 = vadd.f32 %v1431_v23, %v1155_v9 }
 0x20f   : > { %1594 = vmatmul.bf16.gmra.mxu3 %v5941_v56 }
 0x210   : > { %v1465_v28 = vpack.c.bf16 %v1432_v19, %v1432_v19 }
 0x212   : > { %v1854_v26 = vunpack.c.l.b16 %v1465_v28 }
 0x21f   : > { %1599 = vmatmul.bf16.gmra.mxu3 %v5905_v25  ;;  %v1430_v25 = vadd.f32 %v1429_v21, %v1155_v9  ;;  %v1842_v21 = vunpack.c.l.b16 %v1441_v42 }
 0x221   : > { %v1463_v7 = vpack.c.bf16 %v1430_v25, %v1430_v25  ;;  %v1857_v25 = vpack.c.b16 %v1844_v49, %v1843_v59 }
 0x223   : > { %v1853_v20 = vunpack.c.l.b16 %v1463_v7 }
 0x225   : > { %v1862_v29 = vpack.c.b16 %v1854_v26, %v1853_v20 }
 0x227   : > { %1871 = vmatpush.bf16.msrb.mxu0 %v1862_v29 }
 0x22f   : > { %1604 = vmatmul.bf16.gmra.mxu3 %v5918_v47  ;;  %v1427_v47 = vadd.f32 %v1426_v2, %v1155_v9  ;;  %v1841_v2 = vunpack.c.l.b16 %v1439_v58 }
 0x231   : > { %v1461_v14 = vpack.c.bf16 %v1427_v47, %v1427_v47 }
 0x233   : > { %v1852_v22 = vunpack.c.l.b16 %v1461_v14 }
 0x235   : > { %v1861_v38 = vpack.c.b16 %v1852_v22, %v1851_v10 }
 0x237   : > { %1872 = vmatpush.bf16.msrb.mxu0 %v1861_v38 }
 0x23f   : > { %1609 = vmatmul.bf16.gmra.mxu3 %v5933_v32  ;;  %v1422_v32 = vadd.f32 %v1421_v0, %v1155_v9  ;;  %v1435_v0 = vpack.c.bf16 %v1395_v57, %v1395_v57  ;;  %v1856_v9 = vpack.c.b16 %v1842_v21, %v1841_v2 }
 0x241   : > { %v1457_v60 = vpack.c.bf16 %v1422_v32, %v1422_v32  ;;  %v1839_v48 = vunpack.c.l.b16 %v1435_v0 }
 0x243   : > { %v1850_v6 = vunpack.c.l.b16 %v1457_v60  ;;  %v1855_v7 = vpack.c.b16 %v1840_v55, %v1839_v48 }
 0x245   : > { %v1860_v52 = vpack.c.b16 %v1850_v6, %v1849_v33 }
 0x247   : > { %1873 = vmatpush.bf16.msrb.mxu0 %v1860_v52 }
 0x24b   : > { %1874 = vmatpush.bf16.msrb.mxu0 %v1859_v24 }
 0x24f   : > { %1875 = vmatpush.bf16.msrb.mxu0 %v1858_v35 }
 0x252   : > { %v1575_v56 = vpop.f32.mrf.mxu3 }
 0x253   : > { %v5989_v15 = vadd.f32 %v5985_v3, %v1575_v56  ;;  %1876 = vmatpush.bf16.msrb.mxu0 %v1857_v25 }
 0x255   : > { %1615 = vmax.xlane.f32.xlu0 %v5989_v15 }
 0x257   : > { %1877 = vmatpush.bf16.msrb.mxu0 %v1856_v9 }
 0x25a   : > { %v1577_v8 = vpop.f32.mrf.mxu3 }
 0x25b   : > { %v5993_v36 = vadd.f32 %v5985_v3, %v1577_v8  ;;  %1878 = vmatpush.bf16.msrb.mxu0 %v1855_v7 }
 0x25d   : > { %1617 = vmax.xlane.f32.xlu0 %v5993_v36 }
 0x262   : > { %v1580_v34 = vpop.f32.mrf.mxu3 }
 0x263   : > { %v5997_v39 = vadd.f32 %v5985_v3, %v1580_v34 }
 0x265   : > { %1619 = vmax.xlane.f32.xlu1 %v5997_v39 }
 0x26a   : > { %v1582_v51 = vpop.f32.mrf.mxu3 }
 0x26b   : > { %v6003_v27 = vadd.f32 %v5985_v3, %v1582_v51 }
 0x26d   : > { %1621 = vmax.xlane.f32.xlu1 %v6003_v27 }
 0x272   : > { %v1585_v56 = vpop.f32.mrf.mxu3 }
 0x273   : > { %v1586_v4 = vadd.f32 %v5985_v3, %v1585_v56 }
 0x275   : > { %1623 = vmax.xlane.f32.xlu2 %v1586_v4 }
 0x27a   : > { %v1587_v47 = vpop.f32.mrf.mxu3 }
 0x27b   : > { %v1588_v12 = vadd.f32 %v5985_v3, %v1587_v47 }
 0x27d   : > { %1625 = vmax.xlane.f32.xlu2 %v1588_v12 }
 0x282   : > { %v1590_v23 = vpop.f32.mrf.mxu3 }
 0x283   : > { %v1591_v32 = vadd.f32 %v5985_v3, %v1590_v23 }
 0x285   : > { %1627 = vmax.xlane.f32.xlu0 %v1591_v32 }
 0x28a   : > { %v1592_v8 = vpop.f32.mrf.mxu3 }
 0x28b   : > { %v6012_v13 = vadd.f32 %v5985_v3, %v1592_v8 }
 0x28d   : > { %1629 = vmax.xlane.f32.xlu1 %v6012_v13 }
 0x292   : > { %v1595_v14 = vpop.f32.mrf.mxu3 }
 0x293   : > { %v6016_v19 = vadd.f32 %v5985_v3, %v1595_v14 }
 0x295   : > { %1631 = vmax.xlane.f32.xlu1 %v6016_v19 }
 0x29a   : > { %v1597_v30 = vpop.f32.mrf.mxu3 }
 0x29b   : > { %v6026_v63 = vadd.f32 %v5985_v3, %v1597_v30 }
 0x2a2   : > { %v1600_v26 = vpop.f32.mrf.mxu3 }
 0x2a3   : > { %v6034_v6 = vadd.f32 %v5985_v3, %v1600_v26 }
 0x2c8   : > { %v1616_v20 = vpop.xlane.xlu0 %1615 }
 0x2c9   : > { %v1647_v28 = vsub.f32 %v5989_v15, %v1616_v20 }
 0x2cb   : > { %v1663_v16 = vmul.f32 1.442695, %v1647_v28 }
 0x2cd   : > { %4762 = vpow2.f32 %v1663_v16 }
 0x2d0   : > { %v1618_v50 = vpop.xlane.xlu0 %1617 }
 0x2d1   : > { %v1648_v60 = vsub.f32 %v5993_v36, %v1618_v50  ;;  %v1602_v36 = vpop.f32.mrf.mxu3 }
 0x2d2   : > { %v6041_v43 = vadd.f32 %v5985_v3, %v1602_v36 }
 0x2d3   : > { %v6021_v10 = vpop.eup %4762  ;;  %v1665_v22 = vmul.f32 1.442695, %v1648_v60 }
 0x2d4   : > { %1695 = vadd.xlane.f32.xlu2 %v6021_v10 }
 0x2d5   : > { %4764 = vpow2.f32 %v1665_v22 }
 0x2d8   : > { %v1620_v29 = vpop.xlane.xlu1 %1619 }
 0x2d9   : > { %v1649_v62 = vsub.f32 %v5997_v39, %v1620_v29  ;;  %v1605_v11 = vpop.f32.mrf.mxu3 }
 0x2da   : > { %v6048_v53 = vadd.f32 %v5985_v3, %v1605_v11 }
 0x2db   : > { %v6028_v15 = vpop.eup %4764  ;;  %v1667_v5 = vmul.f32 1.442695, %v1649_v62 }
 0x2dc   : > { %1633 = vmax.xlane.f32.xlu2 %v6026_v63  ;;  %1697 = vadd.xlane.f32.xlu0 %v6028_v15 }
 0x2dd   : > { %4766 = vpow2.f32 %v1667_v5 }
 0x2e0   : > { %v1622_v31 = vpop.xlane.xlu1 %1621 }
 0x2e1   : > { %v1650_v33 = vsub.f32 %v6003_v27, %v1622_v31  ;;  %v1607_v45 = vpop.f32.mrf.mxu3 }
 0x2e2   : > { %v6055_v51 = vadd.f32 %v5985_v3, %v1607_v45  ;;  %v4537_v45 = vld [vmem:[%s5690_s9 + $0x30] sm:$0xff] }
 0x2e3   : > { %v6036_v34 = vpop.eup %4766  ;;  %v1669_v38 = vmul.f32 1.442695, %v1650_v33 }
 0x2e4   : > { %1635 = vmax.xlane.f32.xlu2 %v6034_v6  ;;  %1699 = vadd.xlane.f32.xlu0 %v6036_v34 }
 0x2e5   : > { %4768 = vpow2.f32 %v1669_v38 }
 0x2e8   : > { %v1624_v39 = vpop.xlane.xlu2 %1623 }
 0x2e9   : > { %v1651_v41 = vsub.f32 %v1586_v4, %v1624_v39  ;;  %v1610_v57 = vpop.f32.mrf.mxu3 }
 0x2ea   : > { %v6063_v42 = vadd.f32 %v5985_v3, %v1610_v57 }
 0x2eb   : > { %v6043_v44 = vpop.eup %4768  ;;  %v1671_v37 = vmul.f32 1.442695, %v1651_v41 }
 0x2ec   : > { %1701 = vadd.xlane.f32.xlu1 %v6043_v44  ;;  %1637 = vmax.xlane.f32.xlu0 %v6041_v43 }
 0x2ed   : > { %4770 = vpow2.f32 %v1671_v37 }
 0x2f0   : > { %v1626_v40 = vpop.xlane.xlu2 %1625 }
 0x2f1   : > { %v1652_v52 = vsub.f32 %v1588_v12, %v1626_v40  ;;  %v1612_v35 = vpop.f32.mrf.mxu3 }
 0x2f2   : > { %v6071_v2 = vadd.f32 %v5985_v3, %v1612_v35 }
 0x2f3   : > { %v6050_v17 = vpop.eup %4770  ;;  %v1673_v46 = vmul.f32 1.442695, %v1652_v52 }
 0x2f4   : > { %1703 = vadd.xlane.f32.xlu1 %v6050_v17  ;;  %1639 = vmax.xlane.f32.xlu0 %v6048_v53 }
 0x2f5   : > { %4772 = vpow2.f32 %v1673_v46 }
 0x2f8   : > { %v1628_v54 = vpop.xlane.xlu0 %1627 }
 0x2f9   : > { %v1653_v18 = vsub.f32 %v1591_v32, %v1628_v54 }
 0x2fb   : > { %v6057_v24 = vpop.eup %4772  ;;  %v1675_v27 = vmul.f32 1.442695, %v1653_v18 }
 0x2fc   : > { %1641 = vmax.xlane.f32.xlu1 %v6055_v51  ;;  %1705 = vadd.xlane.f32.xlu2 %v6057_v24 }
 0x2fd   : > { %4774 = vpow2.f32 %v1675_v27  ;;  %v4536_v27 = vld [vmem:[%s5690_s9 + $0x28] sm:$0xff] }
 0x300   : > { %v1630_v61 = vpop.xlane.xlu1 %1629 }
 0x301   : > { %v1654_v58 = vsub.f32 %v6012_v13, %v1630_v61 }
 0x303   : > { %v6065_v59 = vpop.eup %4774  ;;  %v1677_v49 = vmul.f32 1.442695, %v1654_v58 }
 0x304   : > { %1643 = vmax.xlane.f32.xlu1 %v6063_v42  ;;  %1707 = vadd.xlane.f32.xlu2 %v6065_v59 }
 0x305   : > { %4776 = vpow2.f32 %v1677_v49 }
 0x308   : > { %v1632_v0 = vpop.xlane.xlu1 %1631 }
 0x309   : > { %v1655_v1 = vsub.f32 %v6016_v19, %v1632_v0 }
 0x30b   : > { %v6073_v21 = vpop.eup %4776  ;;  %v1679_v56 = vmul.f32 1.442695, %v1655_v1  ;;  %v4535_v1 = vld [vmem:[%s5690_s9 + $0x20] sm:$0xff] }
 0x30c   : > { %1709 = vadd.xlane.f32.xlu0 %v6073_v21  ;;  %1645 = vmax.xlane.f32.xlu2 %v6071_v2 }
 0x30d   : > { %4778 = vpow2.f32 %v1679_v56 }
 0x313   : > { %v6077_v25 = vpop.eup %4778 }
 0x314   : > { %1711 = vadd.xlane.f32.xlu0 %v6077_v25 }
 0x347   : > { %v1696_v4 = vpop.xlane.xlu2 %1695 }
 0x348   : > { %4780 = vrcp.f32 %v1696_v4 }
 0x34e   : > { %v4781_v9 = vpop.eup %4780 }
 0x34f   : > { %v1634_v48 = vpop.xlane.xlu2 %1633  ;;  %v1698_v55 = vpop.xlane.xlu0 %1697  ;;  %v1743_v7 = vmul.f32 %v4781_v9, %v6021_v10  ;;  %v4534_v9 = vld [vmem:[%s5690_s9 + $0x18] sm:$0xff] }
 0x350   : > { %v1656_v3 = vsub.f32 %v6026_v63, %v1634_v48  ;;  %4782 = vrcp.f32 %v1698_v55 }
 0x351   : > { %v1759_v13 = vpack.c.bf16 %v1743_v7, %v1743_v7 }
 0x352   : > { %v1681_v47 = vmul.f32 1.442695, %v1656_v3 }
 0x353   : > { %v1791_v30 = vunpack.c.l.b16 %v1759_v13 }
 0x354   : > { %4784 = vpow2.f32 %v1681_v47 }
 0x356   : > { %v4783_v12 = vpop.eup %4782 }
 0x357   : > { %v1636_v23 = vpop.xlane.xlu2 %1635  ;;  %v1700_v32 = vpop.xlane.xlu0 %1699  ;;  %v1744_v8 = vmul.f32 %v4783_v12, %v6028_v15 }
 0x358   : > { %v1657_v14 = vsub.f32 %v6034_v6, %v1636_v23  ;;  %4786 = vrcp.f32 %v1700_v32 }
 0x359   : > { %v1760_v19 = vpack.c.bf16 %v1744_v8, %v1744_v8 }
 0x35a   : > { %v6084_v20 = vpop.eup %4784  ;;  %v1683_v28 = vmul.f32 1.442695, %v1657_v14 }
 0x35b   : > { %1713 = vadd.xlane.f32.xlu1 %v6084_v20  ;;  %v1792_v16 = vunpack.c.l.b16 %v1760_v19 }
 0x35c   : > { %4788 = vpow2.f32 %v1683_v28 }
 0x35d   : > { %v1807_v50 = vpack.c.b16 %v1792_v16, %v1791_v30  ;;  %v4533_v16 = vld [vmem:[%s5690_s9 + $0x10] sm:$0xff] }
 0x35e   : > { %v4787_v22 = vpop.eup %4786 }
 0x35f   : > { %v1702_v60 = vpop.xlane.xlu1 %1701  ;;  %1879 = vmatmul.bf16.vlgmr.msrb.gmra.mxu0 %v1807_v50  ;;  %v1638_v10 = vpop.xlane.xlu0 %1637  ;;  %v1745_v63 = vmul.f32 %v4787_v22, %v6036_v34  ;;  %v4532_v50 = vld [vmem:[%s5690_s9 + $0x8] sm:$0xff] }
 0x360   : > { %4790 = vrcp.f32 %v1702_v60  ;;  %v1658_v26 = vsub.f32 %v6041_v43, %v1638_v10 }
 0x361   : > { %v1761_v33 = vpack.c.bf16 %v1745_v63, %v1745_v63 }
 0x362   : > { %v6088_v29 = vpop.eup %4788  ;;  %v1685_v62 = vmul.f32 1.442695, %v1658_v26 }
 0x363   : > { %1715 = vadd.xlane.f32.xlu2 %v6088_v29  ;;  %v1793_v41 = vunpack.c.l.b16 %v1761_v33 }
 0x364   : > { %4792 = vpow2.f32 %v1685_v62 }
 0x366   : > { %v4791_v15 = vpop.eup %4790 }
 0x367   : > { %v1704_v5 = vpop.xlane.xlu1 %1703  ;;  %v1640_v36 = vpop.xlane.xlu0 %1639  ;;  %v1746_v31 = vmul.f32 %v4791_v15, %v6043_v44  ;;  %v4538_v44 = vld [vmem:[%s5690_s9 + $0x38] sm:$0xff] }
 0x368   : > { %v1659_v6 = vsub.f32 %v6048_v53, %v1640_v36  ;;  %4794 = vrcp.f32 %v1704_v5  ;;  %1996 = vmatpush.bf16.msrb.mxu1 %v4538_v44 }
 0x369   : > { %v1762_v38 = vpack.c.bf16 %v1746_v31, %v1746_v31 }
 0x36a   : > { %v6094_v39 = vpop.eup %4792  ;;  %v1687_v11 = vmul.f32 1.442695, %v1659_v6 }
 0x36b   : > { %1717 = vadd.xlane.f32.xlu0 %v6094_v39  ;;  %v1794_v34 = vunpack.c.l.b16 %v1762_v38 }
 0x36c   : > { %4796 = vpow2.f32 %v1687_v11  ;;  %1997 = vmatpush.bf16.msrb.mxu1 %v4537_v45 }
 0x36d   : > { %v1808_v43 = vpack.c.b16 %v1794_v34, %v1793_v41 }
 0x36e   : > { %v4795_v52 = vpop.eup %4794 }
 0x36f   : > { %v1642_v37 = vpop.xlane.xlu1 %1641  ;;  %v1706_v40 = vpop.xlane.xlu2 %1705  ;;  %1884 = vmatmul.bf16.gmra.mxu0 %v1808_v43  ;;  %v1747_v18 = vmul.f32 %v4795_v52, %v6050_v17 }
 0x370   : > { %v1660_v53 = vsub.f32 %v6055_v51, %v1642_v37  ;;  %4798 = vrcp.f32 %v1706_v40  ;;  %1998 = vmatpush.bf16.msrb.mxu1 %v4536_v27 }
 0x371   : > { %v1763_v49 = vpack.c.bf16 %v1747_v18, %v1747_v18 }
 0x372   : > { %v6100_v46 = vpop.eup %4796  ;;  %v1689_v54 = vmul.f32 1.442695, %v1660_v53 }
 0x373   : > { %1719 = vadd.xlane.f32.xlu1 %v6100_v46  ;;  %v1795_v17 = vunpack.c.l.b16 %v1763_v49 }
 0x374   : > { %4800 = vpow2.f32 %v1689_v54  ;;  %1999 = vmatpush.bf16.msrb.mxu1 %v4535_v1 }
 0x376   : > { %v4799_v57 = vpop.eup %4798 }
 0x377   : > { %v1644_v61 = vpop.xlane.xlu1 %1643  ;;  %v1708_v58 = vpop.xlane.xlu2 %1707  ;;  %v1748_v51 = vmul.f32 %v4799_v57, %v6057_v24 }
 0x378   : > { %v1661_v35 = vsub.f32 %v6063_v42, %v1644_v61  ;;  %4802 = vrcp.f32 %v1708_v58  ;;  %2000 = vmatpush.bf16.msrb.mxu1 %v4534_v9 }
 0x379   : > { %v1764_v0 = vpack.c.bf16 %v1748_v51, %v1748_v51 }
 0x37a   : > { %v6108_v56 = vpop.eup %4800  ;;  %v1691_v4 = vmul.f32 1.442695, %v1661_v35 }
 0x37b   : > { %1721 = vadd.xlane.f32.xlu2 %v6108_v56  ;;  %v1796_v48 = vunpack.c.l.b16 %v1764_v0 }
 0x37c   : > { %4804 = vpow2.f32 %v1691_v4  ;;  %2001 = vmatpush.bf16.msrb.mxu1 %v4533_v16 }
 0x37d   : > { %v1809_v55 = vpack.c.b16 %v1796_v48, %v1795_v17 }
 0x37e   : > { %v4803_v47 = vpop.eup %4802 }
 0x37f   : > { %v1646_v3 = vpop.xlane.xlu2 %1645  ;;  %1889 = vmatmul.bf16.gmra.mxu0 %v1809_v55  ;;  %v1710_v24 = vpop.xlane.xlu0 %1709  ;;  %v1749_v23 = vmul.f32 %v4803_v47, %v6065_v59  ;;  %v4531_v59 = vld [vmem:[%s5690_s9] sm:$0xff]  ;;  %s7282_s9 = sld [smem:[#allocation48_spill]] }
 0x380   : > { %v1662_v42 = vsub.f32 %v6071_v2, %v1646_v3  ;;  %4806 = vrcp.f32 %v1710_v24  ;;  %2002 = vmatpush.bf16.msrb.mxu1 %v4532_v50  ;;  %v4956_v50 = vld [vmem:[#allocation2 + $0x30] sm:$0xff] }
 0x381   : > { %v1765_v13 = vpack.c.bf16 %v1749_v23, %v1749_v23 }
 0x382   : > { %v6113_v7 = vpop.eup %4804  ;;  %v1693_v12 = vmul.f32 1.442695, %v1662_v42 }
 0x383   : > { %1723 = vadd.xlane.f32.xlu0 %v6113_v7  ;;  %v1797_v2 = vunpack.c.l.b16 %v1765_v13 }
 0x384   : > { %4808 = vpow2.f32 %v1693_v12  ;;  %2003 = vmatpush.bf16.msrb.mxu1 %v4531_v59 }
 0x385   : > { %s7283_s16 = scalar_lea.vmem %s7282_s9, %s5714_s25 }
 0x386   : > { %v4807_v32 = vpop.eup %4806 }
 0x387   : > { %v1750_v8 = vmul.f32 %v4807_v32, %v6073_v21  ;;  %v1712_v60 = vpop.xlane.xlu0 %1711 }
 0x388   : > { %4810 = vrcp.f32 %v1712_v60 }
 0x389   : > { %v1766_v14 = vpack.c.bf16 %v1750_v8, %v1750_v8 }
 0x38a   : > { %v6118_v19 = vpop.eup %4808 }
 0x38b   : > { %1725 = vadd.xlane.f32.xlu1 %v6118_v19  ;;  %v1798_v28 = vunpack.c.l.b16 %v1766_v14 }
 0x38d   : > { %v1810_v30 = vpack.c.b16 %v1798_v28, %v1797_v2 }
 0x38e   : > { %v4811_v21 = vpop.eup %4810 }
 0x38f   : > { %1894 = vmatmul.bf16.gmra.mxu0 %v1810_v30  ;;  %v1751_v22 = vmul.f32 %v4811_v21, %v6077_v25 }
 0x391   : > { %v1767_v15 = vpack.c.bf16 %v1751_v22, %v1751_v22  ;;  %v4957_v22 = vld [vmem:[#allocation2] sm:$0xff] }
 0x393   : > { %v1799_v36 = vunpack.c.l.b16 %v1767_v15 }
 0x3ce   : > { %v1714_v10 = vpop.xlane.xlu1 %1713 }
 0x3cf   : > { %4812 = vrcp.f32 %v1714_v10 }
 0x3d5   : > { %v4813_v26 = vpop.eup %4812 }
 0x3d6   : > { %v1716_v62 = vpop.xlane.xlu2 %1715  ;;  %v1752_v63 = vmul.f32 %v4813_v26, %v6084_v20 }
 0x3d7   : > { %4814 = vrcp.f32 %v1716_v62 }
 0x3d8   : > { %v1768_v5 = vpack.c.bf16 %v1752_v63, %v1752_v63 }
 0x3da   : > { %v1800_v31 = vunpack.c.l.b16 %v1768_v5 }
 0x3dc   : > { %v1880_v33 = vpop.f32.mrf.mxu0  ;;  %v1811_v6 = vpack.c.b16 %v1800_v31, %v1799_v36  ;;  %v4958_v36 = vld [vmem:[#allocation2 + $0x58] sm:$0xff] }
 0x3dd   : > { %v4815_v11 = vpop.eup %4814 }
 0x3de   : > { %1899 = vmatmul.bf16.gmra.mxu0 %v1811_v6  ;;  %v1718_v38 = vpop.xlane.xlu0 %1717  ;;  %v1753_v41 = vmul.f32 %v4815_v11, %v6088_v29  ;;  %v4959_v11 = vld [vmem:[#allocation2 + $0x18] sm:$0xff] }
 0x3df   : > { %4816 = vrcp.f32 %v1718_v38 }
 0x3e0   : > { %v1769_v20 = vpack.c.bf16 %v1753_v41, %v1753_v41 }
 0x3e2   : > { %v1801_v52 = vunpack.c.l.b16 %v1769_v20 }
 0x3e4   : > { %v1882_v34 = vpop.f32.mrf.mxu0 }
 0x3e5   : > { %v4817_v43 = vpop.eup %4816  ;;  %v1920_v25 = vpack.c.bf16 %v1882_v34, %v1880_v33 }
 0x3e6   : > { %v1720_v37 = vpop.xlane.xlu1 %1719  ;;  %v1754_v40 = vmul.f32 %v4817_v43, %v6094_v39 }
 0x3e7   : > { %2004 = vmatmul.bf16.vlgmr.msrb.gmra.mxu1 %v1920_v25  ;;  %4818 = vrcp.f32 %v1720_v37 }
 0x3e8   : > { %v1770_v44 = vpack.c.bf16 %v1754_v40, %v1754_v40  ;;  %v4960_v40 = vld [vmem:[#allocation2 + $0x50] sm:$0xff] }
 0x3ea   : > { %v1802_v53 = vunpack.c.l.b16 %v1770_v44 }
 0x3ec   : > { %v1885_v45 = vpop.f32.mrf.mxu0  ;;  %v1812_v54 = vpack.c.b16 %v1802_v53, %v1801_v52 }
 0x3ed   : > { %v4819_v27 = vpop.eup %4818 }
 0x3ee   : > { %v1722_v18 = vpop.xlane.xlu2 %1721  ;;  %1904 = vmatmul.bf16.gmra.mxu0 %v1812_v54  ;;  %v1755_v29 = vmul.f32 %v4819_v27, %v6100_v46 }
 0x3ef   : > { %4820 = vrcp.f32 %v1722_v18 }
 0x3f0   : > { %v1771_v49 = vpack.c.bf16 %v1755_v29, %v1755_v29 }
 0x3f2   : > { %v1803_v0 = vunpack.c.l.b16 %v1771_v49 }
 0x3f4   : > { %v1887_v57 = vpop.f32.mrf.mxu0 }
 0x3f5   : > { %v4821_v61 = vpop.eup %4820  ;;  %v1921_v58 = vpack.c.bf16 %v1887_v57, %v1885_v45  ;;  %v4961_v45 = vld [vmem:[#allocation2 + $0x68] sm:$0xff] }
 0x3f6   : > { %v1724_v51 = vpop.xlane.xlu0 %1723  ;;  %v1756_v39 = vmul.f32 %v4821_v61, %v6108_v56  ;;  %v4962_v61 = vld [vmem:[#allocation2 + $0x8] sm:$0xff] }
 0x3f7   : > { %2009 = vmatmul.bf16.gmra.mxu1 %v1921_v58  ;;  %4822 = vrcp.f32 %v1724_v51  ;;  %v5338_v51 = vmov 128.0  }
 0x3f8   : > { %v1772_v35 = vpack.c.bf16 %v1756_v39, %v1756_v39 }
 0x3fa   : > { %v1804_v1 = vunpack.c.l.b16 %v1772_v35 }
 0x3fc   : > { %v1890_v4 = vpop.f32.mrf.mxu0  ;;  %v1813_v17 = vpack.c.b16 %v1804_v1, %v1803_v0 }
 0x3fd   : > { %v4823_v55 = vpop.eup %4822 }
 0x3fe   : > { %v1726_v48 = vpop.xlane.xlu1 %1725  ;;  %1909 = vmatmul.bf16.gmra.mxu0 %v1813_v17  ;;  %v1757_v46 = vmul.f32 %v4823_v55, %v6113_v7  ;;  %v6137_v7 = vld [vmem:[%s7283_s16] ss:$0 sm:$0xff] }
 0x3ff   : > { %4824 = vrcp.f32 %v1726_v48 }
 0x400   : > { %v1773_v47 = vpack.c.bf16 %v1757_v46, %v1757_v46  ;;  %4826 = vrcp.f32 %v5338_v51 }
 0x402   : > { %v1805_v12 = vunpack.c.l.b16 %v1773_v47 }
 0x404   : > { %v1892_v9 = vpop.f32.mrf.mxu0 }
 0x405   : > { %v4825_v3 = vpop.eup %4824  ;;  %v1922_v24 = vpack.c.bf16 %v1892_v9, %v1890_v4 }
 0x406   : > { %v1758_v56 = vmul.f32 %v4825_v3, %v6118_v19  ;;  %v4827_v39 = vpop.eup %4826 }
 0x407   : > { %2014 = vmatmul.bf16.gmra.mxu1 %v1922_v24  ;;  %v2096_v49 = vmul.f32 128.0, %v4827_v39  ;;  %vm2100_vm0 = vweird.f32 %v4827_v39 }
 0x408   : > { %v1774_v42 = vpack.c.bf16 %v1758_v56, %v1758_v56 }
 0x409   : > { %v2097_v35 = vsub.f32 1.0, %v2096_v49  ;;  %v4970_v49 = vld [vmem:[#allocation2 + $0x78] sm:$0xff] }
 0x40a   : > { %v1806_v23 = vunpack.c.l.b16 %v1774_v42 }
 0x40b   : > { %v2098_v0 = vmul.f32 %v4827_v39, %v2097_v35 }
 0x40c   : > { %v1895_v32 = vpop.f32.mrf.mxu0  ;;  %v1814_v8 = vpack.c.b16 %v1806_v23, %v1805_v12  ;;  %v4963_v12 = vld [vmem:[#allocation2 + $0x48] sm:$0xff] }
 0x40d   : > { %v2099_v1 = vadd.f32 %v4827_v39, %v2098_v0  ;;  %v4397_v0 = vld [vmem:[%s5696_s17 + $0x70] sm:$0xf] }
 0x40e   : > { %1914 = vmatmul.bf16.gmra.mxu0 %v1814_v8 }
 0x40f   : > { %v6158_v4 = vsel %vm2100_vm0, %v4827_v39, %v2099_v1  ;;  %v4554_v1 = vld [vmem:[%s5696_s17 + $0x74] sm:$0xf0] }
 0x414   : > { %v1897_v13 = vpop.f32.mrf.mxu0 }
 0x415   : > { %v1923_v14 = vpack.c.bf16 %v1897_v13, %v1895_v32 }
 0x417   : > { %2019 = vmatmul.bf16.gmra.mxu1 %v1923_v14 }
 0x45b   : > { %v1900_v2 = vpop.f32.mrf.mxu0 }
 0x463   : > { %v1902_v28 = vpop.f32.mrf.mxu0 }
 0x464   : > { %v1924_v19 = vpack.c.bf16 %v1902_v28, %v1900_v2  ;;  %v2005_v30 = vpop.f32.mrf.mxu1 }
 0x465   : > { %v2006_v16 = vadd.f32 %v6137_v7, %v2005_v30 }
 0x466   : > { %2024 = vmatmul.bf16.gmra.mxu1 %v1924_v19  ;;  %v4964_v19 = vld [vmem:[#allocation2 + $0x40] sm:$0xff] }
 0x467   : > { %v2045_v59 = vadd.f32 %v4956_v50, %v2006_v16 }
 0x469   : > { %2063 = vadd.xlane.f32.xlu2 %v2045_v59 }
 0x46b   : > { %v1905_v60 = vpop.f32.mrf.mxu0 }
 0x46c   : > { %v2007_v10 = vpop.f32.mrf.mxu1 }
 0x46d   : > { %v2008_v21 = vadd.f32 %v6137_v7, %v2007_v10 }
 0x46f   : > { %v2046_v26 = vadd.f32 %v4957_v22, %v2008_v21 }
 0x471   : > { %2065 = vadd.xlane.f32.xlu0 %v2046_v26 }
 0x473   : > { %v1907_v62 = vpop.f32.mrf.mxu0 }
 0x474   : > { %v1925_v63 = vpack.c.bf16 %v1907_v62, %v1905_v60  ;;  %v2010_v15 = vpop.f32.mrf.mxu1 }
 0x475   : > { %v2011_v5 = vadd.f32 %v6137_v7, %v2010_v15 }
 0x476   : > { %2029 = vmatmul.bf16.gmra.mxu1 %v1925_v63 }
 0x477   : > { %v2047_v31 = vadd.f32 %v4958_v36, %v2011_v5 }
 0x479   : > { %2067 = vadd.xlane.f32.xlu1 %v2047_v31 }
 0x47b   : > { %v1910_v33 = vpop.f32.mrf.mxu0 }
 0x47c   : > { %v2012_v6 = vpop.f32.mrf.mxu1 }
 0x47d   : > { %v2013_v38 = vadd.f32 %v6137_v7, %v2012_v6 }
 0x47f   : > { %v6143_v41 = vadd.f32 %v4959_v11, %v2013_v38 }
 0x481   : > { %2069 = vadd.xlane.f32.xlu2 %v6143_v41 }
 0x483   : > { %v1912_v34 = vpop.f32.mrf.mxu0 }
 0x484   : > { %v1926_v43 = vpack.c.bf16 %v1912_v34, %v1910_v33  ;;  %v2015_v25 = vpop.f32.mrf.mxu1  ;;  %v4966_v33 = vld [vmem:[#allocation2 + $0x10] sm:$0xff] }
 0x485   : > { %v2016_v37 = vadd.f32 %v6137_v7, %v2015_v25 }
 0x486   : > { %2034 = vmatmul.bf16.gmra.mxu1 %v1926_v43 }
 0x487   : > { %v6147_v20 = vadd.f32 %v4960_v40, %v2016_v37  ;;  %v4967_v40 = vld [vmem:[#allocation2 + $0x38] sm:$0xff] }
 0x489   : > { %2071 = vadd.xlane.f32.xlu0 %v6147_v20 }
 0x48b   : > { %v1915_v44 = vpop.f32.mrf.mxu0 }
 0x48c   : > { %v2017_v52 = vpop.f32.mrf.mxu1 }
 0x48d   : > { %v2018_v53 = vadd.f32 %v6137_v7, %v2017_v52 }
 0x48f   : > { %v6151_v54 = vadd.f32 %v4961_v45, %v2018_v53 }
 0x491   : > { %2073 = vadd.xlane.f32.xlu1 %v6151_v54 }
 0x493   : > { %v1917_v18 = vpop.f32.mrf.mxu0 }
 0x494   : > { %v1927_v27 = vpack.c.bf16 %v1917_v18, %v1915_v44  ;;  %v2020_v29 = vpop.f32.mrf.mxu1 }
 0x495   : > { %v2021_v57 = vadd.f32 %v6137_v7, %v2020_v29 }
 0x496   : > { %2039 = vmatmul.bf16.gmra.mxu1 %v1927_v27  ;;  %v4968_v27 = vld [vmem:[#allocation2 + $0x60] sm:$0xff] }
 0x497   : > { %v6155_v58 = vadd.f32 %v4962_v61, %v2021_v57  ;;  %v4969_v61 = vld [vmem:[#allocation2 + $0x70] sm:$0xff] }
 0x499   : > { %2075 = vadd.xlane.f32.xlu1 %v6155_v58 }
 0x49c   : > { %v2022_v17 = vpop.f32.mrf.mxu1 }
 0x49d   : > { %v2023_v56 = vadd.f32 %v6137_v7, %v2022_v17  ;;  %v4553_v17 = vld [vmem:[%s5696_s17 + $0x74] sm:$0xf] }
 0x49f   : > { %v6169_v23 = vadd.f32 %v4963_v12, %v2023_v56  ;;  %v4551_v56 = vld [vmem:[%s5696_s17 + $0x64] sm:$0xf]  ;;  %v4391_v12 = vld [vmem:[%s5696_s17 + $0x68] sm:$0xf0] }
 0x4dc   : > { %v2064_v48 = vpop.xlane.xlu2 %2063 }
 0x4dd   : > { %v2102_v55 = vmul.f32 %v6158_v4, %v2064_v48  ;;  %v4398_v48 = vor.u32 %v4554_v1, %v4397_v0  ;;  %v4343_v1 = vld [vmem:[%s5696_s17 + $0x8] sm:$0xf0] }
 0x4df   : > { %v6161_v46 = vsub.f32 %v2045_v59, %v2102_v55  ;;  %v4399_v55 = vld [vmem:[%s5696_s17 + $0x78] sm:$0xf0]  ;;  %2538 = vmatpush.bf16.msra.mxu2 %v4398_v48 }
 0x4e1   : > { %v2134_v9 = vmul.f32 %v6161_v46, %v6161_v46 }
 0x4e3   : > { %2150 = vadd.xlane.f32.xlu2 %v2134_v9  ;;  %v2025_v3 = vpop.f32.mrf.mxu1  ;;  %v4402_v9 = vor.u32 %v4553_v17, %v4399_v55 }
 0x4e4   : > { %v2066_v24 = vpop.xlane.xlu0 %2065  ;;  %v2026_v14 = vadd.f32 %v6137_v7, %v2025_v3  ;;  %v4389_v3 = vld [vmem:[%s5696_s17 + $0x60] sm:$0xf] }
 0x4e5   : > { %v2103_v47 = vmul.f32 %v6158_v4, %v2066_v24  ;;  %2587 = vmatpush.bf16.msra.mxu3 %v4402_v9  ;;  %v4552_v24 = vld [vmem:[%s5696_s17 + $0x64] sm:$0xf0] }
 0x4e6   : > { %v6178_v30 = vadd.f32 %v4964_v19, %v2026_v14  ;;  %v4549_v14 = vld [vmem:[%s5696_s17 + $0x54] sm:$0xf]  ;;  %v4383_v19 = vld [vmem:[%s5696_s17 + $0x58] sm:$0xf0] }
 0x4e7   : > { %v6167_v42 = vsub.f32 %v2046_v26, %v2103_v47  ;;  %v4965_v26 = vld [vmem:[#allocation2 + $0x20] sm:$0xff]  ;;  %v4390_v47 = vor.u32 %v4552_v24, %v4389_v3 }
 0x4e9   : > { %v2135_v32 = vmul.f32 %v6167_v42, %v6167_v42  ;;  %2539 = vmatpush.bf16.msra.mxu2 %v4390_v47 }
 0x4eb   : > { %2077 = vadd.xlane.f32.xlu2 %v6169_v23  ;;  %v2027_v8 = vpop.f32.mrf.mxu1  ;;  %2152 = vadd.xlane.f32.xlu0 %v2135_v32  ;;  %v4394_v32 = vor.u32 %v4551_v56, %v4391_v12 }
 0x4ec   : > { %v2068_v13 = vpop.xlane.xlu1 %2067  ;;  %v2028_v60 = vadd.f32 %v6137_v7, %v2027_v8  ;;  %v4381_v8 = vld [vmem:[%s5696_s17 + $0x50] sm:$0xf] }
 0x4ed   : > { %v2104_v2 = vmul.f32 %v6158_v4, %v2068_v13  ;;  %2588 = vmatpush.bf16.msra.mxu3 %v4394_v32  ;;  %v4550_v13 = vld [vmem:[%s5696_s17 + $0x54] sm:$0xf0] }
 0x4ee   : > { %v6190_v62 = vadd.f32 %v4965_v26, %v2028_v60  ;;  %v4547_v60 = vld [vmem:[%s5696_s17 + $0x44] sm:$0xf] }
 0x4ef   : > { %v6176_v28 = vsub.f32 %v2047_v31, %v2104_v2  ;;  %v4382_v2 = vor.u32 %v4550_v13, %v4381_v8 }
 0x4f1   : > { %v2136_v16 = vmul.f32 %v6176_v28, %v6176_v28  ;;  %2540 = vmatpush.bf16.msra.mxu2 %v4382_v2 }
 0x4f3   : > { %2079 = vadd.xlane.f32.xlu2 %v6178_v30  ;;  %v2030_v50 = vpop.f32.mrf.mxu1  ;;  %2154 = vadd.xlane.f32.xlu0 %v2136_v16  ;;  %v4386_v16 = vor.u32 %v4549_v14, %v4383_v19 }
 0x4f4   : > { %v2070_v59 = vpop.xlane.xlu2 %2069  ;;  %v2031_v5 = vadd.f32 %v6137_v7, %v2030_v50  ;;  %v4373_v50 = vld [vmem:[%s5696_s17 + $0x40] sm:$0xf] }
 0x4f5   : > { %v2105_v10 = vmul.f32 %v6158_v4, %v2070_v59  ;;  %2589 = vmatpush.bf16.msra.mxu3 %v4386_v16  ;;  %v4548_v59 = vld [vmem:[%s5696_s17 + $0x44] sm:$0xf0] }
 0x4f6   : > { %v6198_v6 = vadd.f32 %v4966_v33, %v2031_v5  ;;  %v4545_v5 = vld [vmem:[%s5696_s17 + $0x34] sm:$0xf]  ;;  %v4367_v33 = vld [vmem:[%s5696_s17 + $0x38] sm:$0xf0] }
 0x4f7   : > { %v6186_v21 = vsub.f32 %v6143_v41, %v2105_v10  ;;  %v4374_v10 = vor.u32 %v4548_v59, %v4373_v50 }
 0x4f9   : > { %v2137_v22 = vmul.f32 %v6186_v21, %v6186_v21  ;;  %2541 = vmatpush.bf16.msra.mxu2 %v4374_v10 }
 0x4fb   : > { %2156 = vadd.xlane.f32.xlu1 %v2137_v22  ;;  %2081 = vadd.xlane.f32.xlu0 %v6190_v62  ;;  %v2032_v63 = vpop.f32.mrf.mxu1  ;;  %v4375_v22 = vld [vmem:[%s5696_s17 + $0x48] sm:$0xf0] }
 0x4fc   : > { %v2072_v15 = vpop.xlane.xlu0 %2071  ;;  %v2033_v41 = vadd.f32 %v6137_v7, %v2032_v63  ;;  %v4378_v26 = vor.u32 %v4547_v60, %v4375_v22  ;;  %v4365_v63 = vld [vmem:[%s5696_s17 + $0x30] sm:$0xf] }
 0x4fd   : > { %v2106_v36 = vmul.f32 %v6158_v4, %v2072_v15  ;;  %v4546_v15 = vld [vmem:[%s5696_s17 + $0x34] sm:$0xf0] }
 0x4fe   : > { %2590 = vmatpush.bf16.msra.mxu3 %v4378_v26 }
 0x4ff   : > { %v6196_v31 = vsub.f32 %v6147_v20, %v2106_v36  ;;  %v6210_v20 = vadd.f32 %v4967_v40, %v2033_v41  ;;  %v4366_v36 = vor.u32 %v4546_v15, %v4365_v63  ;;  %v4544_v41 = vld [vmem:[%s5696_s17 + $0x24] sm:$0xf0] }
 0x501   : > { %v2138_v38 = vmul.f32 %v6196_v31, %v6196_v31  ;;  %2542 = vmatpush.bf16.msra.mxu2 %v4366_v36 }
 0x503   : > { %2083 = vadd.xlane.f32.xlu0 %v6198_v6  ;;  %2158 = vadd.xlane.f32.xlu1 %v2138_v38  ;;  %v2035_v43 = vpop.f32.mrf.mxu1  ;;  %v4370_v38 = vor.u32 %v4545_v5, %v4367_v33 }
 0x504   : > { %v2074_v11 = vpop.xlane.xlu1 %2073  ;;  %v2036_v52 = vadd.f32 %v6137_v7, %v2035_v43 }
 0x505   : > { %v2107_v34 = vmul.f32 %v6158_v4, %v2074_v11  ;;  %2591 = vmatpush.bf16.msra.mxu3 %v4370_v38  ;;  %v4357_v11 = vld [vmem:[%s5696_s17 + $0x20] sm:$0xf] }
 0x506   : > { %v6220_v29 = vadd.f32 %v4968_v27, %v2036_v52  ;;  %v4358_v43 = vor.u32 %v4544_v41, %v4357_v11  ;;  %v4542_v52 = vld [vmem:[%s5696_s17 + $0x14] sm:$0xf0] }
 0x507   : > { %v6206_v25 = vsub.f32 %v6151_v54, %v2107_v34  ;;  %v4543_v34 = vld [vmem:[%s5696_s17 + $0x24] sm:$0xf] }
 0x508   : > { %2543 = vmatpush.bf16.msra.mxu2 %v4358_v43 }
 0x509   : > { %v2139_v37 = vmul.f32 %v6206_v25, %v6206_v25 }
 0x50b   : > { %2160 = vadd.xlane.f32.xlu2 %v2139_v37  ;;  %2085 = vadd.xlane.f32.xlu1 %v6210_v20  ;;  %v2037_v54 = vpop.f32.mrf.mxu1  ;;  %v4359_v37 = vld [vmem:[%s5696_s17 + $0x28] sm:$0xf0] }
 0x50c   : > { %v2076_v44 = vpop.xlane.xlu1 %2075  ;;  %v2038_v57 = vadd.f32 %v6137_v7, %v2037_v54  ;;  %v4362_v40 = vor.u32 %v4543_v34, %v4359_v37 }
 0x50d   : > { %v2108_v53 = vmul.f32 %v6158_v4, %v2076_v44  ;;  %v4349_v44 = vld [vmem:[%s5696_s17 + $0x10] sm:$0xf] }
 0x50e   : > { %2592 = vmatpush.bf16.msra.mxu3 %v4362_v40  ;;  %v4350_v54 = vor.u32 %v4542_v52, %v4349_v44 }
 0x50f   : > { %v6216_v45 = vsub.f32 %v6155_v58, %v2108_v53  ;;  %v6224_v58 = vadd.f32 %v4969_v61, %v2038_v57  ;;  %v4541_v53 = vld [vmem:[%s5696_s17 + $0x14] sm:$0xf] }
 0x510   : > { %2544 = vmatpush.bf16.msra.mxu2 %v4350_v54 }
 0x511   : > { %v2140_v18 = vmul.f32 %v6216_v45, %v6216_v45 }
 0x513   : > { %2162 = vadd.xlane.f32.xlu2 %v2140_v18  ;;  %2087 = vadd.xlane.f32.xlu1 %v6220_v29  ;;  %v2040_v51 = vpop.f32.mrf.mxu1  ;;  %v4351_v18 = vld [vmem:[%s5696_s17 + $0x18] sm:$0xf0] }
 0x514   : > { %v2041_v39 = vadd.f32 %v6137_v7, %v2040_v51  ;;  %v4354_v27 = vor.u32 %v4541_v53, %v4351_v18  ;;  %v4341_v51 = vld [vmem:[%s5696_s17] sm:$0xf]  ;;  %v6290_v53 = vld [vmem:[%s7285_s2] ss:$0 sm:$0xff] }
 0x515   : > { %v4971_v18 = vld [vmem:[#allocation2 + $0x28] sm:$0xff] }
 0x516   : > { %v6228_v35 = vadd.f32 %v4970_v49, %v2041_v39  ;;  %2593 = vmatpush.bf16.msra.mxu3 %v4354_v27  ;;  %v4540_v39 = vld [vmem:[%s5696_s17 + $0x4] sm:$0xf0]  ;;  %v4539_v49 = vld [vmem:[%s5696_s17 + $0x4] sm:$0xf] }
 0x517   : > { %v4342_v0 = vor.u32 %v4540_v39, %v4341_v51  ;;  %v4346_v48 = vor.u32 %v4539_v49, %v4343_v1  ;;  %v6304_v39 = vld [vmem:[%s1041_s7] ss:$0 sm:$0xff] }
 0x519   : > { %2545 = vmatpush.bf16.msra.mxu2 %v4342_v0 }
 0x51a   : > { %2594 = vmatpush.bf16.msra.mxu3 %v4346_v48 }
 0x51b   : > { %2089 = vadd.xlane.f32.xlu2 %v6224_v58  ;;  %v2042_v15 = vpop.f32.mrf.mxu1 }
 0x523   : > { %2091 = vadd.xlane.f32.xlu2 %v6228_v35 }
 0x556   : > { %v2151_v57 = vpop.xlane.xlu2 %2150 }
 0x557   : > { %v2182_v61 = vmul.f32 %v2151_v57, %v6158_v4 }
 0x559   : > { %v2198_v17 = vadd.f32 1e-12, %v2182_v61 }
 0x55b   : > { %4828 = vrsqrt.f32 %v2198_v17  ;;  %vm2220_vm2 = vweird.f32 %v2198_v17 }
 0x55e   : > { %v2078_v55 = vpop.xlane.xlu2 %2077  ;;  %v2153_v9 = vpop.xlane.xlu0 %2152 }
 0x55f   : > { %v2109_v3 = vmul.f32 %v6158_v4, %v2078_v55  ;;  %v2183_v24 = vmul.f32 %v2153_v9, %v6158_v4 }
 0x561   : > { %v4829_v56 = vpop.eup %4828  ;;  %v6267_v47 = vsub.f32 %v6169_v23, %v2109_v3  ;;  %v2199_v12 = vadd.f32 1e-12, %v2183_v24 }
 0x562   : > { %v2215_v32 = vmul.f32 %v4829_v56, %v2198_v17  ;;  %vm2221_vm1 = vweird.f32 %v4829_v56 }
 0x563   : > { %4830 = vrsqrt.f32 %v2199_v12  ;;  %v2141_v8 = vmul.f32 %v6267_v47, %v6267_v47  ;;  %vm2222_vm3 = vmor %vm2220_vm2, %vm2221_vm1  ;;  %vm2230_vm5 = vweird.f32 %v2199_v12 }
 0x564   : > { %v2216_v13 = vmul.f32 %v4829_v56, %v2215_v32 }
 0x565   : > { %2164 = vadd.xlane.f32.xlu0 %v2141_v8 }
 0x566   : > { %v2217_v14 = vmul.f32 0.5, %v2216_v13  ;;  %v2080_v2 = vpop.xlane.xlu2 %2079  ;;  %v2155_v19 = vpop.xlane.xlu0 %2154 }
 0x567   : > { %v2110_v16 = vmul.f32 %v6158_v4, %v2080_v2  ;;  %v2184_v50 = vmul.f32 %v2155_v19, %v6158_v4 }
 0x568   : > { %v2218_v59 = vsub.f32 1.5, %v2217_v14 }
 0x569   : > { %v4831_v60 = vpop.eup %4830  ;;  %v6274_v23 = vsub.f32 %v6178_v30, %v2110_v16  ;;  %v2200_v10 = vadd.f32 1e-12, %v2184_v50  ;;  %v2043_v30 = vadd.f32 %v6137_v7, %v2042_v15 }
 0x56a   : > { %v2219_v22 = vmul.f32 %v4829_v56, %v2218_v59  ;;  %v2225_v26 = vmul.f32 %v4831_v60, %v2199_v12  ;;  %vm2231_vm4 = vweird.f32 %v4831_v60 }
 0x56b   : > { %4832 = vrsqrt.f32 %v2200_v10  ;;  %v2142_v63 = vmul.f32 %v6274_v23, %v6274_v23  ;;  %vm2232_vm6 = vmor %vm2230_vm5, %vm2231_vm4  ;;  %v6292_v27 = vadd.f32 %v4971_v18, %v2043_v30  ;;  %vm2240_vm8 = vweird.f32 %v2200_v10 }
 0x56c   : > { %v2226_v5 = vmul.f32 %v4831_v60, %v2225_v26  ;;  %v2223_v36 = vsel %vm2222_vm3, %v4829_v56, %v2219_v22 }
 0x56d   : > { %2166 = vadd.xlane.f32.xlu0 %v2142_v63  ;;  %v2374_v40 = vmul.f32 %v2223_v36, %v6161_v46 }
 0x56e   : > { %v2227_v33 = vmul.f32 0.5, %v2226_v5  ;;  %v2157_v38 = vpop.xlane.xlu1 %2156  ;;  %v2082_v11 = vpop.xlane.xlu0 %2081 }
 0x56f   : > { %v2185_v41 = vmul.f32 %v2157_v38, %v6158_v4  ;;  %v2111_v34 = vmul.f32 %v6158_v4, %v2082_v11  ;;  %v2393_v51 = vmul.f32 %v6290_v53, %v2374_v40 }
 0x570   : > { %v2228_v43 = vsub.f32 1.5, %v2227_v33 }
 0x571   : > { %v4833_v37 = vpop.eup %4832  ;;  %v2201_v44 = vadd.f32 1e-12, %v2185_v41  ;;  %v6283_v52 = vsub.f32 %v6190_v62, %v2111_v34  ;;  %v6313_v56 = vadd.f32 %v6304_v39, %v2393_v51 }
 0x572   : > { %v2229_v7 = vmul.f32 %v4831_v60, %v2228_v43  ;;  %v2235_v54 = vmul.f32 %v4833_v37, %v2200_v10  ;;  %vm2241_vm7 = vweird.f32 %v4833_v37 }
 0x573   : > { %4834 = vrsqrt.f32 %v2201_v44  ;;  %v2143_v46 = vmul.f32 %v6283_v52, %v6283_v52  ;;  %vm2242_vm9 = vmor %vm2240_vm8, %vm2241_vm7  ;;  %vm2250_vm11 = vweird.f32 %v2201_v44 }
 0x574   : > { %v2233_v62 = vsel %vm2232_vm6, %v4831_v60, %v2229_v7  ;;  %v2236_v57 = vmul.f32 %v4833_v37, %v2235_v54 }
 0x575   : > { %v2375_v61 = vmul.f32 %v2233_v62, %v6167_v42  ;;  %2093 = vadd.xlane.f32.xlu0 %v6292_v27  ;;  %2168 = vadd.xlane.f32.xlu1 %v2143_v46 }
 0x576   : > { %v2237_v49 = vmul.f32 0.5, %v2236_v57  ;;  %v2159_v0 = vpop.xlane.xlu1 %2158  ;;  %v2084_v1 = vpop.xlane.xlu0 %2083 }
 0x577   : > { %v2186_v17 = vmul.f32 %v2159_v0, %v6158_v4  ;;  %v2112_v48 = vmul.f32 %v6158_v4, %v2084_v1  ;;  %v2394_v42 = vmul.f32 %v6290_v53, %v2375_v61 }
 0x578   : > { %v2238_v55 = vsub.f32 1.5, %v2237_v49 }
 0x579   : > { %v4835_v9 = vpop.eup %4834  ;;  %v2202_v3 = vadd.f32 1e-12, %v2186_v17  ;;  %v6310_v24 = vsub.f32 %v6198_v6, %v2112_v48  ;;  %v6316_v12 = vadd.f32 %v6304_v39, %v2394_v42 }
 0x57a   : > { %v2239_v32 = vmul.f32 %v4833_v37, %v2238_v55  ;;  %v2245_v8 = vmul.f32 %v4835_v9, %v2201_v44  ;;  %vm2251_vm10 = vweird.f32 %v4835_v9 }
 0x57b   : > { %4836 = vrsqrt.f32 %v2202_v3  ;;  %v2428_v13 = vpack.c.bf16 %v6316_v12, %v6313_v56  ;;  %v2144_v14 = vmul.f32 %v6310_v24, %v6310_v24  ;;  %vm2252_vm12 = vmor %vm2250_vm11, %vm2251_vm10  ;;  %vm2260_vm14 = vweird.f32 %v2202_v3 }
 0x57c   : > { %v2246_v2 = vmul.f32 %v4835_v9, %v2245_v8  ;;  %v2243_v6 = vsel %vm2242_vm9, %v4833_v37, %v2239_v32 }
 0x57d   : > { %2546 = vmatmul.bf16.vlgmr.msra.gmra.mxu2 %v2428_v13  ;;  %2595 = vmatmul.bf16.vlgmr.msra.gmra.mxu3 %v2428_v13  ;;  %v2376_v63 = vmul.f32 %v2243_v6, %v6176_v28 }
 0x57e   : > { %v2247_v19 = vmul.f32 0.5, %v2246_v2  ;;  %2170 = vadd.xlane.f32.xlu1 %v2144_v14  ;;  %v2161_v16 = vpop.xlane.xlu2 %2160  ;;  %v2086_v50 = vpop.xlane.xlu1 %2085 }
 0x57f   : > { %v2187_v59 = vmul.f32 %v2161_v16, %v6158_v4  ;;  %v2113_v60 = vmul.f32 %v6158_v4, %v2086_v50  ;;  %v2395_v41 = vmul.f32 %v6290_v53, %v2376_v63 }
 0x580   : > { %v2248_v22 = vsub.f32 1.5, %v2247_v19 }
 0x581   : > { %v4837_v26 = vpop.eup %4836  ;;  %v2203_v15 = vadd.f32 1e-12, %v2187_v59  ;;  %v6326_v10 = vsub.f32 %v6210_v20, %v2113_v60  ;;  %v6338_v54 = vadd.f32 %v6304_v39, %v2395_v41 }
 0x582   : > { %v2249_v5 = vmul.f32 %v4835_v9, %v2248_v22  ;;  %v2255_v36 = vmul.f32 %v4837_v26, %v2202_v3  ;;  %vm2261_vm13 = vweird.f32 %v4837_v26 }
 0x583   : > { %4838 = vrsqrt.f32 %v2203_v15  ;;  %v2145_v33 = vmul.f32 %v6326_v10, %v6326_v10  ;;  %vm2262_vm15 = vmor %vm2260_vm14, %vm2261_vm13  ;;  %vm2270_vm1 = vweird.f32 %v2203_v15 }
 0x584   : > { %v2253_v38 = vsel %vm2252_vm12, %v4835_v9, %v2249_v5  ;;  %v2256_v11 = vmul.f32 %v4837_v26, %v2255_v36 }
 0x585   : > { %v2377_v30 = vmul.f32 %v2253_v38, %v6186_v21  ;;  %2172 = vadd.xlane.f32.xlu2 %v2145_v33  ;;  %v4562_v33 = vld [vmem:[%s5698_s14 + $0x38] sm:$0xff] }
 0x586   : > { %v2257_v28 = vmul.f32 0.5, %v2256_v11  ;;  %v2163_v34 = vpop.xlane.xlu2 %2162  ;;  %v2088_v43 = vpop.xlane.xlu1 %2087  ;;  %v4570_v38 = vld [vmem:[%s5698_s14 + $0x78] sm:$0xff]  ;;  %3072 = vmatpush.bf16.msra.mxu0 %v4562_v33  ;;  %4595 = vmatpush.bf16.msrb.mxu2 %v4562_v33 }
 0x587   : > { %v2114_v20 = vmul.f32 %v6158_v4, %v2088_v43  ;;  %v2396_v37 = vmul.f32 %v6290_v53, %v2377_v30  ;;  %3121 = vmatpush.bf16.msra.mxu1 %v4570_v38  ;;  %v4561_v43 = vld [vmem:[%s5698_s14 + $0x30] sm:$0xff] }
 0x588   : > { %v2258_v40 = vsub.f32 1.5, %v2257_v28 }
 0x589   : > { %v4839_v44 = vpop.eup %4838  ;;  %v6335_v7 = vsub.f32 %v6220_v29, %v2114_v20  ;;  %v6341_v21 = vadd.f32 %v6304_v39, %v2396_v37  ;;  %v4569_v20 = vld [vmem:[%s5698_s14 + $0x70] sm:$0xff] }
 0x58a   : > { %v2259_v18 = vmul.f32 %v4837_v26, %v2258_v40  ;;  %v2265_v46 = vmul.f32 %v4839_v44, %v2203_v15  ;;  %vm2271_vm0 = vweird.f32 %v4839_v44  ;;  %3073 = vmatpush.bf16.msra.mxu0 %v4561_v43  ;;  %4596 = vmatpush.bf16.msrb.mxu2 %v4561_v43 }
 0x58b   : > { %v2146_v62 = vmul.f32 %v6335_v7, %v6335_v7  ;;  %v2429_v57 = vpack.c.bf16 %v6341_v21, %v6338_v54  ;;  %vm2272_vm2 = vmor %vm2270_vm1, %vm2271_vm0  ;;  %3122 = vmatpush.bf16.msra.mxu1 %v4569_v20 }
 0x58c   : > { %v2266_v61 = vmul.f32 %v4839_v44, %v2265_v46  ;;  %v2263_v29 = vsel %vm2262_vm15, %v4837_v26, %v2259_v18 }
 0x58d   : > { %2174 = vadd.xlane.f32.xlu0 %v2146_v62  ;;  %2551 = vmatmul.bf16.gmra.mxu2 %v2429_v57  ;;  %v2378_v17 = vmul.f32 %v2263_v29, %v6196_v31 }
 0x58e   : > { %v2267_v51 = vmul.f32 0.5, %v2266_v61  ;;  %2600 = vmatmul.bf16.gmra.mxu3 %v2429_v57  ;;  %v2090_v49 = vpop.xlane.xlu2 %2089 }
 0x58f   : > { %v2115_v0 = vmul.f32 %v6158_v4, %v2090_v49  ;;  %v2397_v32 = vmul.f32 %v6290_v53, %v2378_v17 }
 0x590   : > { %v2268_v1 = vsub.f32 1.5, %v2267_v51 }
 0x591   : > { %v6350_v48 = vsub.f32 %v6224_v58, %v2115_v0  ;;  %v6362_v14 = vadd.f32 %v6304_v39, %v2397_v32  ;;  %v4560_v0 = vld [vmem:[%s5698_s14 + $0x28] sm:$0xff]  ;;  %v4559_v32 = vld [vmem:[%s5698_s14 + $0x20] sm:$0xff] }
 0x592   : > { %v2269_v42 = vmul.f32 %v4839_v44, %v2268_v1  ;;  %v4568_v1 = vld [vmem:[%s5698_s14 + $0x68] sm:$0xff]  ;;  %3074 = vmatpush.bf16.msra.mxu0 %v4560_v0  ;;  %4597 = vmatpush.bf16.msrb.mxu2 %v4560_v0 }
 0x593   : > { %v2147_v55 = vmul.f32 %v6350_v48, %v6350_v48  ;;  %3123 = vmatpush.bf16.msra.mxu1 %v4568_v1 }
 0x594   : > { %v2273_v9 = vsel %vm2272_vm2, %v4839_v44, %v2269_v42 }
 0x595   : > { %v2379_v3 = vmul.f32 %v2273_v9, %v6206_v25  ;;  %2176 = vadd.xlane.f32.xlu1 %v2147_v55 }
 0x596   : > { %v2092_v8 = vpop.xlane.xlu2 %2091  ;;  %3075 = vmatpush.bf16.msra.mxu0 %v4559_v32  ;;  %4598 = vmatpush.bf16.msrb.mxu2 %v4559_v32 }
 0x597   : > { %v2116_v13 = vmul.f32 %v6158_v4, %v2092_v8  ;;  %v2398_v31 = vmul.f32 %v6290_v53, %v2379_v3  ;;  %v4567_v8 = vld [vmem:[%s5698_s14 + $0x60] sm:$0xff] }
 0x598   : > { %3124 = vmatpush.bf16.msra.mxu1 %v4567_v8 }
 0x599   : > { %v6359_v58 = vsub.f32 %v6228_v35, %v2116_v13  ;;  %v6365_v2 = vadd.f32 %v6304_v39, %v2398_v31  ;;  %v2188_v35 = vmul.f32 %v2163_v34, %v6158_v4 }
 0x59b   : > { %v2148_v25 = vmul.f32 %v6359_v58, %v6359_v58  ;;  %v2430_v6 = vpack.c.bf16 %v6365_v2, %v6362_v14  ;;  %v2204_v19 = vadd.f32 1e-12, %v2188_v35 }
 0x59d   : > { %2178 = vadd.xlane.f32.xlu2 %v2148_v25  ;;  %2556 = vmatmul.bf16.gmra.mxu2 %v2430_v6  ;;  %4840 = vrsqrt.f32 %v2204_v19  ;;  %vm2280_vm4 = vweird.f32 %v2204_v19 }
 0x59e   : > { %2605 = vmatmul.bf16.gmra.mxu3 %v2430_v6 }
 0x5a3   : > { %v4841_v16 = vpop.eup %4840 }
 0x5a4   : > { %v2275_v50 = vmul.f32 %v4841_v16, %v2204_v19  ;;  %vm2281_vm3 = vweird.f32 %v4841_v16 }
 0x5a5   : > { %vm2282_vm5 = vmor %vm2280_vm4, %vm2281_vm3 }
 0x5a6   : > { %v2276_v59 = vmul.f32 %v4841_v16, %v2275_v50 }
 0x5a8   : > { %v2277_v63 = vmul.f32 0.5, %v2276_v59 }
 0x5aa   : > { %v2278_v15 = vsub.f32 1.5, %v2277_v63  ;;  %v4566_v63 = vld [vmem:[%s5698_s14 + $0x58] sm:$0xff] }
 0x5ab   : > { %3125 = vmatpush.bf16.msra.mxu1 %v4566_v63 }
 0x5ac   : > { %v2279_v41 = vmul.f32 %v4841_v16, %v2278_v15 }
 0x5ae   : > { %v2283_v37 = vsel %vm2282_vm5, %v4841_v16, %v2279_v41  ;;  %v2452_v41 = vld [vmem:[%s5747_s24] sm:$0x3] }
 0x5af   : > { %v2380_v29 = vmul.f32 %v2283_v37, %v6216_v45 }
 0x5b1   : > { %v2399_v3 = vmul.f32 %v6290_v53, %v2380_v29 }
 0x5d8   : > { %v2165_v60 = vpop.xlane.xlu0 %2164 }
 0x5d9   : > { %v2189_v22 = vmul.f32 %v2165_v60, %v6158_v4 }
 0x5db   : > { %v2205_v26 = vadd.f32 1e-12, %v2189_v22 }
 0x5dd   : > { %4842 = vrsqrt.f32 %v2205_v26  ;;  %vm2290_vm7 = vweird.f32 %v2205_v26 }
 0x5e0   : > { %v2167_v5 = vpop.xlane.xlu0 %2166 }
 0x5e1   : > { %v2190_v36 = vmul.f32 %v2167_v5, %v6158_v4 }
 0x5e3   : > { %v4843_v11 = vpop.eup %4842  ;;  %v6376_v30 = vadd.f32 1e-12, %v2190_v36 }
 0x5e4   : > { %v2285_v28 = vmul.f32 %v4843_v11, %v2205_v26  ;;  %vm2291_vm6 = vweird.f32 %v4843_v11  ;;  %v4558_v26 = vld [vmem:[%s5698_s14 + $0x18] sm:$0xff] }
 0x5e5   : > { %4844 = vrsqrt.f32 %v6376_v30  ;;  %vm2292_vm8 = vmor %vm2290_vm7, %vm2291_vm6  ;;  %vm2300_vm10 = vweird.f32 %v6376_v30  ;;  %3076 = vmatpush.bf16.msra.mxu0 %v4558_v26  ;;  %4599 = vmatpush.bf16.msrb.mxu2 %v4558_v26 }
 0x5e6   : > { %v2286_v34 = vmul.f32 %v4843_v11, %v2285_v28  ;;  %v4557_v28 = vld [vmem:[%s5698_s14 + $0x10] sm:$0xff] }
 0x5e8   : > { %v2287_v40 = vmul.f32 0.5, %v2286_v34  ;;  %v2169_v44 = vpop.xlane.xlu1 %2168  ;;  %v2094_v18 = vpop.xlane.xlu0 %2093  ;;  %v4565_v34 = vld [vmem:[%s5698_s14 + $0x50] sm:$0xff] }
 0x5e9   : > { %v2191_v46 = vmul.f32 %v2169_v44, %v6158_v4  ;;  %v2117_v62 = vmul.f32 %v6158_v4, %v2094_v18  ;;  %3077 = vmatpush.bf16.msra.mxu0 %v4557_v28  ;;  %3126 = vmatpush.bf16.msra.mxu1 %v4565_v34  ;;  %v6429_v44 = vperm.slane %v2452_v41, 0  ;;  %v6431_v18 = vperm.slane %v2452_v41, 1 }
 0x5ea   : > { %v2288_v57 = vsub.f32 1.5, %v2287_v40  ;;  %4600 = vmatpush.bf16.msrb.mxu2 %v4557_v28 }
 0x5eb   : > { %v4845_v61 = vpop.eup %4844  ;;  %v6384_v51 = vadd.f32 1e-12, %v2191_v46  ;;  %v6387_v49 = vsub.f32 %v6292_v27, %v2117_v62  ;;  %v4556_v62 = vld [vmem:[%s5698_s14 + $0x8] sm:$0xff] }
 0x5ec   : > { %v2289_v17 = vmul.f32 %v4843_v11, %v2288_v57  ;;  %v2295_v42 = vmul.f32 %v4845_v61, %v6376_v30  ;;  %vm2301_vm9 = vweird.f32 %v4845_v61 }
 0x5ed   : > { %4846 = vrsqrt.f32 %v6384_v51  ;;  %v2149_v55 = vmul.f32 %v6387_v49, %v6387_v49  ;;  %vm2302_vm11 = vmor %vm2300_vm10, %vm2301_vm9  ;;  %vm2310_vm13 = vweird.f32 %v6384_v51  ;;  %3078 = vmatpush.bf16.msra.mxu0 %v4556_v62 }
 0x5ee   : > { %v2293_v45 = vsel %vm2292_vm8, %v4843_v11, %v2289_v17  ;;  %v2296_v9 = vmul.f32 %v4845_v61, %v2295_v42  ;;  %4601 = vmatpush.bf16.msrb.mxu2 %v4556_v62 }
 0x5ef   : > { %v2381_v27 = vmul.f32 %v2293_v45, %v6267_v47  ;;  %2180 = vadd.xlane.f32.xlu0 %v2149_v55  ;;  %v6402_v47 = vadd.f32 %v6304_v39, %v2399_v3 }
 0x5f0   : > { %v2297_v13 = vmul.f32 0.5, %v2296_v9  ;;  %v4555_v9 = vld [vmem:[%s5698_s14] sm:$0xff] }
 0x5f1   : > { %v2171_v31 = vpop.xlane.xlu1 %2170  ;;  %v2400_v25 = vmul.f32 %v6290_v53, %v2381_v27  ;;  %v4563_v27 = vld [vmem:[%s5698_s14 + $0x40] sm:$0xff]  ;;  %3079 = vmatpush.bf16.msra.mxu0 %v4555_v9 }
 0x5f2   : > { %v2298_v6 = vsub.f32 1.5, %v2297_v13  ;;  %v2192_v35 = vmul.f32 %v2171_v31, %v6158_v4  ;;  %4602 = vmatpush.bf16.msrb.mxu2 %v4555_v9 }
 0x5f3   : > { %v4847_v19 = vpop.eup %4846  ;;  %v6405_v16 = vadd.f32 %v6304_v39, %v2400_v25 }
 0x5f4   : > { %v2305_v50 = vmul.f32 %v4847_v19, %v6384_v51  ;;  %v6408_v59 = vadd.f32 1e-12, %v2192_v35  ;;  %v2299_v60 = vmul.f32 %v4845_v61, %v2298_v6  ;;  %vm2311_vm12 = vweird.f32 %v4847_v19 }
 0x5f5   : > { %v2431_v22 = vpack.c.bf16 %v6405_v16, %v6402_v47  ;;  %vm2312_vm14 = vmor %vm2310_vm13, %vm2311_vm12 }
 0x5f6   : > { %v2306_v15 = vmul.f32 %v4847_v19, %v2305_v50  ;;  %4848 = vrsqrt.f32 %v6408_v59  ;;  %v2303_v33 = vsel %vm2302_vm11, %v4845_v61, %v2299_v60  ;;  %vm2320_vm0 = vweird.f32 %v6408_v59 }
 0x5f7   : > { %2561 = vmatmul.bf16.gmra.mxu2 %v2431_v22  ;;  %2610 = vmatmul.bf16.gmra.mxu3 %v2431_v22  ;;  %v2382_v20 = vmul.f32 %v2303_v33, %v6274_v23  ;;  %v4564_v23 = vld [vmem:[%s5698_s14 + $0x48] sm:$0xff] }
 0x5f8   : > { %v2307_v5 = vmul.f32 0.5, %v2306_v15  ;;  %v2173_v36 = vpop.xlane.xlu2 %2172  ;;  %3127 = vmatpush.bf16.msra.mxu1 %v4564_v23 }
 0x5f9   : > { %v2193_v38 = vmul.f32 %v2173_v36, %v6158_v4  ;;  %v2401_v0 = vmul.f32 %v6290_v53, %v2382_v20 }
 0x5fa   : > { %v2308_v11 = vsub.f32 1.5, %v2307_v5 }
 0x5fb   : > { %v6420_v43 = vadd.f32 1e-12, %v2193_v38 }
 0x5fc   : > { %v6422_v30 = vpop.eup %4848  ;;  %v2309_v37 = vmul.f32 %v4847_v19, %v2308_v11  ;;  %3128 = vmatpush.bf16.msra.mxu1 %v4563_v27 }
 0x5fd   : > { %v2315_v40 = vmul.f32 %v6422_v30, %v6408_v59  ;;  %4850 = vrsqrt.f32 %v6420_v43  ;;  %vm2321_vm15 = vweird.f32 %v6422_v30  ;;  %vm2330_vm3 = vweird.f32 %v6420_v43 }
 0x5fe   : > { %v2313_v46 = vsel %vm2312_vm14, %v4847_v19, %v2309_v37  ;;  %v6457_v19 = vadd.f32 %v6304_v39, %v2401_v0  ;;  %vm6467_vm1 = vmor %vm2320_vm0, %vm2321_vm15 }
 0x5ff   : > { %v2383_v57 = vmul.f32 %v2313_v46, %v6283_v52  ;;  %v2316_v61 = vmul.f32 %v6422_v30, %v2315_v40 }
 0x600   : > { %v2547_v29 = vpop.f32.mrf.mxu2  ;;  %v2596_v51 = vpop.f32.mrf.mxu3 }
 0x601   : > { %v2317_v1 = vmul.f32 0.5, %v2316_v61  ;;  %v6439_v17 = vadd.f32 %v2547_v29, %v6429_v44  ;;  %v6442_v42 = vadd.f32 %v2596_v51, %v6431_v18  ;;  %v2175_v55 = vpop.xlane.xlu0 %2174  ;;  %v2402_v45 = vmul.f32 %v6290_v53, %v2383_v57 }
 0x602   : > { %v2194_v52 = vmul.f32 %v2175_v55, %v6158_v4 }
 0x603   : > { %v4851_v3 = vpop.eup %4850  ;;  %v2318_v32 = vsub.f32 1.5, %v2317_v1  ;;  %v2668_v8 = vmul.f32 0.044715, %v6439_v17  ;;  %v2669_v31 = vmul.f32 0.044715, %v6442_v42  ;;  %v6460_v50 = vadd.f32 %v6304_v39, %v2402_v45 }
 0x604   : > { %v2325_v13 = vmul.f32 %v4851_v3, %v6420_v43  ;;  %v6452_v25 = vadd.f32 1e-12, %v2194_v52  ;;  %vm2331_vm2 = vweird.f32 %v4851_v3 }
 0x605   : > { %v2319_v6 = vmul.f32 %v6422_v30, %v2318_v32  ;;  %v2700_v35 = vmul.f32 %v2668_v8, %v6439_v17  ;;  %v2701_v22 = vmul.f32 %v2669_v31, %v6442_v42  ;;  %v2432_v15 = vpack.c.bf16 %v6460_v50, %v6457_v19  ;;  %vm2332_vm4 = vmor %vm2330_vm3, %vm2331_vm2 }
 0x606   : > { %v2326_v60 = vmul.f32 %v4851_v3, %v2325_v13  ;;  %4852 = vrsqrt.f32 %v6452_v25  ;;  %vm2340_vm6 = vweird.f32 %v6452_v25 }
 0x607   : > { %v2732_v63 = vmul.f32 %v2700_v35, %v6439_v17  ;;  %v2323_v59 = vsel %vm6467_vm1, %v6422_v30, %v2319_v6  ;;  %v2733_v36 = vmul.f32 %v2701_v22, %v6442_v42  ;;  %2566 = vmatmul.bf16.gmra.mxu2 %v2432_v15  ;;  %2615 = vmatmul.bf16.gmra.mxu3 %v2432_v15 }
 0x608   : > { %v2327_v5 = vmul.f32 0.5, %v2326_v60  ;;  %v2549_v33 = vpop.f32.mrf.mxu2  ;;  %v2598_v38 = vpop.f32.mrf.mxu3  ;;  %v2384_v40 = vmul.f32 %v2323_v59, %v6310_v24 }
 0x609   : > { %v2764_v11 = vadd.f32 %v2732_v63, %v6439_v17  ;;  %v2550_v41 = vadd.f32 %v2549_v33, %v6429_v44  ;;  %v6481_v28 = vadd.f32 %v2598_v38, %v6431_v18  ;;  %v2177_v34 = vpop.xlane.xlu1 %2176  ;;  %v2765_v37 = vadd.f32 %v2733_v36, %v6442_v42 }
 0x60a   : > { %v2328_v20 = vsub.f32 1.5, %v2327_v5  ;;  %v2195_v30 = vmul.f32 %v2177_v34, %v6158_v4  ;;  %v2403_v32 = vmul.f32 %v6290_v53, %v2384_v40  ;;  %v2636_v40 = vmul.f32 0.5, %v6439_v17 }
 0x60b   : > { %v2670_v46 = vmul.f32 0.044715, %v2550_v41  ;;  %v2796_v57 = vmul.f32 0.7978846, %v2764_v11  ;;  %v2671_v61 = vmul.f32 0.044715, %v6481_v28 }
 0x60c   : > { %v6487_v62 = vpop.eup %4852  ;;  %v2329_v23 = vmul.f32 %v4851_v3, %v2328_v20  ;;  %v6490_v29 = vadd.f32 1e-12, %v2195_v30  ;;  %v2797_v51 = vmul.f32 0.7978846, %v2765_v37  ;;  %v6515_v36 = vadd.f32 %v6304_v39, %v2403_v32 }
 0x60d   : > { %v2335_v0 = vmul.f32 %v6487_v62, %v6452_v25  ;;  %v2702_v1 = vmul.f32 %v2670_v46, %v2550_v41  ;;  %v2703_v24 = vmul.f32 %v2671_v61, %v6481_v28  ;;  %vm2341_vm5 = vweird.f32 %v6487_v62 }
 0x60e   : > { %v2333_v55 = vsel %vm2332_vm4, %v4851_v3, %v2329_v23  ;;  %4854 = vrsqrt.f32 %v6490_v29  ;;  %vm6520_vm7 = vmor %vm2340_vm6, %vm2341_vm5  ;;  %v2637_v46 = vmul.f32 0.5, %v6442_v42  ;;  %v2638_v61 = vmul.f32 0.5, %v2550_v41 }
 0x60f   : > { %v2385_v43 = vmul.f32 %v2333_v55, %v6326_v10  ;;  %v2336_v45 = vmul.f32 %v6487_v62, %v2335_v0  ;;  %v2734_v52 = vmul.f32 %v2702_v1, %v2550_v41  ;;  %4856 = vtanh.f32 %v2796_v57 }
 0x610   : > { %v2735_v9 = vmul.f32 %v2703_v24, %v6481_v28  ;;  %v2552_v27 = vpop.f32.mrf.mxu2  ;;  %4858 = vtanh.f32 %v2797_v51  ;;  %vm2350_vm9 = vweird.f32 %v6490_v29 }
 0x611   : > { %v2337_v8 = vmul.f32 0.5, %v2336_v45  ;;  %v2766_v13 = vadd.f32 %v2734_v52, %v2550_v41  ;;  %v6501_v3 = vadd.f32 %v2552_v27, %v6429_v44  ;;  %v2601_v31 = vpop.f32.mrf.mxu3  ;;  %v2404_v6 = vmul.f32 %v6290_v53, %v2385_v43 }
 0x612   : > { %v2767_v10 = vadd.f32 %v2735_v9, %v6481_v28  ;;  %v6506_v22 = vadd.f32 %v2601_v31, %v6431_v18  ;;  %v2639_v31 = vmul.f32 0.5, %v6481_v28 }
 0x613   : > { %v2338_v35 = vsub.f32 1.5, %v2337_v8  ;;  %v2798_v60 = vmul.f32 0.7978846, %v2766_v13  ;;  %v2672_v63 = vmul.f32 0.044715, %v6501_v3  ;;  %v6511_v15 = vadd.f32 %v6304_v39, %v2404_v6 }
 0x614   : > { %v2799_v26 = vmul.f32 0.7978846, %v2767_v10  ;;  %v4855_v59 = vpop.eup %4854  ;;  %v2673_v37 = vmul.f32 0.044715, %v6506_v22 }
 0x615   : > { %v2339_v5 = vmul.f32 %v6487_v62, %v2338_v35  ;;  %4860 = vtanh.f32 %v2798_v60  ;;  %v4857_v33 = vpop.eup %4856  ;;  %v2345_v38 = vmul.f32 %v4855_v59, %v6490_v29  ;;  %v2704_v11 = vmul.f32 %v2672_v63, %v6501_v3 }
 0x616   : > { %4862 = vtanh.f32 %v2799_v26  ;;  %v4859_v34 = vpop.eup %4858  ;;  %v2433_v30 = vpack.c.bf16 %v6511_v15, %v6515_v36  ;;  %v2705_v51 = vmul.f32 %v2673_v37, %v6506_v22  ;;  %v2860_v17 = vadd.f32 1.0, %v4857_v33 }
 0x617   : > { %v2343_v25 = vsel %vm6520_vm7, %v6487_v62, %v2339_v5  ;;  %v2346_v23 = vmul.f32 %v4855_v59, %v2345_v38  ;;  %v2736_v55 = vmul.f32 %v2704_v11, %v6501_v3  ;;  %v2861_v24 = vadd.f32 1.0, %v4859_v34 }
 0x618   : > { %v2554_v57 = vpop.f32.mrf.mxu2  ;;  %2571 = vmatmul.bf16.gmra.mxu2 %v2433_v30  ;;  %2620 = vmatmul.bf16.gmra.mxu3 %v2433_v30  ;;  %v2386_v45 = vmul.f32 %v2343_v25, %v6335_v7  ;;  %vm2351_vm8 = vweird.f32 %v4855_v59  ;;  %v2737_v13 = vmul.f32 %v2705_v51, %v6506_v22  ;;  %v2892_v60 = vmul.f32 %v2860_v17, %v2636_v40 }
 0x619   : > { %v6534_v0 = vadd.f32 %v2554_v57, %v6429_v44  ;;  %v2603_v1 = vpop.f32.mrf.mxu3  ;;  %v2347_v42 = vmul.f32 0.5, %v2346_v23  ;;  %v2768_v52 = vadd.f32 %v2736_v55, %v6501_v3  ;;  %vm2352_vm10 = vmor %vm2350_vm9, %vm2351_vm8  ;;  %v2893_v5 = vmul.f32 %v2861_v24, %v2637_v46 }
 0x61a   : > { %v6538_v43 = vadd.f32 %v2603_v1, %v6431_v18  ;;  %v2405_v28 = vmul.f32 %v6290_v53, %v2386_v45  ;;  %v2769_v20 = vadd.f32 %v2737_v13, %v6506_v22 }
 0x61b   : > { %v4861_v62 = vpop.eup %4860  ;;  %v2674_v41 = vmul.f32 0.044715, %v6534_v0  ;;  %v2348_v32 = vsub.f32 1.5, %v2347_v42  ;;  %v2800_v26 = vmul.f32 0.7978846, %v2768_v52 }
 0x61c   : > { %v4863_v9 = vpop.eup %4862  ;;  %v2862_v27 = vadd.f32 1.0, %v4861_v62  ;;  %v2675_v8 = vmul.f32 0.044715, %v6538_v43  ;;  %v2801_v51 = vmul.f32 0.7978846, %v2769_v20  ;;  %v6567_v55 = vadd.f32 %v6304_v39, %v2405_v28 }
 0x61d   : > { %v2863_v10 = vadd.f32 1.0, %v4863_v9  ;;  %v2706_v6 = vmul.f32 %v2674_v41, %v6534_v0  ;;  %v2349_v7 = vmul.f32 %v4855_v59, %v2348_v32  ;;  %4864 = vtanh.f32 %v2800_v26 }
 0x61e   : > { %v2707_v35 = vmul.f32 %v2675_v8, %v6538_v43  ;;  %v2894_v63 = vmul.f32 %v2862_v27, %v2638_v61  ;;  %4866 = vtanh.f32 %v2801_v51  ;;  %v2642_v28 = vmul.f32 0.5, %v6534_v0 }
 0x61f   : > { %v2895_v33 = vmul.f32 %v2863_v10, %v2639_v31  ;;  %v2738_v38 = vmul.f32 %v2706_v6, %v6534_v0  ;;  %v2353_v11 = vsel %vm2352_vm10, %v4855_v59, %v2349_v7 }
 0x620   : > { %v2557_v34 = vpop.f32.mrf.mxu2  ;;  %v2739_v29 = vmul.f32 %v2707_v35, %v6538_v43  ;;  %v2387_v37 = vmul.f32 %v2353_v11, %v6350_v48  ;;  %v2924_v25 = vpack.c.bf16 %v2894_v63, %v2892_v60 }
 0x621   : > { %v6556_v30 = vadd.f32 %v2557_v34, %v6429_v44  ;;  %v2606_v40 = vpop.f32.mrf.mxu3  ;;  %v2925_v23 = vpack.c.bf16 %v2895_v33, %v2893_v5  ;;  %v2770_v59 = vadd.f32 %v2738_v38, %v6534_v0  ;;  %v2640_v5 = vmul.f32 0.5, %v6501_v3 }
 0x622   : > { %v6559_v46 = vadd.f32 %v2606_v40, %v6431_v18  ;;  %v2771_v57 = vadd.f32 %v2739_v29, %v6538_v43  ;;  %3080 = vmatmul.bf16.vlgmr.msra.gmra.mxu0 %v2924_v25  ;;  %v2406_v48 = vmul.f32 %v6290_v53, %v2387_v37  ;;  %v2641_v33 = vmul.f32 0.5, %v6506_v22 }
 0x623   : > { %v2676_v61 = vmul.f32 0.044715, %v6556_v30  ;;  %3129 = vmatmul.bf16.vlgmr.msra.gmra.mxu1 %v2925_v23  ;;  %v2802_v17 = vmul.f32 0.7978846, %v2770_v59  ;;  %v4865_v9 = vpop.eup %4864  ;;  %v2643_v40 = vmul.f32 0.5, %v6538_v43 }
 0x624   : > { %v2677_v1 = vmul.f32 0.044715, %v6559_v46  ;;  %v6571_v42 = vadd.f32 %v6304_v39, %v2406_v48  ;;  %v2803_v62 = vmul.f32 0.7978846, %v2771_v57  ;;  %v4867_v7 = vpop.eup %4866  ;;  %v2864_v60 = vadd.f32 1.0, %v4865_v9 }
 0x625   : > { %v2708_v24 = vmul.f32 %v2676_v61, %v6556_v30  ;;  %4868 = vtanh.f32 %v2802_v17  ;;  %v2865_v38 = vadd.f32 1.0, %v4867_v7 }
 0x626   : > { %v2709_v45 = vmul.f32 %v2677_v1, %v6559_v46  ;;  %v2434_v41 = vpack.c.bf16 %v6571_v42, %v6567_v55  ;;  %4870 = vtanh.f32 %v2803_v62  ;;  %v2896_v59 = vmul.f32 %v2864_v60, %v2640_v5 }
 0x627   : > { %v2740_v52 = vmul.f32 %v2708_v24, %v6556_v30  ;;  %v2897_v48 = vmul.f32 %v2865_v38, %v2641_v33 }
 0x628   : > { %v2559_v27 = vpop.f32.mrf.mxu2  ;;  %v2741_v32 = vmul.f32 %v2709_v45, %v6559_v46  ;;  %2576 = vmatmul.bf16.gmra.mxu2 %v2434_v41  ;;  %2625 = vmatmul.bf16.gmra.mxu3 %v2434_v41 }
 0x629   : > { %v2560_v8 = vadd.f32 %v2559_v27, %v6429_v44  ;;  %v2608_v13 = vpop.f32.mrf.mxu3  ;;  %v2772_v31 = vadd.f32 %v2740_v52, %v6556_v30 }
 0x62a   : > { %v2609_v10 = vadd.f32 %v2608_v13, %v6431_v18  ;;  %v2773_v6 = vadd.f32 %v2741_v32, %v6559_v46  ;;  %v2644_v32 = vmul.f32 0.5, %v6556_v30 }
 0x62b   : > { %v2678_v35 = vmul.f32 0.044715, %v2560_v8  ;;  %v4869_v26 = vpop.eup %4868  ;;  %v2804_v20 = vmul.f32 0.7978846, %v2772_v31  ;;  %v2646_v13 = vmul.f32 0.5, %v2560_v8 }
 0x62c   : > { %v2679_v63 = vmul.f32 0.044715, %v2609_v10  ;;  %v4871_v11 = vpop.eup %4870  ;;  %v2866_v29 = vadd.f32 1.0, %v4869_v26  ;;  %v2805_v23 = vmul.f32 0.7978846, %v2773_v6  ;;  %v2645_v6 = vmul.f32 0.5, %v6559_v46 }
 0x62d   : > { %v2710_v34 = vmul.f32 %v2678_v35, %v2560_v8  ;;  %v2867_v25 = vadd.f32 1.0, %v4871_v11  ;;  %4872 = vtanh.f32 %v2804_v20  ;;  %v2647_v7 = vmul.f32 0.5, %v2609_v10  ;;  %v2179_v11 = vpop.xlane.xlu2 %2178 }
 0x62e   : > { %v2711_v37 = vmul.f32 %v2679_v63, %v2609_v10  ;;  %v2898_v57 = vmul.f32 %v2866_v29, %v2642_v28  ;;  %4874 = vtanh.f32 %v2805_v23 }
 0x62f   : > { %v2742_v61 = vmul.f32 %v2710_v34, %v2560_v8  ;;  %v2899_v51 = vmul.f32 %v2867_v25, %v2643_v40  ;;  %v2196_v34 = vmul.f32 %v2179_v11, %v6158_v4 }
 0x630   : > { %v2743_v3 = vmul.f32 %v2711_v37, %v2609_v10  ;;  %v2926_v1 = vpack.c.bf16 %v2898_v57, %v2896_v59 }
 0x631   : > { %v2774_v22 = vadd.f32 %v2742_v61, %v2560_v8  ;;  %v2927_v17 = vpack.c.bf16 %v2899_v51, %v2897_v48  ;;  %v2212_v28 = vadd.f32 1e-12, %v2196_v34 }
 0x632   : > { %v2775_v24 = vadd.f32 %v2743_v3, %v2609_v10  ;;  %3085 = vmatmul.bf16.gmra.mxu0 %v2926_v1 }
 0x633   : > { %v2806_v0 = vmul.f32 0.7978846, %v2774_v22  ;;  %3134 = vmatmul.bf16.gmra.mxu1 %v2927_v17  ;;  %v4873_v43 = vpop.eup %4872  ;;  %vm2360_vm12 = vweird.f32 %v2212_v28 }
 0x634   : > { %v2807_v62 = vmul.f32 0.7978846, %v2775_v24  ;;  %v4875_v45 = vpop.eup %4874  ;;  %v2868_v41 = vadd.f32 1.0, %v4873_v43 }
 0x635   : > { %4876 = vtanh.f32 %v2806_v0  ;;  %v2869_v9 = vadd.f32 1.0, %v4875_v45 }
 0x636   : > { %4878 = vtanh.f32 %v2807_v62  ;;  %v2900_v60 = vmul.f32 %v2868_v41, %v2644_v32 }
 0x637   : > { %v2901_v63 = vmul.f32 %v2869_v9, %v2645_v6  ;;  %4880 = vrsqrt.f32 %v2212_v28 }
 0x63b   : > { %v4877_v52 = vpop.eup %4876 }
 0x63c   : > { %v4879_v27 = vpop.eup %4878  ;;  %v2870_v31 = vadd.f32 1.0, %v4877_v52 }
 0x63d   : > { %v2871_v35 = vadd.f32 1.0, %v4879_v27  ;;  %v4881_v30 = vpop.eup %4880 }
 0x63e   : > { %v2902_v26 = vmul.f32 %v2870_v31, %v2646_v13  ;;  %v2355_v8 = vmul.f32 %v4881_v30, %v2212_v28  ;;  %vm2361_vm11 = vweird.f32 %v4881_v30 }
 0x63f   : > { %v2903_v5 = vmul.f32 %v2871_v35, %v2647_v7  ;;  %vm2362_vm13 = vmor %vm2360_vm12, %vm2361_vm11 }
 0x640   : > { %v2928_v33 = vpack.c.bf16 %v2902_v26, %v2900_v60  ;;  %v2356_v29 = vmul.f32 %v4881_v30, %v2355_v8 }
 0x641   : > { %v2929_v38 = vpack.c.bf16 %v2903_v5, %v2901_v63 }
 0x642   : > { %3090 = vmatmul.bf16.gmra.mxu0 %v2928_v33  ;;  %v2357_v37 = vmul.f32 0.5, %v2356_v29 }
 0x643   : > { %3139 = vmatmul.bf16.gmra.mxu1 %v2929_v38 }
 0x644   : > { %v2358_v40 = vsub.f32 1.5, %v2357_v37 }
 0x646   : > { %v2359_v23 = vmul.f32 %v4881_v30, %v2358_v40 }
 0x648   : > { %v2363_v61 = vsel %vm2362_vm13, %v4881_v30, %v2359_v23 }
 0x649   : > { %v2388_v3 = vmul.f32 %v2363_v61, %v6359_v58 }
 0x64b   : > { %v2407_v24 = vmul.f32 %v6290_v53, %v2388_v3 }
 0x64d   : > { %v6597_v58 = vadd.f32 %v6304_v39, %v2407_v24 }
 0x662   : > { %v2181_v20 = vpop.xlane.xlu0 %2180 }
 0x663   : > { %v2197_v46 = vmul.f32 %v2181_v20, %v6158_v4 }
 0x665   : > { %v2213_v10 = vadd.f32 1e-12, %v2197_v46 }
 0x667   : > { %4882 = vrsqrt.f32 %v2213_v10  ;;  %vm2370_vm15 = vweird.f32 %v2213_v10 }
 0x66d   : > { %v4883_v25 = vpop.eup %4882 }
 0x66e   : > { %v2365_v59 = vmul.f32 %v4883_v25, %v2213_v10  ;;  %vm2371_vm14 = vweird.f32 %v4883_v25 }
 0x66f   : > { %vm2372_vm0 = vmor %vm2370_vm15, %vm2371_vm14 }
 0x670   : > { %v2366_v57 = vmul.f32 %v4883_v25, %v2365_v59 }
 0x672   : > { %v2367_v48 = vmul.f32 0.5, %v2366_v57 }
 0x674   : > { %v2368_v51 = vsub.f32 1.5, %v2367_v48 }
 0x676   : > { %v2369_v1 = vmul.f32 %v4883_v25, %v2368_v51 }
 0x678   : > { %v2373_v22 = vsel %vm2372_vm0, %v4883_v25, %v2369_v1 }
 0x679   : > { %v2389_v17 = vmul.f32 %v2373_v22, %v6387_v49 }
 0x67a   : > { %v2562_v0 = vpop.f32.mrf.mxu2  ;;  %v2611_v62 = vpop.f32.mrf.mxu3 }
 0x67b   : > { %v2563_v43 = vadd.f32 %v2562_v0, %v6429_v44  ;;  %v2612_v45 = vadd.f32 %v2611_v62, %v6431_v18  ;;  %v2408_v41 = vmul.f32 %v6290_v53, %v2389_v17 }
 0x67d   : > { %v2680_v52 = vmul.f32 0.044715, %v2563_v43  ;;  %v2681_v9 = vmul.f32 0.044715, %v2612_v45  ;;  %v6600_v27 = vadd.f32 %v6304_v39, %v2408_v41 }
 0x67f   : > { %v2712_v32 = vmul.f32 %v2680_v52, %v2563_v43  ;;  %v2713_v49 = vmul.f32 %v2681_v9, %v2612_v45  ;;  %v2435_v13 = vpack.c.bf16 %v6600_v27, %v6597_v58 }
 0x681   : > { %2581 = vmatmul.bf16.gmra.mxu2 %v2435_v13  ;;  %2630 = vmatmul.bf16.gmra.mxu3 %v2435_v13  ;;  %v2744_v31 = vmul.f32 %v2712_v32, %v2563_v43  ;;  %v2745_v6 = vmul.f32 %v2713_v49, %v2612_v45  ;;  %v2648_v13 = vmul.f32 0.5, %v2563_v43 }
 0x682   : > { %v2564_v7 = vpop.f32.mrf.mxu2  ;;  %v2613_v35 = vpop.f32.mrf.mxu3 }
 0x683   : > { %v2565_v53 = vadd.f32 %v2564_v7, %v6429_v44  ;;  %v2614_v60 = vadd.f32 %v2613_v35, %v6431_v18  ;;  %v2776_v26 = vadd.f32 %v2744_v31, %v2563_v43  ;;  %v2777_v63 = vadd.f32 %v2745_v6, %v2612_v45 }
 0x684   : > { %v2649_v7 = vmul.f32 0.5, %v2612_v45 }
 0x685   : > { %v2682_v5 = vmul.f32 0.044715, %v2565_v53  ;;  %v2683_v39 = vmul.f32 0.044715, %v2614_v60  ;;  %v2808_v33 = vmul.f32 0.7978846, %v2776_v26 }
 0x686   : > { %v2809_v34 = vmul.f32 0.7978846, %v2777_v63  ;;  %v2650_v31 = vmul.f32 0.5, %v2565_v53  ;;  %v2651_v63 = vmul.f32 0.5, %v2614_v60 }
 0x687   : > { %v2714_v38 = vmul.f32 %v2682_v5, %v2565_v53  ;;  %v2715_v11 = vmul.f32 %v2683_v39, %v2614_v60  ;;  %4884 = vtanh.f32 %v2808_v33 }
 0x688   : > { %4886 = vtanh.f32 %v2809_v34 }
 0x689   : > { %v2746_v28 = vmul.f32 %v2714_v38, %v2565_v53  ;;  %v2747_v30 = vmul.f32 %v2715_v11, %v2614_v60 }
 0x68a   : > { %v2567_v20 = vpop.f32.mrf.mxu2  ;;  %v2616_v46 = vpop.f32.mrf.mxu3 }
 0x68b   : > { %v2778_v8 = vadd.f32 %v2746_v28, %v2565_v53  ;;  %v2779_v29 = vadd.f32 %v2747_v30, %v2614_v60  ;;  %v6607_v10 = vadd.f32 %v2567_v20, %v6429_v44  ;;  %v6610_v37 = vadd.f32 %v2616_v46, %v6431_v18 }
 0x68d   : > { %v2810_v40 = vmul.f32 0.7978846, %v2778_v8  ;;  %v2811_v25 = vmul.f32 0.7978846, %v2779_v29  ;;  %v2684_v23 = vmul.f32 0.044715, %v6607_v10  ;;  %v4885_v57 = vpop.eup %4884 }
 0x68e   : > { %v2685_v59 = vmul.f32 0.044715, %v6610_v37  ;;  %v4887_v61 = vpop.eup %4886  ;;  %v2872_v24 = vadd.f32 1.0, %v4885_v57 }
 0x68f   : > { %4888 = vtanh.f32 %v2810_v40  ;;  %v2716_v48 = vmul.f32 %v2684_v23, %v6607_v10  ;;  %v2873_v0 = vadd.f32 1.0, %v4887_v61 }
 0x690   : > { %4890 = vtanh.f32 %v2811_v25  ;;  %v2717_v51 = vmul.f32 %v2685_v59, %v6610_v37  ;;  %v2904_v39 = vmul.f32 %v2872_v24, %v2648_v13  ;;  %v6643_v25 = vld [vmem:[%s1048_s21] ss:$0 sm:$0xff] }
 0x691   : > { %v2748_v3 = vmul.f32 %v2716_v48, %v6607_v10  ;;  %v2905_v30 = vmul.f32 %v2873_v0, %v2649_v7 }
 0x692   : > { %v2749_v1 = vmul.f32 %v2717_v51, %v6610_v37  ;;  %v2569_v22 = vpop.f32.mrf.mxu2  ;;  %v2618_v17 = vpop.f32.mrf.mxu3 }
 0x693   : > { %v6619_v41 = vadd.f32 %v2569_v22, %v6429_v44  ;;  %v6622_v52 = vadd.f32 %v2618_v17, %v6431_v18  ;;  %v2780_v9 = vadd.f32 %v2748_v3, %v6607_v10 }
 0x694   : > { %v2781_v32 = vadd.f32 %v2749_v1, %v6610_v37 }
 0x695   : > { %v4889_v62 = vpop.eup %4888  ;;  %v2686_v35 = vmul.f32 0.044715, %v6619_v41  ;;  %v2687_v26 = vmul.f32 0.044715, %v6622_v52  ;;  %v2812_v38 = vmul.f32 0.7978846, %v2780_v9 }
 0x696   : > { %v4891_v49 = vpop.eup %4890  ;;  %v2874_v6 = vadd.f32 1.0, %v4889_v62  ;;  %v2813_v11 = vmul.f32 0.7978846, %v2781_v32 }
 0x697   : > { %v2875_v5 = vadd.f32 1.0, %v4891_v49  ;;  %v2718_v34 = vmul.f32 %v2686_v35, %v6619_v41  ;;  %v2719_v28 = vmul.f32 %v2687_v26, %v6622_v52  ;;  %4892 = vtanh.f32 %v2812_v38 }
 0x698   : > { %v2906_v33 = vmul.f32 %v2874_v6, %v2650_v31  ;;  %4894 = vtanh.f32 %v2813_v11 }
 0x699   : > { %v2907_v43 = vmul.f32 %v2875_v5, %v2651_v63  ;;  %v2750_v45 = vmul.f32 %v2718_v34, %v6619_v41  ;;  %v2751_v29 = vmul.f32 %v2719_v28, %v6622_v52  ;;  %v2652_v34 = vmul.f32 0.5, %v6607_v10 }
 0x69a   : > { %v2930_v53 = vpack.c.bf16 %v2906_v33, %v2904_v39  ;;  %v2653_v28 = vmul.f32 0.5, %v6610_v37 }
 0x69b   : > { %v2931_v8 = vpack.c.bf16 %v2907_v43, %v2905_v30  ;;  %v2572_v60 = vpop.f32.mrf.mxu2  ;;  %v2621_v20 = vpop.f32.mrf.mxu3  ;;  %v2782_v23 = vadd.f32 %v2750_v45, %v6619_v41  ;;  %v2783_v59 = vadd.f32 %v2751_v29, %v6622_v52  ;;  %v2655_v45 = vmul.f32 0.5, %v6622_v52 }
 0x69c   : > { %3095 = vmatmul.bf16.gmra.mxu0 %v2930_v53  ;;  %v6633_v46 = vadd.f32 %v2572_v60, %v6429_v44  ;;  %v6636_v40 = vadd.f32 %v2621_v20, %v6431_v18  ;;  %v2654_v53 = vmul.f32 0.5, %v6619_v41 }
 0x69d   : > { %3144 = vmatmul.bf16.gmra.mxu1 %v2931_v8  ;;  %v2814_v48 = vmul.f32 0.7978846, %v2782_v23  ;;  %v2815_v1 = vmul.f32 0.7978846, %v2783_v59  ;;  %v4893_v22 = vpop.eup %4892 }
 0x69e   : > { %v2688_v57 = vmul.f32 0.044715, %v6633_v46  ;;  %v2689_v61 = vmul.f32 0.044715, %v6636_v40  ;;  %v4895_v62 = vpop.eup %4894  ;;  %v2876_v63 = vadd.f32 1.0, %v4893_v22 }
 0x69f   : > { %v3081_v51 = vpop.f32.mrf.mxu0  ;;  %4896 = vtanh.f32 %v2814_v48  ;;  %v2877_v5 = vadd.f32 1.0, %v4895_v62 }
 0x6a0   : > { %v3130_v3 = vpop.f32.mrf.mxu1  ;;  %v2720_v17 = vmul.f32 %v2688_v57, %v6633_v46  ;;  %v2721_v24 = vmul.f32 %v2689_v61, %v6636_v40  ;;  %v3082_v0 = vadd.f32 %v6643_v25, %v3081_v51  ;;  %4898 = vtanh.f32 %v2815_v1 }
 0x6a1   : > { %v2908_v57 = vmul.f32 %v2876_v63, %v2652_v34  ;;  %v2909_v61 = vmul.f32 %v2877_v5, %v2653_v28 }
 0x6a2   : > { %v3131_v9 = vadd.f32 %v3130_v3, %v3082_v0  ;;  %v2752_v32 = vmul.f32 %v2720_v17, %v6633_v46  ;;  %v2753_v49 = vmul.f32 %v2721_v24, %v6636_v40 }
 0x6a3   : > { %v2574_v13 = vpop.f32.mrf.mxu2  ;;  %v2623_v31 = vpop.f32.mrf.mxu3 }
 0x6a4   : > { %v6655_v6 = vadd.f32 %v2574_v13, %v6429_v44  ;;  %v6658_v7 = vadd.f32 %v2623_v31, %v6431_v18  ;;  %v6661_v35 = vadd.f32 %v3131_v9, %v6313_v56  ;;  %v2784_v26 = vadd.f32 %v2752_v32, %v6633_v46 }
 0x6a5   : > { %v2785_v39 = vadd.f32 %v2753_v49, %v6636_v40  ;;  %v4897_v33 = vpop.eup %4896 }
 0x6a6   : > { %v2690_v38 = vmul.f32 0.044715, %v6655_v6  ;;  %v2691_v11 = vmul.f32 0.044715, %v6658_v7  ;;  %3188 = vadd.xlane.f32.xlu1 %v6661_v35  ;;  %v4899_v30 = vpop.eup %4898  ;;  %v2878_v8 = vadd.f32 1.0, %v4897_v33 }
 0x6a7   : > { %v3083_v56 = vpop.f32.mrf.mxu0  ;;  %v2816_v29 = vmul.f32 0.7978846, %v2784_v26  ;;  %v2879_v59 = vadd.f32 1.0, %v4899_v30  ;;  %v2817_v37 = vmul.f32 0.7978846, %v2785_v39 }
 0x6a8   : > { %v3132_v43 = vpop.f32.mrf.mxu1  ;;  %v2722_v60 = vmul.f32 %v2690_v38, %v6655_v6  ;;  %v2723_v20 = vmul.f32 %v2691_v11, %v6658_v7  ;;  %v3084_v23 = vadd.f32 %v6643_v25, %v3083_v56  ;;  %v2910_v10 = vmul.f32 %v2878_v8, %v2654_v53 }
 0x6a9   : > { %v2911_v51 = vmul.f32 %v2879_v59, %v2655_v45  ;;  %4900 = vtanh.f32 %v2816_v29 }
 0x6aa   : > { %v3133_v48 = vadd.f32 %v3132_v43, %v3084_v23  ;;  %v2754_v3 = vmul.f32 %v2722_v60, %v6655_v6  ;;  %v2755_v41 = vmul.f32 %v2723_v20, %v6658_v7  ;;  %v2932_v22 = vpack.c.bf16 %v2910_v10, %v2908_v57 }
 0x6ab   : > { %v2577_v1 = vpop.f32.mrf.mxu2  ;;  %v2626_v52 = vpop.f32.mrf.mxu3  ;;  %v2933_v0 = vpack.c.bf16 %v2911_v51, %v2909_v61  ;;  %4902 = vtanh.f32 %v2817_v37  ;;  %v2656_v57 = vmul.f32 0.5, %v6633_v46  ;;  %v2658_v37 = vmul.f32 0.5, %v6655_v6 }
 0x6ac   : > { %v6678_v17 = vadd.f32 %v2577_v1, %v6429_v44  ;;  %v6681_v24 = vadd.f32 %v2626_v52, %v6431_v18  ;;  %v6684_v62 = vadd.f32 %v3133_v48, %v6316_v12  ;;  %3100 = vmatmul.bf16.gmra.mxu0 %v2932_v22  ;;  %v2786_v9 = vadd.f32 %v2754_v3, %v6655_v6 }
 0x6ad   : > { %v2787_v32 = vadd.f32 %v2755_v41, %v6658_v7  ;;  %3149 = vmatmul.bf16.gmra.mxu1 %v2933_v0  ;;  %v2657_v48 = vmul.f32 0.5, %v6636_v40 }
 0x6ae   : > { %v2692_v49 = vmul.f32 0.044715, %v6678_v17  ;;  %v2693_v13 = vmul.f32 0.044715, %v6681_v24  ;;  %3190 = vadd.xlane.f32.xlu2 %v6684_v62  ;;  %v2818_v26 = vmul.f32 0.7978846, %v2786_v9 }
 0x6af   : > { %v3086_v31 = vpop.f32.mrf.mxu0  ;;  %v2819_v63 = vmul.f32 0.7978846, %v2787_v32  ;;  %v4901_v38 = vpop.eup %4900  ;;  %v2659_v32 = vmul.f32 0.5, %v6658_v7 }
 0x6b0   : > { %v2724_v5 = vmul.f32 %v2692_v49, %v6678_v17  ;;  %v2725_v12 = vmul.f32 %v2693_v13, %v6681_v24  ;;  %v3087_v39 = vadd.f32 %v6643_v25, %v3086_v31  ;;  %v3135_v33 = vpop.f32.mrf.mxu1  ;;  %4904 = vtanh.f32 %v2818_v26 }
 0x6b1   : > { %4906 = vtanh.f32 %v2819_v63  ;;  %v4903_v43 = vpop.eup %4902  ;;  %v2880_v29 = vadd.f32 1.0, %v4901_v38 }
 0x6b2   : > { %v3136_v11 = vadd.f32 %v3135_v33, %v3087_v39  ;;  %v2756_v30 = vmul.f32 %v2724_v5, %v6678_v17  ;;  %v2757_v56 = vmul.f32 %v2725_v12, %v6681_v24  ;;  %v2881_v51 = vadd.f32 1.0, %v4903_v43 }
 0x6b3   : > { %v2579_v34 = vpop.f32.mrf.mxu2  ;;  %v2628_v28 = vpop.f32.mrf.mxu3  ;;  %v2912_v9 = vmul.f32 %v2880_v29, %v2656_v57 }
 0x6b4   : > { %v2580_v53 = vadd.f32 %v2579_v34, %v6429_v44  ;;  %v2629_v8 = vadd.f32 %v2628_v28, %v6431_v18  ;;  %v6699_v45 = vadd.f32 %v3136_v11, %v6338_v54  ;;  %v2788_v60 = vadd.f32 %v2756_v30, %v6678_v17 }
 0x6b5   : > { %v2789_v20 = vadd.f32 %v2757_v56, %v6681_v24  ;;  %v2913_v63 = vmul.f32 %v2881_v51, %v2657_v48  ;;  %v2661_v51 = vmul.f32 0.5, %v6681_v24 }
 0x6b6   : > { %v2694_v23 = vmul.f32 0.044715, %v2580_v53  ;;  %v2695_v59 = vmul.f32 0.044715, %v2629_v8  ;;  %3192 = vadd.xlane.f32.xlu0 %v6699_v45  ;;  %v4905_v10 = vpop.eup %4904  ;;  %v2820_v54 = vmul.f32 0.7978846, %v2788_v60 }
 0x6b7   : > { %v3088_v61 = vpop.f32.mrf.mxu0  ;;  %v4907_v3 = vpop.eup %4906  ;;  %v2882_v0 = vadd.f32 1.0, %v4905_v10  ;;  %v2821_v46 = vmul.f32 0.7978846, %v2789_v20  ;;  %v2660_v10 = vmul.f32 0.5, %v6678_v17 }
 0x6b8   : > { %v2726_v41 = vmul.f32 %v2694_v23, %v2580_v53  ;;  %v2727_v1 = vmul.f32 %v2695_v59, %v2629_v8  ;;  %v3089_v52 = vadd.f32 %v6643_v25, %v3088_v61  ;;  %v3137_v22 = vpop.f32.mrf.mxu1  ;;  %v2883_v49 = vadd.f32 1.0, %v4907_v3 }
 0x6b9   : > { %v2914_v31 = vmul.f32 %v2882_v0, %v2658_v37  ;;  %4908 = vtanh.f32 %v2820_v54  ;;  %v2662_v61 = vmul.f32 0.5, %v2580_v53  ;;  %v2663_v54 = vmul.f32 0.5, %v2629_v8 }
 0x6ba   : > { %v3138_v13 = vadd.f32 %v3137_v22, %v3089_v52  ;;  %v2758_v26 = vmul.f32 %v2726_v41, %v2580_v53  ;;  %v2759_v6 = vmul.f32 %v2727_v1, %v2629_v8  ;;  %v2915_v40 = vmul.f32 %v2883_v49, %v2659_v32 }
 0x6bb   : > { %v2934_v5 = vpack.c.bf16 %v2914_v31, %v2912_v9  ;;  %4910 = vtanh.f32 %v2821_v46 }
 0x6bc   : > { %v6710_v12 = vadd.f32 %v3138_v13, %v6341_v21  ;;  %v2790_v39 = vadd.f32 %v2758_v26, %v2580_v53  ;;  %v2791_v33 = vadd.f32 %v2759_v6, %v2629_v8  ;;  %v2935_v38 = vpack.c.bf16 %v2915_v40, %v2913_v63 }
 0x6bd   : > { %3105 = vmatmul.bf16.gmra.mxu0 %v2934_v5 }
 0x6be   : > { %3194 = vadd.xlane.f32.xlu1 %v6710_v12  ;;  %v2822_v7 = vmul.f32 0.7978846, %v2790_v39  ;;  %v2823_v11 = vmul.f32 0.7978846, %v2791_v33  ;;  %3154 = vmatmul.bf16.gmra.mxu1 %v2935_v38 }
 0x6bf   : > { %v3091_v34 = vpop.f32.mrf.mxu0  ;;  %v4909_v56 = vpop.eup %4908 }
 0x6c0   : > { %v3092_v28 = vadd.f32 %v6643_v25, %v3091_v34  ;;  %v3140_v30 = vpop.f32.mrf.mxu1  ;;  %4912 = vtanh.f32 %v2822_v7  ;;  %v2884_v60 = vadd.f32 1.0, %v4909_v56 }
 0x6c1   : > { %4914 = vtanh.f32 %v2823_v11  ;;  %v4911_v21 = vpop.eup %4910 }
 0x6c2   : > { %v3141_v43 = vadd.f32 %v3140_v30, %v3092_v28  ;;  %v2885_v23 = vadd.f32 1.0, %v4911_v21 }
 0x6c4   : > { %v6715_v29 = vadd.f32 %v3141_v43, %v6362_v14  ;;  %v2916_v14 = vmul.f32 %v2884_v60, %v2660_v10  ;;  %v2917_v22 = vmul.f32 %v2885_v23, %v2661_v51 }
 0x6c6   : > { %v4913_v20 = vpop.eup %4912  ;;  %3196 = vadd.xlane.f32.xlu2 %v6715_v29 }
 0x6c7   : > { %v4915_v59 = vpop.eup %4914  ;;  %v3093_v57 = vpop.f32.mrf.mxu0  ;;  %v2886_v37 = vadd.f32 1.0, %v4913_v20 }
 0x6c8   : > { %v3094_v48 = vadd.f32 %v6643_v25, %v3093_v57  ;;  %v2887_v3 = vadd.f32 1.0, %v4915_v59  ;;  %v3142_v41 = vpop.f32.mrf.mxu1 }
 0x6c9   : > { %v2918_v1 = vmul.f32 %v2886_v37, %v2662_v61 }
 0x6ca   : > { %v3143_v52 = vadd.f32 %v3142_v41, %v3094_v48  ;;  %v2919_v0 = vmul.f32 %v2887_v3, %v2663_v54 }
 0x6cb   : > { %v2936_v9 = vpack.c.bf16 %v2918_v1, %v2916_v14 }
 0x6cc   : > { %v2937_v32 = vpack.c.bf16 %v2919_v0, %v2917_v22  ;;  %v6722_v49 = vadd.f32 %v3143_v52, %v6365_v2 }
 0x6cd   : > { %3110 = vmatmul.bf16.gmra.mxu0 %v2936_v9 }
 0x6ce   : > { %3198 = vadd.xlane.f32.xlu0 %v6722_v49  ;;  %3159 = vmatmul.bf16.gmra.mxu1 %v2937_v32 }
 0x704   : > { %v2582_v17 = vpop.f32.mrf.mxu2  ;;  %v2631_v53 = vpop.f32.mrf.mxu3 }
 0x705   : > { %v2583_v24 = vadd.f32 %v2582_v17, %v6429_v44  ;;  %v2632_v8 = vadd.f32 %v2631_v53, %v6431_v18 }
 0x707   : > { %v2696_v46 = vmul.f32 0.044715, %v2583_v24  ;;  %v2697_v13 = vmul.f32 0.044715, %v2632_v8  ;;  %v2664_v14 = vmul.f32 0.5, %v2583_v24  ;;  %v2665_v0 = vmul.f32 0.5, %v2632_v8 }
 0x709   : > { %v2728_v31 = vmul.f32 %v2696_v46, %v2583_v24  ;;  %v2729_v26 = vmul.f32 %v2697_v13, %v2632_v8 }
 0x70b   : > { %v2760_v6 = vmul.f32 %v2728_v31, %v2583_v24  ;;  %v2761_v63 = vmul.f32 %v2729_v26, %v2632_v8 }
 0x70c   : > { %v2584_v40 = vpop.f32.mrf.mxu2  ;;  %v2633_v5 = vpop.f32.mrf.mxu3 }
 0x70d   : > { %v2792_v2 = vadd.f32 %v2760_v6, %v2583_v24  ;;  %v2585_v39 = vadd.f32 %v2584_v40, %v6429_v44  ;;  %v2634_v33 = vadd.f32 %v2633_v5, %v6431_v18  ;;  %v2793_v38 = vadd.f32 %v2761_v63, %v2632_v8 }
 0x70f   : > { %v2698_v7 = vmul.f32 0.044715, %v2585_v39  ;;  %v2699_v11 = vmul.f32 0.044715, %v2634_v33  ;;  %v2824_v34 = vmul.f32 0.7978846, %v2792_v2 }
 0x710   : > { %v2825_v56 = vmul.f32 0.7978846, %v2793_v38  ;;  %v2666_v1 = vmul.f32 0.5, %v2585_v39  ;;  %v2667_v9 = vmul.f32 0.5, %v2634_v33 }
 0x711   : > { %v2730_v28 = vmul.f32 %v2698_v7, %v2585_v39  ;;  %v2731_v30 = vmul.f32 %v2699_v11, %v2634_v33  ;;  %4916 = vtanh.f32 %v2824_v34 }
 0x712   : > { %4918 = vtanh.f32 %v2825_v56 }
 0x713   : > { %v2762_v43 = vmul.f32 %v2730_v28, %v2585_v39  ;;  %v2763_v21 = vmul.f32 %v2731_v30, %v2634_v33 }
 0x715   : > { %v2794_v60 = vadd.f32 %v2762_v43, %v2585_v39  ;;  %v2795_v20 = vadd.f32 %v2763_v21, %v2634_v33 }
 0x717   : > { %v2826_v23 = vmul.f32 0.7978846, %v2794_v60  ;;  %v2827_v59 = vmul.f32 0.7978846, %v2795_v20  ;;  %v4917_v10 = vpop.eup %4916 }
 0x718   : > { %v4919_v61 = vpop.eup %4918  ;;  %v2888_v48 = vadd.f32 1.0, %v4917_v10 }
 0x719   : > { %4920 = vtanh.f32 %v2826_v23  ;;  %v3096_v57 = vpop.f32.mrf.mxu0  ;;  %v2889_v3 = vadd.f32 1.0, %v4919_v61  ;;  %v3189_v61 = vpop.xlane.xlu1 %3188 }
 0x71a   : > { %v3097_v44 = vadd.f32 %v6643_v25, %v3096_v57  ;;  %v3145_v18 = vpop.f32.mrf.mxu1  ;;  %4922 = vtanh.f32 %v2827_v59  ;;  %v2920_v46 = vmul.f32 %v2888_v48, %v2664_v14 }
 0x71b   : > { %v2921_v31 = vmul.f32 %v2889_v3, %v2665_v0 }
 0x71c   : > { %v3146_v37 = vadd.f32 %v3145_v18, %v3097_v44 }
 0x71e   : > { %v6731_v51 = vadd.f32 %v3146_v37, %v6402_v47 }
 0x71f   : > { %v4921_v54 = vpop.eup %4920 }
 0x720   : > { %v4923_v41 = vpop.eup %4922  ;;  %v2890_v52 = vadd.f32 1.0, %v4921_v54  ;;  %3200 = vadd.xlane.f32.xlu1 %v6731_v51 }
 0x721   : > { %v3098_v22 = vpop.f32.mrf.mxu0  ;;  %v2891_v32 = vadd.f32 1.0, %v4923_v41 }
 0x722   : > { %v3099_v17 = vadd.f32 %v6643_v25, %v3098_v22  ;;  %v3147_v53 = vpop.f32.mrf.mxu1  ;;  %v2922_v13 = vmul.f32 %v2890_v52, %v2666_v1 }
 0x723   : > { %v2923_v47 = vmul.f32 %v2891_v32, %v2667_v9 }
 0x724   : > { %v3148_v26 = vadd.f32 %v3147_v53, %v3099_v17  ;;  %v2938_v6 = vpack.c.bf16 %v2922_v13, %v2920_v46 }
 0x725   : > { %v2939_v63 = vpack.c.bf16 %v2923_v47, %v2921_v31 }
 0x726   : > { %3115 = vmatmul.bf16.vlgmr.msrb.gmra.mxu2 %v2938_v6  ;;  %v6736_v24 = vadd.f32 %v3148_v26, %v6405_v16 }
 0x727   : > { %3164 = vmatmul.bf16.gmra.mxu1 %v2939_v63 }
 0x728   : > { %3202 = vadd.xlane.f32.xlu2 %v6736_v24 }
 0x729   : > { %v3101_v8 = vpop.f32.mrf.mxu0  ;;  %v3193_v63 = vpop.xlane.xlu0 %3192 }
 0x72a   : > { %v3102_v40 = vadd.f32 %v6643_v25, %v3101_v8  ;;  %v3150_v5 = vpop.f32.mrf.mxu1 }
 0x72c   : > { %v3151_v2 = vadd.f32 %v3150_v5, %v3102_v40 }
 0x72e   : > { %v6741_v39 = vadd.f32 %v3151_v2, %v6457_v19 }
 0x730   : > { %3204 = vadd.xlane.f32.xlu0 %v6741_v39 }
 0x731   : > { %v3103_v33 = vpop.f32.mrf.mxu0 }
 0x732   : > { %v3104_v38 = vadd.f32 %v6643_v25, %v3103_v33  ;;  %v3152_v7 = vpop.f32.mrf.mxu1 }
 0x734   : > { %v3153_v11 = vadd.f32 %v3152_v7, %v3104_v38 }
 0x736   : > { %v3179_v16 = vadd.f32 %v3153_v11, %v6460_v50 }
 0x738   : > { %3206 = vadd.xlane.f32.xlu1 %v3179_v16 }
 0x73a   : > { %v3106_v34 = vpop.f32.mrf.mxu0 }
 0x73b   : > { %v3107_v28 = vadd.f32 %v6643_v25, %v3106_v34  ;;  %v3155_v30 = vpop.f32.mrf.mxu1 }
 0x73d   : > { %v3156_v56 = vadd.f32 %v3155_v30, %v3107_v28 }
 0x73f   : > { %v6748_v43 = vadd.f32 %v3156_v56, %v6515_v36 }
 0x741   : > { %3208 = vadd.xlane.f32.xlu2 %v6748_v43 }
 0x742   : > { %v3108_v19 = vpop.f32.mrf.mxu0 }
 0x743   : > { %v3109_v21 = vadd.f32 %v6643_v25, %v3108_v19  ;;  %v3157_v60 = vpop.f32.mrf.mxu1 }
 0x745   : > { %v3158_v20 = vadd.f32 %v3157_v60, %v3109_v21 }
 0x747   : > { %v6753_v23 = vadd.f32 %v3158_v20, %v6511_v15  ;;  %v3220_v15 = vmul.f32 %v3189_v61, %v6158_v4 }
 0x749   : > { %3210 = vadd.xlane.f32.xlu0 %v6753_v23  ;;  %v6768_v3 = vsub.f32 %v6661_v35, %v3220_v15 }
 0x74a   : > { %v3111_v50 = vpop.f32.mrf.mxu0 }
 0x74b   : > { %v3112_v59 = vadd.f32 %v6643_v25, %v3111_v50  ;;  %v3160_v57 = vpop.f32.mrf.mxu1  ;;  %v3252_v14 = vmul.f32 %v6768_v3, %v6768_v3 }
 0x74d   : > { %v3161_v44 = vadd.f32 %v3160_v57, %v3112_v59 }
 0x74f   : > { %v6758_v36 = vadd.f32 %v3161_v44, %v6567_v55  ;;  %v3195_v55 = vpop.xlane.xlu1 %3194 }
 0x750   : > { %v3223_v41 = vmul.f32 %v3195_v55, %v6158_v4 }
 0x751   : > { %3212 = vadd.xlane.f32.xlu1 %v6758_v36 }
 0x752   : > { %v3113_v18 = vpop.f32.mrf.mxu0  ;;  %v6774_v1 = vsub.f32 %v6710_v12, %v3223_v41  ;;  %v3191_v12 = vpop.xlane.xlu2 %3190 }
 0x753   : > { %v3114_v10 = vadd.f32 %v6643_v25, %v3113_v18  ;;  %v3162_v37 = vpop.f32.mrf.mxu1  ;;  %v3221_v13 = vmul.f32 %v3191_v12, %v6158_v4 }
 0x754   : > { %v3255_v52 = vmul.f32 %v6774_v1, %v6774_v1 }
 0x755   : > { %v3163_v48 = vadd.f32 %v3162_v37, %v3114_v10  ;;  %v6794_v6 = vsub.f32 %v6684_v62, %v3221_v13 }
 0x757   : > { %v6764_v54 = vadd.f32 %v3163_v48, %v6571_v42  ;;  %v3253_v62 = vmul.f32 %v6794_v6, %v6794_v6 }
 0x759   : > { %3214 = vadd.xlane.f32.xlu2 %v6764_v54 }
 0x75a   : > { %v3197_v5 = vpop.xlane.xlu2 %3196 }
 0x75b   : > { %v3224_v38 = vmul.f32 %v3197_v5, %v6158_v4 }
 0x75d   : > { %v6811_v11 = vsub.f32 %v6715_v29, %v3224_v38 }
 0x761   : > { %3268 = vadd.xlane.f32.xlu2 %v3252_v14 }
 0x769   : > { %3274 = vadd.xlane.f32.xlu2 %v3255_v52 }
 0x793   : > { %v3201_v42 = vpop.xlane.xlu1 %3200 }
 0x794   : > { %v3226_v22 = vmul.f32 %v3201_v42, %v6158_v4 }
 0x796   : > { %v6780_v35 = vsub.f32 %v6731_v51, %v3226_v22 }
 0x798   : > { %v3258_v0 = vmul.f32 %v6780_v35, %v6780_v35 }
 0x79a   : > { %3280 = vadd.xlane.f32.xlu2 %v3258_v0 }
 0x79b   : > { %v3203_v34 = vpop.xlane.xlu2 %3202 }
 0x79c   : > { %v3227_v30 = vmul.f32 %v3203_v34, %v6158_v4 }
 0x79e   : > { %v6823_v29 = vsub.f32 %v6736_v24, %v3227_v30 }
 0x7a0   : > { %v3259_v59 = vmul.f32 %v6823_v29, %v6823_v29 }
 0x7a4   : > { %v3165_v9 = vpop.f32.mrf.mxu1 }
 0x7a9   : > { %v3116_v32 = vpop.f32.mrf.mxu2 }
 0x7aa   : > { %v3117_v17 = vadd.f32 %v6643_v25, %v3116_v32 }
 0x7ab   : > { %v3207_v46 = vpop.xlane.xlu1 %3206 }
 0x7ac   : > { %v3166_v53 = vadd.f32 %v3165_v9, %v3117_v17  ;;  %v3229_v31 = vmul.f32 %v3207_v46, %v6158_v4  ;;  %v3167_v2 = vpop.f32.mrf.mxu1 }
 0x7ae   : > { %v6788_v47 = vadd.f32 %v3166_v53, %v6597_v58  ;;  %v6790_v51 = vsub.f32 %v3179_v16, %v3229_v31  ;;  %v3222_v58 = vmul.f32 %v3193_v63, %v6158_v4  ;;  %v3199_v16 = vpop.xlane.xlu0 %3198 }
 0x7af   : > { %v3225_v28 = vmul.f32 %v3199_v16, %v6158_v4 }
 0x7b0   : > { %3216 = vadd.xlane.f32.xlu0 %v6788_v47  ;;  %v3261_v40 = vmul.f32 %v6790_v51, %v6790_v51 }
 0x7b1   : > { %v3118_v26 = vpop.f32.mrf.mxu2 }
 0x7b2   : > { %v3119_v8 = vadd.f32 %v6643_v25, %v3118_v26  ;;  %3286 = vadd.xlane.f32.xlu2 %v3261_v40  ;;  %v6808_v25 = vsub.f32 %v6699_v45, %v3222_v58  ;;  %v6820_v45 = vsub.f32 %v6722_v49, %v3225_v28  ;;  %v6866_v26 = vld [vmem:[%s1051_s5] ss:$0 sm:$0xff] }
 0x7b3   : > { %v6873_v40 = vld [vmem:[%s1054_s20] ss:$0 sm:$0xff]  ;;  %s7294_s20 = sld [smem:[#allocation29_spill]] }
 0x7b4   : > { %v3168_v33 = vadd.f32 %v3167_v2, %v3119_v8  ;;  %v3254_v56 = vmul.f32 %v6808_v25, %v6808_v25  ;;  %v3209_v21 = vpop.xlane.xlu2 %3208  ;;  %v3257_v57 = vmul.f32 %v6820_v45, %v6820_v45 }
 0x7b5   : > { %v3230_v20 = vmul.f32 %v3209_v21, %v6158_v4 }
 0x7b6   : > { %v6802_v7 = vadd.f32 %v3168_v33, %v6600_v27  ;;  %v3256_v27 = vmul.f32 %v6811_v11, %v6811_v11  ;;  %v3205_v19 = vpop.xlane.xlu0 %3204 }
 0x7b7   : > { %v3228_v60 = vmul.f32 %v3205_v19, %v6158_v4  ;;  %v6839_v18 = vsub.f32 %v6748_v43, %v3230_v20 }
 0x7b8   : > { %3218 = vadd.xlane.f32.xlu1 %v6802_v7  ;;  %3270 = vadd.xlane.f32.xlu0 %v3253_v62 }
 0x7b9   : > { %v6836_v24 = vsub.f32 %v6741_v39, %v3228_v60  ;;  %v3262_v15 = vmul.f32 %v6839_v18, %v6839_v18  ;;  %p4467_p3 = scmp.ne.s32.totalorder %s7294_s20, 1 }
 0x7ba   : > { %s7295_s5 = sld [smem:[#allocation40_spill]] (!%p4467_p3) }
 0x7bb   : > { %s7296_s10 = sld [smem:[#allocation44_spill]] (!%p4467_p3) }
 0x7bc   : > { %s7298_s27 = sld [smem:[#allocation58_spill]] (!%p4467_p3) }
 0x7bd   : > { %s7299_s9 = sld [smem:[#allocation59_spill]] (!%p4467_p3) }
 0x7be   : > { %v3211_v10 = vpop.xlane.xlu0 %3210  ;;  %s7300_s19 = sld [smem:[#allocation60_spill]] (!%p4467_p3) }
 0x7bf   : > { %v3231_v37 = vmul.f32 %v3211_v10, %v6158_v4 }
 0x7c0   : > { %3276 = vadd.xlane.f32.xlu0 %v3256_v27  ;;  %3272 = vadd.xlane.f32.xlu1 %v3254_v56 }
 0x7c1   : > { %v6850_v43 = vsub.f32 %v6753_v23, %v3231_v37 }
 0x7c3   : > { %v3263_v52 = vmul.f32 %v6850_v43, %v6850_v43 }
 0x7c4   : > { %v3213_v50 = vpop.xlane.xlu1 %3212 }
 0x7c5   : > { %v3232_v44 = vmul.f32 %v3213_v50, %v6158_v4 }
 0x7c7   : > { %v6833_v49 = vsub.f32 %v6758_v36, %v3232_v44  ;;  %v3260_v36 = vmul.f32 %v6836_v24, %v6836_v24 }
 0x7c8   : > { %3282 = vadd.xlane.f32.xlu0 %v3259_v59  ;;  %3278 = vadd.xlane.f32.xlu1 %v3257_v57 }
 0x7c9   : > { %v3264_v61 = vmul.f32 %v6833_v49, %v6833_v49 }
 0x7cb   : > { %3292 = vadd.xlane.f32.xlu2 %v3264_v61 }
 0x7cc   : > { %v3215_v48 = vpop.xlane.xlu2 %3214 }
 0x7cd   : > { %v3233_v39 = vmul.f32 %v3215_v48, %v6158_v4 }
 0x7cf   : > { %v6853_v55 = vsub.f32 %v6764_v54, %v3233_v39 }
 0x7d0   : > { %3288 = vadd.xlane.f32.xlu0 %v3262_v15  ;;  %3284 = vadd.xlane.f32.xlu1 %v3260_v36 }
 0x7d1   : > { %v3265_v14 = vmul.f32 %v6853_v55, %v6853_v55 }
 0x7d4   : > { %v3269_v41 = vpop.xlane.xlu2 %3268 }
 0x7d5   : > { %v3300_v42 = vmul.f32 %v3269_v41, %v6158_v4 }
 0x7d7   : > { %v3316_v22 = vadd.f32 1e-12, %v3300_v42 }
 0x7d8   : > { %3294 = vadd.xlane.f32.xlu0 %v3265_v14  ;;  %3290 = vadd.xlane.f32.xlu1 %v3263_v52 }
 0x7d9   : > { %4924 = vrsqrt.f32 %v3316_v22  ;;  %vm3338_vm2 = vweird.f32 %v3316_v22 }
 0x7dc   : > { %v3275_v0 = vpop.xlane.xlu2 %3274 }
 0x7dd   : > { %v3303_v23 = vmul.f32 %v3275_v0, %v6158_v4 }
 0x7df   : > { %v4925_v9 = vpop.eup %4924  ;;  %v3319_v54 = vadd.f32 1e-12, %v3303_v23 }
 0x7e0   : > { %v3333_v32 = vmul.f32 %v4925_v9, %v3316_v22  ;;  %vm3339_vm1 = vweird.f32 %v4925_v9 }
 0x7e1   : > { %4926 = vrsqrt.f32 %v3319_v54  ;;  %vm3340_vm3 = vmor %vm3338_vm2, %vm3339_vm1  ;;  %vm3368_vm5 = vweird.f32 %v3319_v54 }
 0x7e2   : > { %v3334_v17 = vmul.f32 %v4925_v9, %v3333_v32 }
 0x7e4   : > { %v3335_v12 = vmul.f32 0.5, %v3334_v17 }
 0x7e6   : > { %v3336_v53 = vsub.f32 1.5, %v3335_v12 }
 0x7e7   : > { %v4927_v46 = vpop.eup %4926 }
 0x7e8   : > { %v3337_v13 = vmul.f32 %v4925_v9, %v3336_v53  ;;  %v3363_v31 = vmul.f32 %v4927_v46, %v3319_v54  ;;  %vm3369_vm4 = vweird.f32 %v4927_v46 }
 0x7e9   : > { %vm3370_vm6 = vmor %vm3368_vm5, %vm3369_vm4 }
 0x7ea   : > { %v3341_v63 = vsel %vm3340_vm3, %v4925_v9, %v3337_v13  ;;  %v3364_v8 = vmul.f32 %v4927_v46, %v3363_v31 }
 0x7eb   : > { %v3492_v5 = vmul.f32 %v3341_v63, %v6768_v3 }
 0x7ec   : > { %v3365_v2 = vmul.f32 0.5, %v3364_v8 }
 0x7ed   : > { %v3511_v33 = vmul.f32 %v6866_v26, %v3492_v5 }
 0x7ee   : > { %v3366_v58 = vsub.f32 1.5, %v3365_v2 }
 0x7ef   : > { %v6878_v38 = vadd.f32 %v6873_v40, %v3511_v33 }
 0x7f0   : > { %v3367_v62 = vmul.f32 %v4927_v46, %v3366_v58 }
 0x7f1   : > { %3546 = vst [vmem:[#allocation2 + $0x30] sm:$0xff] %v6878_v38 }
 0x7f2   : > { %v3371_v16 = vsel %vm3370_vm6, %v4927_v46, %v3367_v62 }
 0x7f3   : > { %v3495_v34 = vmul.f32 %v3371_v16, %v6774_v1 }
 0x7f5   : > { %v3514_v28 = vmul.f32 %v6866_v26, %v3495_v34 }
 0x7f7   : > { %v6884_v3 = vadd.f32 %v6873_v40, %v3514_v28 }
 0x7f9   : > { %3549 = vst [vmem:[#allocation2 + $0x18] sm:$0xff] %v6884_v3 }
 0x80d   : > { %v3281_v30 = vpop.xlane.xlu2 %3280 }
 0x80e   : > { %v3306_v27 = vmul.f32 %v3281_v30, %v6158_v4 }
 0x810   : > { %v3322_v56 = vadd.f32 1e-12, %v3306_v27 }
 0x812   : > { %4928 = vrsqrt.f32 %v3322_v56  ;;  %vm3398_vm8 = vweird.f32 %v3322_v56 }
 0x818   : > { %v4929_v19 = vpop.eup %4928 }
 0x819   : > { %v3393_v21 = vmul.f32 %v4929_v19, %v3322_v56  ;;  %vm3399_vm7 = vweird.f32 %v4929_v19 }
 0x81a   : > { %vm3400_vm9 = vmor %vm3398_vm8, %vm3399_vm7 }
 0x81b   : > { %v3394_v60 = vmul.f32 %v4929_v19, %v3393_v21 }
 0x81d   : > { %v3395_v20 = vmul.f32 0.5, %v3394_v60 }
 0x81f   : > { %v3396_v50 = vsub.f32 1.5, %v3395_v20 }
 0x821   : > { %v3397_v59 = vmul.f32 %v4929_v19, %v3396_v50 }
 0x823   : > { %v3401_v1 = vsel %vm3400_vm9, %v4929_v19, %v3397_v59  ;;  %v3217_v57 = vpop.xlane.xlu0 %3216 }
 0x824   : > { %v3498_v44 = vmul.f32 %v3401_v1, %v6780_v35  ;;  %v3234_v10 = vmul.f32 %v3217_v57, %v6158_v4 }
 0x825   : > { %v3287_v48 = vpop.xlane.xlu2 %3286 }
 0x826   : > { %v3517_v61 = vmul.f32 %v6866_v26, %v3498_v44  ;;  %v6892_v37 = vsub.f32 %v6788_v47, %v3234_v10  ;;  %v3309_v36 = vmul.f32 %v3287_v48, %v6158_v4 }
 0x828   : > { %v6895_v15 = vadd.f32 %v6873_v40, %v3517_v61  ;;  %v3266_v39 = vmul.f32 %v6892_v37, %v6892_v37  ;;  %v3325_v41 = vadd.f32 1e-12, %v3309_v36 }
 0x82a   : > { %3552 = vst [vmem:[#allocation2 + $0x8] sm:$0xff] %v6895_v15  ;;  %3296 = vadd.xlane.f32.xlu1 %v3266_v39  ;;  %4930 = vrsqrt.f32 %v3325_v41  ;;  %vm3428_vm11 = vweird.f32 %v3325_v41 }
 0x82b   : > { %v3219_v35 = vpop.xlane.xlu1 %3218  ;;  %v3271_v14 = vpop.xlane.xlu0 %3270 }
 0x82c   : > { %v3235_v52 = vmul.f32 %v3219_v35, %v6158_v4  ;;  %v3301_v47 = vmul.f32 %v3271_v14, %v6158_v4 }
 0x82e   : > { %v6904_v42 = vsub.f32 %v6802_v7, %v3235_v52  ;;  %v3317_v22 = vadd.f32 1e-12, %v3301_v47 }
 0x830   : > { %4932 = vrsqrt.f32 %v3317_v22  ;;  %v3267_v0 = vmul.f32 %v6904_v42, %v6904_v42  ;;  %v4931_v23 = vpop.eup %4930  ;;  %vm3348_vm14 = vweird.f32 %v3317_v22 }
 0x831   : > { %v3423_v9 = vmul.f32 %v4931_v23, %v3325_v41  ;;  %vm3429_vm10 = vweird.f32 %v4931_v23 }
 0x832   : > { %3298 = vadd.xlane.f32.xlu2 %v3267_v0  ;;  %vm3430_vm12 = vmor %vm3428_vm11, %vm3429_vm10 }
 0x833   : > { %v3273_v54 = vpop.xlane.xlu1 %3272  ;;  %v3277_v32 = vpop.xlane.xlu0 %3276  ;;  %v3424_v53 = vmul.f32 %v4931_v23, %v3423_v9 }
 0x834   : > { %v3302_v17 = vmul.f32 %v3273_v54, %v6158_v4  ;;  %v3304_v12 = vmul.f32 %v3277_v32, %v6158_v4 }
 0x835   : > { %v3425_v31 = vmul.f32 0.5, %v3424_v53 }
 0x836   : > { %v4933_v46 = vpop.eup %4932  ;;  %v6910_v13 = vadd.f32 1e-12, %v3302_v17  ;;  %v6912_v7 = vadd.f32 1e-12, %v3304_v12 }
 0x837   : > { %v3343_v63 = vmul.f32 %v4933_v46, %v3317_v22  ;;  %v3426_v8 = vsub.f32 1.5, %v3425_v31  ;;  %vm3349_vm13 = vweird.f32 %v4933_v46 }
 0x838   : > { %4934 = vrsqrt.f32 %v6910_v13  ;;  %vm3350_vm15 = vmor %vm3348_vm14, %vm3349_vm13  ;;  %vm3358_vm2 = vweird.f32 %v6910_v13  ;;  %vm3378_vm4 = vweird.f32 %v6912_v7 }
 0x839   : > { %v3344_v5 = vmul.f32 %v4933_v46, %v3343_v63  ;;  %4936 = vrsqrt.f32 %v6912_v7  ;;  %v3427_v2 = vmul.f32 %v4931_v23, %v3426_v8 }
 0x83b   : > { %v3345_v33 = vmul.f32 0.5, %v3344_v5  ;;  %v3279_v58 = vpop.xlane.xlu1 %3278  ;;  %v3283_v62 = vpop.xlane.xlu0 %3282  ;;  %v3431_v28 = vsel %vm3430_vm12, %v4931_v23, %v3427_v2 }
 0x83c   : > { %v3305_v16 = vmul.f32 %v3279_v58, %v6158_v4  ;;  %v3307_v34 = vmul.f32 %v3283_v62, %v6158_v4  ;;  %v3501_v56 = vmul.f32 %v3431_v28, %v6790_v51 }
 0x83d   : > { %v3346_v30 = vsub.f32 1.5, %v3345_v33 }
 0x83e   : > { %v4935_v27 = vpop.eup %4934  ;;  %v6919_v19 = vadd.f32 1e-12, %v3305_v16  ;;  %v6921_v21 = vadd.f32 1e-12, %v3307_v34  ;;  %v3520_v59 = vmul.f32 %v6866_v26, %v3501_v56  ;;  %v3293_v57 = vpop.xlane.xlu2 %3292 }
 0x83f   : > { %v4937_v60 = vpop.eup %4936  ;;  %v3347_v20 = vmul.f32 %v4933_v46, %v3346_v30  ;;  %v3353_v50 = vmul.f32 %v4935_v27, %v6910_v13  ;;  %v3312_v39 = vmul.f32 %v3293_v57, %v6158_v4  ;;  %vm3359_vm0 = vweird.f32 %v4935_v27 }
 0x840   : > { %v3373_v1 = vmul.f32 %v4937_v60, %v6912_v7  ;;  %4938 = vrsqrt.f32 %v6919_v19  ;;  %v6929_v51 = vadd.f32 %v6873_v40, %v3520_v59  ;;  %vm3379_vm1 = vweird.f32 %v4937_v60  ;;  %vm3360_vm3 = vmor %vm3358_vm2, %vm3359_vm0 }
 0x841   : > { %v3351_v44 = vsel %vm3350_vm15, %v4933_v46, %v3347_v20  ;;  %v3354_v10 = vmul.f32 %v4935_v27, %v3353_v50  ;;  %4940 = vrsqrt.f32 %v6921_v21  ;;  %v6937_v23 = vadd.f32 1e-12, %v3312_v39  ;;  %vm3380_vm5 = vmor %vm3378_vm4, %vm3379_vm1 }
 0x842   : > { %v3493_v61 = vmul.f32 %v3351_v44, %v6794_v6  ;;  %v3374_v48 = vmul.f32 %v4937_v60, %v3373_v1  ;;  %3555 = vst [vmem:[#allocation2 + $0x20] sm:$0xff] %v6929_v51  ;;  %vm3388_vm6 = vweird.f32 %v6919_v19  ;;  %vm3408_vm10 = vweird.f32 %v6921_v21 }
 0x843   : > { %v3355_v36 = vmul.f32 0.5, %v3354_v10  ;;  %v3285_v41 = vpop.xlane.xlu1 %3284  ;;  %v3289_v35 = vpop.xlane.xlu0 %3288  ;;  %4942 = vrsqrt.f32 %v6937_v23  ;;  %vm3458_vm13 = vweird.f32 %v6937_v23 }
 0x844   : > { %v3512_v14 = vmul.f32 %v6866_v26, %v3493_v61  ;;  %v3375_v52 = vmul.f32 0.5, %v3374_v48  ;;  %v3308_v47 = vmul.f32 %v3285_v41, %v6158_v4  ;;  %v3310_v22 = vmul.f32 %v3289_v35, %v6158_v4 }
 0x845   : > { %v3356_v0 = vsub.f32 1.5, %v3355_v36 }
 0x846   : > { %v4939_v6 = vpop.eup %4938  ;;  %v6940_v9 = vadd.f32 %v6873_v40, %v3512_v14  ;;  %v3376_v54 = vsub.f32 1.5, %v3375_v52  ;;  %v6942_v32 = vadd.f32 1e-12, %v3308_v47  ;;  %v6944_v17 = vadd.f32 1e-12, %v3310_v22 }
 0x847   : > { %v4941_v12 = vpop.eup %4940  ;;  %v3357_v53 = vmul.f32 %v4935_v27, %v3356_v0  ;;  %v3383_v46 = vmul.f32 %v4939_v6, %v6919_v19  ;;  %vm3389_vm7 = vweird.f32 %v4939_v6 }
 0x848   : > { %3547 = vst [vmem:[#allocation2] sm:$0xff] %v6940_v9  ;;  %v3377_v31 = vmul.f32 %v4937_v60, %v3376_v54  ;;  %v3403_v63 = vmul.f32 %v4941_v12, %v6921_v21  ;;  %4944 = vrsqrt.f32 %v6942_v32  ;;  %vm3409_vm8 = vweird.f32 %v4941_v12  ;;  %vm3390_vm9 = vmor %vm3388_vm6, %vm3389_vm7 }
 0x849   : > { %v3361_v8 = vsel %vm3360_vm3, %v4935_v27, %v3357_v53  ;;  %v3384_v5 = vmul.f32 %v4939_v6, %v3383_v46  ;;  %4946 = vrsqrt.f32 %v6944_v17  ;;  %v4943_v56 = vpop.eup %4942  ;;  %vm3410_vm11 = vmor %vm3408_vm10, %vm3409_vm8  ;;  %vm3418_vm1 = vweird.f32 %v6942_v32 }
 0x84a   : > { %v3494_v13 = vmul.f32 %v3361_v8, %v6808_v25  ;;  %v3381_v2 = vsel %vm3380_vm5, %v4937_v60, %v3377_v31  ;;  %v3404_v33 = vmul.f32 %v4941_v12, %v3403_v63  ;;  %v3453_v50 = vmul.f32 %v4943_v56, %v6937_v23 }
 0x84b   : > { %v3496_v58 = vmul.f32 %v3381_v2, %v6811_v11  ;;  %v3385_v62 = vmul.f32 0.5, %v3384_v5  ;;  %v3291_v16 = vpop.xlane.xlu1 %3290  ;;  %v3295_v34 = vpop.xlane.xlu0 %3294  ;;  %vm3459_vm12 = vweird.f32 %v4943_v56  ;;  %vm3438_vm3 = vweird.f32 %v6944_v17 }
 0x84c   : > { %v3513_v7 = vmul.f32 %v6866_v26, %v3494_v13  ;;  %v3405_v28 = vmul.f32 0.5, %v3404_v33  ;;  %v3311_v30 = vmul.f32 %v3291_v16, %v6158_v4  ;;  %v3313_v27 = vmul.f32 %v3295_v34, %v6158_v4  ;;  %vm3460_vm15 = vmor %vm3458_vm13, %vm3459_vm12 }
 0x84d   : > { %v3515_v20 = vmul.f32 %v6866_v26, %v3496_v58  ;;  %v3386_v25 = vsub.f32 1.5, %v3385_v62  ;;  %v3454_v48 = vmul.f32 %v4943_v56, %v3453_v50 }
 0x84e   : > { %v6963_v60 = vadd.f32 %v6873_v40, %v3513_v7  ;;  %v3406_v11 = vsub.f32 1.5, %v3405_v28  ;;  %v4945_v59 = vpop.eup %4944  ;;  %v6969_v44 = vadd.f32 1e-12, %v3311_v30  ;;  %v6971_v10 = vadd.f32 1e-12, %v3313_v27 }
 0x84f   : > { %v6967_v1 = vadd.f32 %v6873_v40, %v3515_v20  ;;  %v3387_v57 = vmul.f32 %v4939_v6, %v3386_v25  ;;  %v4947_v61 = vpop.eup %4946  ;;  %v3413_v36 = vmul.f32 %v4945_v59, %v6942_v32  ;;  %v3455_v52 = vmul.f32 0.5, %v3454_v48 }
 0x850   : > { %3548 = vst [vmem:[#allocation2 + $0x58] sm:$0xff] %v6963_v60  ;;  %v3407_v19 = vmul.f32 %v4941_v12, %v3406_v11  ;;  %v3433_v41 = vmul.f32 %v4947_v61, %v6944_v17  ;;  %4948 = vrsqrt.f32 %v6969_v44  ;;  %vm3419_vm14 = vweird.f32 %v4945_v59 }
 0x851   : > { %3550 = vst [vmem:[#allocation2 + $0x50] sm:$0xff] %v6967_v1  ;;  %v3391_v39 = vsel %vm3390_vm9, %v4939_v6, %v3387_v57  ;;  %v3414_v47 = vmul.f32 %v4945_v59, %v3413_v36  ;;  %4950 = vrsqrt.f32 %v6971_v10  ;;  %v3456_v54 = vsub.f32 1.5, %v3455_v52  ;;  %vm3420_vm2 = vmor %vm3418_vm1, %vm3419_vm14 }
 0x852   : > { %v3497_v35 = vmul.f32 %v3391_v39, %v6820_v45  ;;  %v3411_v14 = vsel %vm3410_vm11, %v4941_v12, %v3407_v19  ;;  %v3434_v21 = vmul.f32 %v4947_v61, %v3433_v41  ;;  %vm3439_vm0 = vweird.f32 %v4947_v61 }
 0x853   : > { %v3499_v22 = vmul.f32 %v3411_v14, %v6823_v29  ;;  %v3415_v6 = vmul.f32 0.5, %v3414_v47  ;;  %v3457_v12 = vmul.f32 %v4943_v56, %v3456_v54  ;;  %vm3440_vm4 = vmor %vm3438_vm3, %vm3439_vm0  ;;  %vm3448_vm6 = vweird.f32 %v6969_v44 }
 0x854   : > { %v3516_v0 = vmul.f32 %v6866_v26, %v3497_v35  ;;  %v3435_v46 = vmul.f32 0.5, %v3434_v21  ;;  %vm3468_vm9 = vweird.f32 %v6971_v10 }
 0x855   : > { %v3518_v53 = vmul.f32 %v6866_v26, %v3499_v22  ;;  %v3416_v31 = vsub.f32 1.5, %v3415_v6  ;;  %v3461_v5 = vsel %vm3460_vm15, %v4943_v56, %v3457_v12 }
 0x856   : > { %v6987_v45 = vadd.f32 %v6873_v40, %v3516_v0  ;;  %v4949_v29 = vpop.eup %4948  ;;  %v3436_v8 = vsub.f32 1.5, %v3435_v46  ;;  %v3504_v33 = vmul.f32 %v3461_v5, %v6833_v49 }
 0x857   : > { %v6990_v63 = vadd.f32 %v6873_v40, %v3518_v53  ;;  %v3417_v13 = vmul.f32 %v4945_v59, %v3416_v31  ;;  %v3443_v23 = vmul.f32 %v4949_v29, %v6969_v44  ;;  %v4951_v2 = vpop.eup %4950  ;;  %vm3449_vm5 = vweird.f32 %v4949_v29 }
 0x858   : > { %3551 = vst [vmem:[#allocation2 + $0x68] sm:$0xff] %v6987_v45  ;;  %v3437_v58 = vmul.f32 %v4947_v61, %v3436_v8  ;;  %v3463_v34 = vmul.f32 %v4951_v2, %v6971_v10  ;;  %v3523_v7 = vmul.f32 %v6866_v26, %v3504_v33  ;;  %vm3469_vm7 = vweird.f32 %v4951_v2  ;;  %vm3450_vm8 = vmor %vm3448_vm6, %vm3449_vm5 }
 0x859   : > { %3553 = vst [vmem:[#allocation2 + $0x48] sm:$0xff] %v6990_v63  ;;  %v3421_v62 = vsel %vm3420_vm2, %v4945_v59, %v3417_v13  ;;  %v3444_v16 = vmul.f32 %v4949_v29, %v3443_v23  ;;  %vm3470_vm10 = vmor %vm3468_vm9, %vm3469_vm7 }
 0x85a   : > { %v3500_v32 = vmul.f32 %v3421_v62, %v6836_v24  ;;  %v3441_v28 = vsel %vm3440_vm4, %v4947_v61, %v3437_v58  ;;  %v3464_v56 = vmul.f32 %v4951_v2, %v3463_v34  ;;  %v7003_v49 = vadd.f32 %v6873_v40, %v3523_v7 }
 0x85b   : > { %v3502_v30 = vmul.f32 %v3441_v28, %v6839_v18  ;;  %v3445_v27 = vmul.f32 0.5, %v3444_v16 }
 0x85c   : > { %v3519_v20 = vmul.f32 %v6866_v26, %v3500_v32  ;;  %v3465_v11 = vmul.f32 0.5, %v3464_v56  ;;  %3558 = vst [vmem:[#allocation2 + $0x60] sm:$0xff] %v7003_v49 }
 0x85d   : > { %v3521_v17 = vmul.f32 %v6866_v26, %v3502_v30  ;;  %v3446_v25 = vsub.f32 1.5, %v3445_v27 }
 0x85e   : > { %v7009_v50 = vadd.f32 %v6873_v40, %v3519_v20  ;;  %v3466_v59 = vsub.f32 1.5, %v3465_v11 }
 0x85f   : > { %v7013_v24 = vadd.f32 %v6873_v40, %v3521_v17  ;;  %v3447_v18 = vmul.f32 %v4949_v29, %v3446_v25 }
 0x860   : > { %3554 = vst [vmem:[#allocation2 + $0x40] sm:$0xff] %v7009_v50  ;;  %v3467_v61 = vmul.f32 %v4951_v2, %v3466_v59 }
 0x861   : > { %3556 = vst [vmem:[#allocation2 + $0x10] sm:$0xff] %v7013_v24  ;;  %v3451_v57 = vsel %vm3450_vm8, %v4949_v29, %v3447_v18 }
 0x862   : > { %v3503_v19 = vmul.f32 %v3451_v57, %v6850_v43  ;;  %v3471_v48 = vsel %vm3470_vm10, %v4951_v2, %v3467_v61 }
 0x863   : > { %v3505_v36 = vmul.f32 %v3471_v48, %v6853_v55 }
 0x864   : > { %v3522_v44 = vmul.f32 %v6866_v26, %v3503_v19 }
 0x865   : > { %v3524_v41 = vmul.f32 %v6866_v26, %v3505_v36 }
 0x866   : > { %v7022_v39 = vadd.f32 %v6873_v40, %v3522_v44 }
 0x867   : > { %v7027_v35 = vadd.f32 %v6873_v40, %v3524_v41 }
 0x868   : > { %3557 = vst [vmem:[#allocation2 + $0x38] sm:$0xff] %v7022_v39 }
 0x869   : > { %3559 = vst [vmem:[#allocation2 + $0x70] sm:$0xff] %v7027_v35 }
 0x89d   : > { %v3297_v10 = vpop.xlane.xlu1 %3296 }
 0x89e   : > { %v3314_v43 = vmul.f32 %v3297_v10, %v6158_v4 }
 0x8a0   : > { %v3330_v14 = vadd.f32 1e-12, %v3314_v43 }
 0x8a2   : > { %4952 = vrsqrt.f32 %v3330_v14  ;;  %vm3478_vm12 = vweird.f32 %v3330_v14 }
 0x8a5   : > { %v3299_v52 = vpop.xlane.xlu2 %3298 }
 0x8a6   : > { %v3315_v55 = vmul.f32 %v3299_v52, %v6158_v4 }
 0x8a8   : > { %v4953_v47 = vpop.eup %4952  ;;  %v3331_v22 = vadd.f32 1e-12, %v3315_v55 }
 0x8a9   : > { %v3473_v21 = vmul.f32 %v4953_v47, %v3330_v14  ;;  %vm3479_vm11 = vweird.f32 %v4953_v47 }
 0x8aa   : > { %4954 = vrsqrt.f32 %v3331_v22  ;;  %vm3480_vm13 = vmor %vm3478_vm12, %vm3479_vm11  ;;  %vm3488_vm15 = vweird.f32 %v3331_v22 }
 0x8ab   : > { %v3474_v0 = vmul.f32 %v4953_v47, %v3473_v21 }
 0x8ad   : > { %v3475_v54 = vmul.f32 0.5, %v3474_v0 }
 0x8af   : > { %v3476_v6 = vsub.f32 1.5, %v3475_v54 }
 0x8b0   : > { %v4955_v53 = vpop.eup %4954 }
 0x8b1   : > { %v3477_v46 = vmul.f32 %v4953_v47, %v3476_v6  ;;  %v3483_v12 = vmul.f32 %v4955_v53, %v3331_v22  ;;  %vm3489_vm14 = vweird.f32 %v4955_v53 }
 0x8b2   : > { %vm3490_vm0 = vmor %vm3488_vm15, %vm3489_vm14 }
 0x8b3   : > { %v3481_v31 = vsel %vm3480_vm13, %v4953_v47, %v3477_v46  ;;  %v3484_v29 = vmul.f32 %v4955_v53, %v3483_v12 }
 0x8b4   : > { %v3506_v8 = vmul.f32 %v3481_v31, %v6892_v37 }
 0x8b5   : > { %v3485_v5 = vmul.f32 0.5, %v3484_v29 }
 0x8b6   : > { %v3525_v4 = vmul.f32 %v6866_v26, %v3506_v8 }
 0x8b7   : > { %v3486_v13 = vsub.f32 1.5, %v3485_v5 }
 0x8b8   : > { %v7035_v23 = vadd.f32 %v6873_v40, %v3525_v4 }
 0x8b9   : > { %v3487_v2 = vmul.f32 %v4955_v53, %v3486_v13 }
 0x8ba   : > { %3560 = vst [vmem:[#allocation2 + $0x78] sm:$0xff] %v7035_v23 }
 0x8bb   : > { %v3491_v33 = vsel %vm3490_vm0, %v4955_v53, %v3487_v2 }
 0x8bc   : > { %v3507_v58 = vmul.f32 %v3491_v33, %v6904_v42 }
 0x8be   : > { %v3526_v62 = vmul.f32 %v6866_v26, %v3507_v58  ;;  %3565 = sbr.rel (%p4467_p3) target bundleno = 2825 (0xb09), region = 140 }
 0x8c0   : > { %v7041_v37 = vadd.f32 %v6873_v40, %v3526_v62 }
 0x8c2   : > { %3561 = vst [vmem:[#allocation2 + $0x28] sm:$0xff] %v7041_v37 }
 0x8c3   : > { %v3570_v16 = vld [vmem:[%s5729_s28 + $0x20] sm:$0xff]  ;;  %vm3699_vm1 = vcmask 7168   ;;  %v3568_v34 = vld [vmem:[%s5729_s28 + $0x10] sm:$0xff]  ;;  %v5339_v7 = vmov 0   ;;  %v3569_v40 = vld [vmem:[%s5729_s28 + $0x18] sm:$0xff]  ;;  %vm3850_vm6 = vcmask 1040384  }
 0x8c4   : > { %v3566_v42 = vld [vmem:[%s5729_s28] sm:$0xff]  ;;  %4974 = vset.pattern.permute.xlu2 %v5339_v7  ;;  %4973 = vset.pattern.permute.xlu1 %v5339_v7  ;;  %v3567_v32 = vld [vmem:[%s5729_s28 + $0x8] sm:$0xff]  ;;  %v3703_v28 = vsel %vm3699_vm1, %v3568_v34, 0.0  ;;  %v3705_v56 = vsel %vm3699_vm1, %v3569_v40, 0.0  ;;  %v3707_v25 = vsel %vm3699_vm1, %v3570_v16, 0.0  ;;  %v3572_v18 = vld [vmem:[%s5729_s28 + $0x30] sm:$0xff] }
 0x8c5   : > { %v3700_v26 = vsel %vm3699_vm1, %v3566_v42, 0.0  ;;  %4972 = vset.pattern.permute.xlu0 %v5339_v7  ;;  %3604 = vperm.xlu2 %4974, %v3570_v16   ;;  %v3701_v30 = vsel %vm3699_vm1, %v3567_v32, 0.0  ;;  %v3571_v20 = vld [vmem:[%s5729_s28 + $0x28] sm:$0xff]  ;;  %v3573_v61 = vld [vmem:[%s5729_s28 + $0x38] sm:$0xff]  ;;  %v3711_v19 = vsel %vm3699_vm1, %v3572_v18, 0.0  ;;  %v3574_v48 = vld [vmem:[%s5729_s28 + $0x40] sm:$0xff] }
 0x8c6   : > { %3594 = vperm.xlu1 %4973, %v3568_v34   ;;  %3584 = vperm.xlu0 %4972, %v3566_v42   ;;  %v3702_v27 = vadd.f32 %v3701_v30, %v3700_v26  ;;  %v3709_v59 = vsel %vm3699_vm1, %v3571_v20, 0.0  ;;  %v3713_v36 = vsel %vm3699_vm1, %v3573_v61, 0.0  ;;  %v3575_v10 = vld [vmem:[%s5729_s28 + $0x48] sm:$0xff]  ;;  %v3715_v43 = vsel %vm3699_vm1, %v3574_v48, 0.0  ;;  %v3576_v52 = vld [vmem:[%s5729_s28 + $0x50] sm:$0xff]  ;;  %v3577_v47 = vld [vmem:[%s5729_s28 + $0x58] sm:$0xff] }
 0x8c7   : > { %v3717_v55 = vsel %vm3699_vm1, %v3575_v10, 0.0  ;;  %v3719_v21 = vsel %vm3699_vm1, %v3576_v52, 0.0  ;;  %v3578_v54 = vld [vmem:[%s5729_s28 + $0x60] sm:$0xff]  ;;  %v3721_v6 = vsel %vm3699_vm1, %v3577_v47, 0.0  ;;  %v3579_v46 = vld [vmem:[%s5729_s28 + $0x68] sm:$0xff]  ;;  %v3580_v31 = vld [vmem:[%s5729_s28 + $0x70] sm:$0xff] }
 0x8c8   : > { %v3704_v17 = vadd.f32 %v3703_v28, %v3702_v27  ;;  %v3723_v12 = vsel %vm3699_vm1, %v3578_v54, 0.0  ;;  %v3725_v8 = vsel %vm3699_vm1, %v3579_v46, 0.0  ;;  %v3581_v4 = vld [vmem:[%s5729_s28 + $0x78] sm:$0xff]  ;;  %v3727_v13 = vsel %vm3699_vm1, %v3580_v31, 0.0  ;;  %s7297_s28 = scalar_lea.vmem %s7296_s10, %s7295_s5 }
 0x8c9   : > { %v3729_v33 = vsel %vm3699_vm1, %v3581_v4, 0.0  ;;  %v3758_v7 = vld [vmem:[%s7297_s28] sm:$0x1] }
 0x8ca   : > { %v3706_v11 = vadd.f32 %v3705_v56, %v3704_v17  ;;  %v4577_v17 = vld [vmem:[#allocation16 + $0x30] sm:$0xff] }
 0x8cc   : > { %v3708_v57 = vadd.f32 %v3707_v25, %v3706_v11 }
 0x8cd   : > { %3609 = vperm.xlu2 %4974, %v3571_v20   ;;  %v4578_v20 = vld [vmem:[#allocation16 + $0x38] sm:$0xff] }
 0x8ce   : > { %3599 = vperm.xlu1 %4973, %v3569_v40   ;;  %3589 = vperm.xlu0 %4972, %v3567_v32   ;;  %v3710_v44 = vadd.f32 %v3709_v59, %v3708_v57 }
 0x8cf   : > { %3832 = vmatpush.bf16.msra.mxu0 %v4578_v20 }
 0x8d0   : > { %v3712_v41 = vadd.f32 %v3711_v19, %v3710_v44 }
 0x8d2   : > { %v3714_v14 = vadd.f32 %v3713_v36, %v3712_v41  ;;  %v4575_v41 = vld [vmem:[#allocation16 + $0x20] sm:$0xff] }
 0x8d3   : > { %3833 = vmatpush.bf16.msra.mxu0 %v4577_v17 }
 0x8d4   : > { %v3716_v22 = vadd.f32 %v3715_v43, %v3714_v14 }
 0x8d5   : > { %3624 = vperm.xlu2 %4974, %v3574_v48  }
 0x8d6   : > { %3619 = vperm.xlu1 %4973, %v3573_v61   ;;  %3614 = vperm.xlu0 %4972, %v3572_v18   ;;  %v3718_v0 = vadd.f32 %v3717_v55, %v3716_v22  ;;  %v4576_v61 = vld [vmem:[#allocation16 + $0x28] sm:$0xff] }
 0x8d7   : > { %3834 = vmatpush.bf16.msra.mxu0 %v4576_v61 }
 0x8d8   : > { %v3720_v53 = vadd.f32 %v3719_v21, %v3718_v0  ;;  %v4573_v0 = vld [vmem:[#allocation16 + $0x10] sm:$0xff] }
 0x8da   : > { %v3722_v29 = vadd.f32 %v3721_v6, %v3720_v53 }
 0x8db   : > { %3835 = vmatpush.bf16.msra.mxu0 %v4575_v41  ;;  %v3845_v41 = vld [vmem:[%s7299_s9] sm:$0x1] }
 0x8dc   : > { %v3724_v5 = vadd.f32 %v3723_v12, %v3722_v29 }
 0x8dd   : > { %3639 = vperm.xlu2 %4974, %v3577_v47   ;;  %v4574_v47 = vld [vmem:[#allocation16 + $0x18] sm:$0xff] }
 0x8de   : > { %3634 = vperm.xlu1 %4973, %v3576_v52   ;;  %3629 = vperm.xlu0 %4972, %v3575_v10   ;;  %v3726_v2 = vadd.f32 %v3725_v8, %v3724_v5 }
 0x8df   : > { %3836 = vmatpush.bf16.msra.mxu0 %v4574_v47 }
 0x8e0   : > { %v3728_v58 = vadd.f32 %v3727_v13, %v3726_v2 }
 0x8e2   : > { %v3730_v62 = vadd.f32 %v3729_v33, %v3728_v58 }
 0x8e3   : > { %3837 = vmatpush.bf16.msra.mxu0 %v4573_v0 }
 0x8e4   : > { %v3731_v16 = vrot.slane %v3730_v62, 4 }
 0x8e5   : > { %3654 = vperm.xlu2 %4974, %v3580_v31  }
 0x8e6   : > { %3649 = vperm.xlu1 %4973, %v3579_v46   ;;  %3644 = vperm.xlu0 %4972, %v3578_v54   ;;  %v3732_v34 = vadd.f32 %v3731_v16, %v3730_v62  ;;  %v4572_v46 = vld [vmem:[#allocation16 + $0x8] sm:$0xff] }
 0x8e7   : > { %3838 = vmatpush.bf16.msra.mxu0 %v4572_v46 }
 0x8e8   : > { %v3733_v42 = vrot.slane %v3732_v34, 2 }
 0x8ea   : > { %v3734_v26 = vadd.f32 %v3733_v42, %v3732_v34 }
 0x8ec   : > { %v3735_v40 = vrot.slane %v3734_v26, 1 }
 0x8ed   : > { %3779 = vperm.xlu2 %4974, %v3758_v7  }
 0x8ee   : > { %3659 = vperm.xlu1 %4973, %v3581_v4   ;;  %v3736_v32 = vadd.f32 %v3735_v40, %v3734_v26 }
 0x8f0   : > { %v3737_v28 = vmax.f32 %v3736_v32, 1.0 }
 0x8f2   : > { %3740 = vperm.xlu0 %4972, %v3737_v28  }
 0x91f   : > { %v3605_v30 = vpop.permute.xlu2 %3604 }
 0x920   : > { %v3666_v10 = vmul.f32 %v3605_v30, %v6967_v1 }
 0x927   : > { %v3610_v25 = vpop.permute.xlu2 %3609 }
 0x928   : > { %v3667_v55 = vmul.f32 %v3610_v25, %v6987_v45 }
 0x938   : > { %v3595_v27 = vpop.permute.xlu1 %3594  ;;  %v3585_v56 = vpop.permute.xlu0 %3584 }
 0x939   : > { %v3662_v59 = vmul.f32 %v3585_v56, %v6878_v38  ;;  %v3664_v19 = vmul.f32 %v3595_v27, %v6963_v60 }
 0x940   : > { %v3600_v11 = vpop.permute.xlu1 %3599  ;;  %v3590_v18 = vpop.permute.xlu0 %3589 }
 0x941   : > { %v3663_v57 = vmul.f32 %v3590_v18, %v6940_v9  ;;  %v3665_v44 = vmul.f32 %v3600_v11, %v6884_v3  ;;  %v3625_v9 = vpop.permute.xlu2 %3624 }
 0x942   : > { %v3670_v54 = vmul.f32 %v3625_v9, %v7009_v50  ;;  %v3854_v9 = vld [vmem:[#allocation4] sm:$0x1] }
 0x943   : > { %v3678_v48 = vadd.f32 %v3663_v57, %v3662_v59 }
 0x945   : > { %v3679_v36 = vadd.f32 %v3678_v48, %v3664_v19  ;;  %v3776_v48 = vld [vmem:[%s7298_s27] sm:$0x1] }
 0x947   : > { %v3680_v43 = vadd.f32 %v3679_v36, %v3665_v44 }
 0x948   : > { %v3620_v14 = vpop.permute.xlu1 %3619  ;;  %v3615_v52 = vpop.permute.xlu0 %3614 }
 0x949   : > { %v3681_v38 = vadd.f32 %v3680_v43, %v3666_v10  ;;  %v3668_v60 = vmul.f32 %v3615_v52, %v6895_v15  ;;  %v3669_v21 = vmul.f32 %v3620_v14, %v6990_v63  ;;  %v4571_v15 = vld [vmem:[#allocation16] sm:$0xff]  ;;  %v3640_v8 = vpop.permute.xlu2 %3639  ;;  %v3848_v14 = vld [vmem:[%s7300_s19] sm:$0x1] }
 0x94a   : > { %v3673_v63 = vmul.f32 %v3640_v8, %v7022_v39  ;;  %3839 = vmatpush.bf16.msra.mxu0 %v4571_v15 }
 0x94b   : > { %v3682_v22 = vadd.f32 %v3681_v38, %v3667_v55 }
 0x94d   : > { %v3683_v3 = vadd.f32 %v3682_v22, %v3668_v60 }
 0x94f   : > { %v3684_v1 = vadd.f32 %v3683_v3, %v3669_v21 }
 0x950   : > { %v3635_v6 = vpop.permute.xlu1 %3634  ;;  %v3630_v53 = vpop.permute.xlu0 %3629 }
 0x951   : > { %v3685_v12 = vadd.f32 %v3684_v1, %v3670_v54  ;;  %v3671_v45 = vmul.f32 %v3630_v53, %v6929_v51  ;;  %v3672_v31 = vmul.f32 %v3635_v6, %v7013_v24  ;;  %v3655_v51 = vpop.permute.xlu2 %3654 }
 0x952   : > { %v3676_v24 = vmul.f32 %v3655_v51, %v7035_v23 }
 0x953   : > { %v3686_v29 = vadd.f32 %v3685_v12, %v3671_v45 }
 0x955   : > { %v3687_v5 = vadd.f32 %v3686_v29, %v3672_v31 }
 0x957   : > { %v3688_v13 = vadd.f32 %v3687_v5, %v3673_v63 }
 0x958   : > { %v3650_v4 = vpop.permute.xlu1 %3649  ;;  %v3645_v50 = vpop.permute.xlu0 %3644 }
 0x959   : > { %v3674_v2 = vmul.f32 %v3645_v50, %v7003_v49  ;;  %v3675_v33 = vmul.f32 %v3650_v4, %v7027_v35  ;;  %v3780_v61 = vpop.permute.xlu2 %3779 }
 0x95a   : > { %v3782_v19 = vperm.slane %v3780_v61, 0 }
 0x95b   : > { %v3689_v58 = vadd.f32 %v3688_v13, %v3674_v2 }
 0x95c   : > { %v3783_v44 = vmul.f32 %v3782_v19, %v3776_v48 }
 0x95d   : > { %v3690_v62 = vadd.f32 %v3689_v58, %v3675_v33 }
 0x95f   : > { %v3691_v42 = vadd.f32 %v3690_v62, %v3676_v24 }
 0x960   : > { %v3660_v16 = vpop.permute.xlu1 %3659 }
 0x961   : > { %v3677_v34 = vmul.f32 %v3660_v16, %v7041_v37 }
 0x963   : > { %v3692_v7 = vadd.f32 %v3691_v42, %v3677_v34 }
 0x964   : > { %v3741_v26 = vpop.permute.xlu0 %3740 }
 0x965   : > { %v3693_v39 = vrot.slane %v3692_v7, 4  ;;  %4975 = vrcp.f32 %v3741_v26  ;;  %v3754_v35 = vand.u32 2147483648, %v3741_v26  ;;  %v3752_v17 = vand.u32 2147483647, %v3741_v26 }
 0x966   : > { %vm3748_vm3 = vweird.f32 %v3741_v26 }
 0x967   : > { %v3694_v40 = vadd.f32 %v3693_v39, %v3692_v7  ;;  %v3755_v37 = vor.u32 1.1754944e-38, %v3754_v35  ;;  %vm3753_vm5 = vcmp.eq.f32.partialorder %v3752_v17, 8.507059e+37 }
 0x969   : > { %v3695_v32 = vrot.slane %v3694_v40, 2 }
 0x96b   : > { %v4976_v28 = vpop.eup %4975  ;;  %v3696_v49 = vadd.f32 %v3695_v32, %v3694_v40 }
 0x96c   : > { %v3744_v30 = vmul.f32 %v4976_v28, %v3741_v26  ;;  %vm3749_vm2 = vweird.f32 %v4976_v28 }
 0x96d   : > { %v3697_v20 = vrot.slane %v3696_v49, 1  ;;  %vm3750_vm4 = vmor %vm3748_vm3, %vm3749_vm2 }
 0x96e   : > { %v3745_v27 = vsub.f32 1.0, %v3744_v30 }
 0x96f   : > { %v3698_v25 = vadd.f32 %v3697_v20, %v3696_v49 }
 0x970   : > { %v3746_v56 = vmul.f32 %v4976_v28, %v3745_v27 }
 0x972   : > { %v3747_v23 = vadd.f32 %v4976_v28, %v3746_v56 }
 0x974   : > { %v3751_v11 = vsel %vm3750_vm4, %v4976_v28, %v3747_v23 }
 0x975   : > { %v3756_v18 = vsel %vm3753_vm5, %v3755_v37, %v3751_v11 }
 0x976   : > { %v3757_v59 = vmul.f32 %v3756_v18, %v3698_v25 }
 0x978   : > { %v3759_v57 = vpack.c.bf16 %v3757_v59, %v3757_v59 }
 0x97a   : > { %3840 = vmatmul.bf16.vlgmr.msra.gmra.mxu0 %v3759_v57 }
 0x9f7   : > { %v3841_v36 = vpop.f32.mrf.mxu0 }
 0x9f8   : > { %v3842_v10 = vadd.f32 %v3841_v36, %v3783_v44 }
 0x9fa   : > { %v3846_v43 = vadd.f32 %v3845_v41, %v3842_v10 }
 0x9fc   : > { %v3847_v52 = vmax.f32 %v3846_v43, 0.0 }
 0x9fe   : > { %v3849_v55 = vmul.f32 %v3848_v14, %v3847_v52 }
 0x9ff   : > { %v3843_v38 = vpop.f32.mrf.mxu0 }
 0xa00   : > { %v3851_v47 = vsel %vm3850_vm6, %v3849_v55, 0.0 }
 0xa01   : > { %3852 = vadd.xlane.f32.xlu0 %v3851_v47 }
 0xa74   : > { %v3853_v22 = vpop.xlane.xlu0 %3852 }
 0xa75   : > { %v3855_v60 = vadd.f32 %v3854_v9, %v3853_v22 }
 0xa77   : > { %v3856_v21 = vsub.f32 0.0, %v3855_v60 }
 0xa79   : > { %v3857_v3 = vmul.f32 1.442695, %v3856_v21 }
 0xa7b   : > { %4977 = vpow2.f32 %v3857_v3 }
 0xa81   : > { %v4978_v0 = vpop.eup %4977 }
 0xa82   : > { %v3859_v54 = vadd.f32 1.0, %v4978_v0 }
 0xa84   : > { %4979 = vrcp.f32 %v3859_v54  ;;  %v3871_v46 = vand.u32 2147483648, %v3859_v54  ;;  %v3869_v45 = vand.u32 2147483647, %v3859_v54  ;;  %vm3865_vm8 = vweird.f32 %v3859_v54 }
 0xa86   : > { %v3872_v29 = vor.u32 1.1754944e-38, %v3871_v46  ;;  %vm3870_vm10 = vcmp.eq.f32.partialorder %v3869_v45, 8.507059e+37 }
 0xa8a   : > { %v4980_v1 = vpop.eup %4979 }
 0xa8b   : > { %v3861_v6 = vmul.f32 %v4980_v1, %v3859_v54  ;;  %vm3866_vm7 = vweird.f32 %v4980_v1 }
 0xa8c   : > { %vm3867_vm9 = vmor %vm3865_vm8, %vm3866_vm7 }
 0xa8d   : > { %v3862_v53 = vsub.f32 1.0, %v3861_v6 }
 0xa8f   : > { %v3863_v12 = vmul.f32 %v4980_v1, %v3862_v53 }
 0xa91   : > { %v3864_v31 = vadd.f32 %v4980_v1, %v3863_v12 }
 0xa93   : > { %v3868_v15 = vsel %vm3867_vm9, %v4980_v1, %v3864_v31 }
 0xa94   : > { %v3873_v8 = vsel %vm3870_vm10, %v3872_v29, %v3868_v15 }
 0xa95   : > { %3877 = vperm.xlu1 %4973, %v3873_v8  }
 0xb07   : > { %v3878_v5 = vpop.permute.xlu1 %3877 }
 0xb08   : > { %3880 = vst [vmem:[%s1019_s1] sm:$0x1] %v3878_v5 }
 0xb09 PF: > { %s7301_s3 = sld [smem:[#allocation30_spill]]  ;;  %s3892_s7 = sshll.u32 %s1019_s1, 4  ;;  %s3893_s7 = int_to_ptr.vmem [resolvable:$true] %s3892_s7 }
 0xb0a   : > { %s7302_s29 = sld [smem:[#allocation61_spill]]  ;;  %s3882_s26 = scalar_lea.sflag [#allocation7], %s5672_s0 }
 0xb10   : > { %s7303_s18 = smov %s7302_s29  ;;  %s3890_s24 = scalar_lea.hbm %s7302_s29, %s7301_s3 }
 0xb11   : > { %s3894_s23 = sshll.u32 %s3890_s24, 4  ;;  %s5211_s20 = scalar_lea.hbm %s7303_s18, 2  ;;  %s3895_s23 = int_to_ptr.hbm [resolvable:$true] %s3894_s23 }
 0xb12   : > { %s5205_s8 = sshra.s32 %s3895_s23, 4  ;;  %s5206_s8 = int_to_ptr.hbm [resolvable:$true] %s5205_s8 }
 0xb13   : > { %s5207_s21 = scalar_lea.hbm %s5206_s8, 1  ;;  %p5212_p11 = scmp.lt.s32.totalorder %s5206_s8, %s7303_s18 }
 0xb14   : > { %p5208_p7 = scmp.ne.s32.totalorder %s5206_s8, %s5207_s21  ;;  %p5213_p13 = scmp.lt.s32.totalorder %s5211_s20, %s5207_s21 }
 0xb16   : > { %p5209_p9 = pnand %p5208_p7, %p5619_p1  ;;  %p5214_p0 = por %p5213_p13, %p5212_p11 }
 0xb18   : > { %p5210_p8 = pneg %p5209_p9 }
 0xb1a   : > { %p5215_p5 = pnand %p5214_p0, %p5210_p8 }
 0xb1c   : > { %5218 = shalt.err (!%p5215_p5)
}
 0xb1d   : > { %4625 = dma.vmem_to_hbm [thread:$0]  (%p5619_p1), %s3893_s7, 16, %s3895_s23, %s3882_s26  }
 0xb1e PF: > { %s7305_s0 = sld [smem:[#allocation33_spill]] }
 0xb1f   : > { %s7306_s1 = sld [smem:[#allocation26_spill]] }
 0xb24   : > { %p4657_p10 = scmp.ge.s32.totalorder %s7305_s0, 2 }
 0xb25   : > { %s3906_s10 = sand.u32 1, %s7306_s1  }
 0xb26   : > { %p4651_p12 = pnand %p4657_p10, %p5630_p6  ;;  %s3907_s28 = scalar_lea.sflag [#allocation7], %s3906_s10 }
 0xb28   : > { %p4652_p2 = pneg %p4651_p12 }
 0xb2a   : > { %5284 = dma.done.wait (%p4652_p2), %s3907_s28, 16  }
 0xb2b   : > { %5286 = vsyncadd (%p4652_p2), %s3907_s28, 4294967280  ;;  %s48_s22 = sadd.s32 1, %s7305_s0   ;;  %s7308_s26 = sld [smem:[#allocation24_spill]] }
 0xb2c   : > { %p45_p4 = scmp.ge.s32.totalorder %s48_s22, 6   ;;  %s7309_s27 = sld [smem:[#allocation25_spill]] }
 0xb2d   : > { %s7310_s3 = sld [smem:[#allocation36_spill]] }
 0xb2e   : > { %s7311_s28 = sld [smem:[#allocation27_spill]] }
 0xb2f   : > { %s7312_s20 = sld [smem:[#allocation28_spill]] }
 0xb30   : > { %s7313_s29 = sld [smem:[#allocation38_spill]]  ;;  %47 = sbr.rel (!%p45_p4) target bundleno = 37 (0x25), region = 252 }
 0xb31   : > { %s7314_s0 = sld [smem:[#allocation31_spill]] }
 0xb32   : > { %s7315_s4 = sld [smem:[#allocation32_spill]] }
 0xb33   : > { %s7316_s30 = sld [smem:[#allocation34_spill]] }
 0xb34   : > { %s7317_s5 = sld [smem:[#allocation35_spill]] }
 0xb35   :  { %3912 = vsyncpa [#allocation6], 1 }
 0xb36   :  { %3914 = vsyncpa [#allocation6 + $0x1], 1 }
 0xb37   :  { %3915 = vsyncpa [#allocation9], 1 }
 0xb38   :  { %3917 = vsyncpa [#allocation9 + $0x1], 1 }
 0xb39   :  { %3918 = vsyncpa [#allocation12], 1 }
 0xb3a   :  { %3920 = vsyncpa [#allocation12 + $0x1], 1 }
 0xb3b   :  { %3921 = vsyncpa [#allocation15], 1 }
 0xb3c   :  { %3923 = vsyncpa [#allocation15 + $0x1], 1 }
 0xb3d   :  { %3924 = vsyncpa [#allocation7], 1 }
 0xb3e   :  { %3926 = vsyncpa [#allocation7 + $0x1], 1 }

</bundles_post_ra>
